<compile_context>
chip_gen: v5e
topology: v5e:2x2
jax: 0.10.0
libtpu: 0.0.40
codegen_flags: <defaults>
</compile_context>

<pallas_src>
import functools

import jax
import jax.numpy as jnp
from jax.experimental import pallas as pl
from jax.experimental.pallas import tpu as pltpu

TAO = 10.0
B = 1.0
BETA = 1.0
EPS = 1e-6                                # nn.PairwiseDistance(p=2, eps=1e-06)

_TARGET_TILE_BYTES = 4 * 1024 * 1024      # ~4 MiB per feature tile
_MAX_TILE_N = 2048                        # bounds (tile_n,1) vreg/VMEM pressure
_MIN_PALLAS_ELEMS = 1 << 15               # below this, use the fused XLA path


def _round_up(x, m):
    return ((x + m - 1) // m) * m


def _epilogue(dist, like):
    # c = b - like*(tao - dist);  g(c) = c if c > 10 else softplus(beta*c)/beta
    c = B - like * (TAO - dist)
    z = BETA * c
    # numerically-safe softplus: max(z,0) + log1p(exp(-|z|)) -- no f32 overflow
    soft = (jnp.maximum(z, 0.0) + jnp.log1p(jnp.exp(-jnp.abs(z)))) / BETA
    return jnp.where(c > 10.0, c, soft)


def _pairwise_loss_kernel(f0_ref, f1_ref, like_ref, out_ref):
    # f0_ref/f1_ref: (tile_n, D) full feature width; like_ref/out_ref: (tile_n, 1)
    f0 = f0_ref[...].astype(jnp.float32)
    f1 = f1_ref[...].astype(jnp.float32)
    diff = f0 - f1 + EPS
    dist = jnp.sqrt(jnp.sum(diff * diff, axis=-1, keepdims=True))   # (tile_n, 1)
    out_ref[...] = _epilogue(dist, like_ref[...]).astype(out_ref.dtype)


def _pairwise_loss_kernel_dsplit(f0_ref, f1_ref, like_ref, out_ref, acc_ref,
                                 *, d_total, tile_d, ragged_d):
    # Grid = (row tiles [parallel], D tiles [arbitrary, last]); acc_ref holds the
    # per-row running sum of squares across the D axis.
    k = pl.program_id(1)

    @pl.when(k == 0)
    def _():
        acc_ref[...] = jnp.zeros_like(acc_ref)

    f0 = f0_ref[...].astype(jnp.float32)
    f1 = f1_ref[...].astype(jnp.float32)
    diff = f0 - f1 + EPS
    if ragged_d:
        # last D tile extends past D: mask out-of-range lanes so their garbage
        # does not leak into the accumulator
        lane = jax.lax.broadcasted_iota(jnp.int32, diff.shape, 1)
        diff = jnp.where(k * tile_d + lane < d_total, diff, 0.0)
    acc_ref[...] += jnp.sum(diff * diff, axis=-1, keepdims=True)

    @pl.when(k == pl.num_programs(1) - 1)
    def _():
        dist = jnp.sqrt(acc_ref[...])
        out_ref[...] = _epilogue(dist, like_ref[...]).astype(out_ref.dtype)


def pairwise_loss_ref(feature0, feature1, label0, label1):
    # pure-JAX reference (also the fused small-problem fast path)
    f0 = jnp.asarray(feature0).astype(jnp.float32)
    f1 = jnp.asarray(feature1).astype(jnp.float32)
    diff = f0 - f1 + EPS
    dist = jnp.sqrt(jnp.sum(diff * diff, axis=-1))
    l0 = jnp.asarray(label0).reshape(-1)
    l1 = jnp.asarray(label1).reshape(-1)
    like = jnp.where(l0 == l1, 1.0, -1.0).astype(jnp.float32)
    like = jnp.broadcast_to(like, dist.shape)
    c = B - like * (TAO - dist)
    z = BETA * c
    soft = (jnp.maximum(z, 0.0) + jnp.log1p(jnp.exp(-jnp.abs(z)))) / BETA
    return jnp.where(c > 10.0, c, soft)


def _choose_tiling(N, D, itemsize, tile_n, tile_d):
    # f32 -> 8-row alignment, bf16 -> 16, int8/fp8 -> 32 (sublane packing)
    row_align = 8 * max(1, 4 // int(itemsize))
    split = (tile_d is not None) or (D * itemsize * row_align > _TARGET_TILE_BYTES)
    if split:
        if tile_d is None:
            rows = 8 * row_align
            tile_d = (_TARGET_TILE_BYTES // (rows * itemsize)) // 128 * 128
        tile_d = max(128, min(_round_up(int(tile_d), 128), _round_up(D, 128)))
        lane_bytes = tile_d * itemsize
    else:
        tile_d = None
        lane_bytes = _round_up(D, 128) * itemsize      # VMEM lane padding
    if tile_n is None:
        tile_n = _TARGET_TILE_BYTES // max(1, lane_bytes)
        tile_n = min(_MAX_TILE_N, max(row_align, tile_n // row_align * row_align))
    tile_n = max(row_align, _round_up(int(tile_n), row_align))
    tile_n = min(tile_n, _round_up(N, row_align))
    return tile_n, tile_d, split


def _vmem_limit_bytes(tile_n, D, tile_d, itemsize, split):
    lanes = _round_up(tile_d if split else D, 128)
    feat_block = tile_n * lanes * itemsize             # one feature tile in VMEM
    col_block = tile_n * 128 * 4                       # (tile_n,1) f32, lane-padded
    working = 2 * 2 * feat_block + 2 * 2 * col_block   # double-buffered in/out
    if split:
        working += col_block                           # accumulator scratch
    # 1.5x headroom + 2 MiB slack; >= v5e's 16 MiB default, <= 48 MiB (< v7x's 64)
    return int(min(max(working + working // 2 + (2 << 20), 32 << 20), 48 << 20))


def pairwise_loss(feature0, feature1, label0, label1, *, tile_n=None, tile_d=None):
    """feature0, feature1: (N, D) float32/bfloat16; label0, label1: (N,) or scalar."""
    feature0 = jnp.asarray(feature0)
    feature1 = jnp.asarray(feature1)
    N, D = feature0.shape

    # Tiny problems: per-call + per-grid-step overhead dwarfs the work; let XLA
    # fuse the elementwise/reduce instead.
    if tile_n is None and tile_d is None and N * D < _MIN_PALLAS_ELEMS:
        return pairwise_loss_ref(feature0, feature1, label0, label1)

    itemsize = int(feature0.dtype.itemsize)
    tile_n, tile_d, split = _choose_tiling(N, D, itemsize, tile_n, tile_d)
    vmem_limit = _vmem_limit_bytes(tile_n, D, tile_d, itemsize, split)

    # like = +1 / -1 per row; tiny (N,1) f32 side input (no feature padding!)
    l0 = jnp.asarray(label0).reshape(-1)
    l1 = jnp.asarray(label1).reshape(-1)
    like = jnp.where(l0 == l1, 1.0, -1.0).astype(jnp.float32)
    like = jnp.broadcast_to(like, (N,)).reshape(N, 1)

    num_row = pl.cdiv(N, tile_n)
    cost = pl.CostEstimate(
        flops=int(4 * N * D),
        transcendentals=int(4 * N),
        bytes_accessed=int(2 * N * D * itemsize + 8 * N),
    )

    if not split:
        kernel = _pairwise_loss_kernel
        grid = (num_row,)
        semantics = ("parallel",)
        in_specs = [
            pl.BlockSpec((tile_n, D), lambda i: (i, 0)),
            pl.BlockSpec((tile_n, D), lambda i: (i, 0)),
            pl.BlockSpec((tile_n, 1), lambda i: (i, 0)),
        ]
        out_spec = pl.BlockSpec((tile_n, 1), lambda i: (i, 0))
        scratch = []
    else:
        num_d = pl.cdiv(D, tile_d)
        kernel = functools.partial(
            _pairwise_loss_kernel_dsplit,
            d_total=D, tile_d=tile_d, ragged_d=(D % tile_d != 0))
        grid = (num_row, num_d)
        semantics = ("parallel", "arbitrary")
        in_specs = [
            pl.BlockSpec((tile_n, tile_d), lambda i, k: (i, k)),
            pl.BlockSpec((tile_n, tile_d), lambda i, k: (i, k)),
            pl.BlockSpec((tile_n, 1), lambda i, k: (i, 0)),
        ]
        out_spec = pl.BlockSpec((tile_n, 1), lambda i, k: (i, 0))
        scratch = [pltpu.VMEM((tile_n, 1), jnp.float32)]

    out = pl.pallas_call(
        kernel,
        out_shape=jax.ShapeDtypeStruct((N, 1), jnp.float32),
        grid=grid,
        in_specs=in_specs,
        out_specs=out_spec,
        scratch_shapes=scratch,
        compiler_params=pltpu.CompilerParams(
            dimension_semantics=semantics,
            vmem_limit_bytes=vmem_limit,
        ),
        cost_estimate=cost,
    )(feature0, feature1, like)

    return out[:, 0]   # (N,)


if __name__ == "__main__":
    key = jax.random.PRNGKey(0)
    k0, k1, k2, k3 = jax.random.split(key, 4)

    # Ragged shapes: N not a multiple of the tile, D not a multiple of 128, to
    # exercise the un-padded full-D blocks, cdiv row grid and boundary masking.
    N, D = 500, 200
    feature0 = jax.random.normal(k0, (N, D), dtype=jnp.float32)
    feature1 = jax.random.normal(k1, (N, D), dtype=jnp.float32)
    label0 = jax.random.randint(k2, (N,), 0, 3, dtype=jnp.int32)
    label1 = jax.random.randint(k3, (N,), 0, 3, dtype=jnp.int32)

    ref = pairwise_loss_ref(feature0, feature1, label0, label1)

    # 1) auto-tiled production path (single full-D block per row tile)
    out = jax.block_until_ready(pairwise_loss(feature0, feature1, label0, label1))
    assert out.shape == (N,)
    assert jnp.allclose(out, ref, atol=1e-4, rtol=1e-5)

    # 2) explicit small row tile -> multi-step pipelined grid with a ragged tail
    out2 = jax.block_until_ready(
        pairwise_loss(feature0, feature1, label0, label1, tile_n=128))
    assert jnp.allclose(out2, ref, atol=1e-4, rtol=1e-5)

    # 3) forced D-split accumulator path (ragged last D tile exercises the mask)
    out3 = jax.block_until_ready(
        pairwise_loss(feature0, feature1, label0, label1, tile_n=64, tile_d=128))
    assert jnp.allclose(out3, ref, atol=1e-4, rtol=1e-5)

    # 4) bf16 features (kernel upcasts and accumulates in f32; 16-row alignment)
    f0b = feature0.astype(jnp.bfloat16)
    f1b = feature1.astype(jnp.bfloat16)
    out_b = jax.block_until_ready(pairwise_loss(f0b, f1b, label0, label1))
    ref_b = pairwise_loss_ref(f0b.astype(jnp.float32),
                              f1b.astype(jnp.float32), label0, label1)
    assert jnp.allclose(out_b, ref_b, atol=1e-3, rtol=1e-3)

    # 5) tiny problem -> fused pure-JAX fallback (includes the scalar-label case)
    out_t = pairwise_loss(feature0[:4, :32], feature1[:4, :32],
                          label0[:4], label1[:4])
    ref_t = pairwise_loss_ref(feature0[:4, :32], feature1[:4, :32],
                              label0[:4], label1[:4])
    assert jnp.allclose(jax.block_until_ready(out_t), ref_t,
                        atol=1e-5, rtol=1e-5)

    print("KERNEL_OK")
</pallas_src>

<mosaic_0001>
module attributes {stable_mosaic.version = 11 : i64} {
  func.func @_pairwise_loss_kernel(%arg0: i32, %arg1: memref<504x200xf32, #tpu.memory_space<vmem>>, %arg2: memref<504x200xf32, #tpu.memory_space<vmem>>, %arg3: memref<504x1xf32, #tpu.memory_space<vmem>>, %arg4: memref<504x1xf32, #tpu.memory_space<vmem>>) attributes {dimension_semantics = [#tpu.dimension_semantics<parallel>], iteration_bounds = array<i64: 1>, scalar_prefetch = 0 : i64, scratch_operands = 0 : i64, tpu.core_type = #tpu.core_type<tc>, window_params = [{transform_indices = @transform_0, window_bounds = array<i64: 504, 200>}, {transform_indices = @transform_1, window_bounds = array<i64: 504, 200>}, {transform_indices = @transform_2, window_bounds = array<i64: 504, 1>}, {transform_indices = @transform_3, window_bounds = array<i64: 504, 1>}]} {
    %c0 = arith.constant 0 : index
    %c0_0 = arith.constant 0 : index
    %0 = vector.load %arg1[%c0, %c0_0] : memref<504x200xf32, #tpu.memory_space<vmem>>, vector<504x200xf32>
    %c0_1 = arith.constant 0 : index
    %c0_2 = arith.constant 0 : index
    %1 = vector.load %arg2[%c0_1, %c0_2] : memref<504x200xf32, #tpu.memory_space<vmem>>, vector<504x200xf32>
    %2 = arith.subf %0, %1 : vector<504x200xf32>
    %cst = arith.constant 9.99999997E-7 : f32
    %3 = vector.broadcast %cst : f32 to vector<504x200xf32>
    %4 = arith.addf %2, %3 : vector<504x200xf32>
    %5 = arith.mulf %4, %4 : vector<504x200xf32>
    %cst_3 = arith.constant dense<0.000000e+00> : vector<504xf32>
    %6 = vector.multi_reduction <add>, %5, %cst_3 [1] : vector<504x200xf32> to vector<504xf32>
    %7 = vector.shape_cast %6 : vector<504xf32> to vector<504x1xf32>
    %8 = math.sqrt %7 : vector<504x1xf32>
    %c0_4 = arith.constant 0 : index
    %c0_5 = arith.constant 0 : index
    %9 = vector.load %arg3[%c0_4, %c0_5] : memref<504x1xf32, #tpu.memory_space<vmem>>, vector<504x1xf32>
    %cst_6 = arith.constant 1.000000e+01 : f32
    %10 = vector.broadcast %cst_6 : f32 to vector<504x1xf32>
    %11 = arith.subf %10, %8 : vector<504x1xf32>
    %12 = arith.mulf %9, %11 : vector<504x1xf32>
    %cst_7 = arith.constant 1.000000e+00 : f32
    %13 = vector.broadcast %cst_7 : f32 to vector<504x1xf32>
    %14 = arith.subf %13, %12 : vector<504x1xf32>
    %cst_8 = arith.constant 1.000000e+00 : f32
    %15 = vector.broadcast %cst_8 : f32 to vector<504x1xf32>
    %16 = arith.mulf %15, %14 : vector<504x1xf32>
    %cst_9 = arith.constant 0.000000e+00 : f32
    %17 = vector.broadcast %cst_9 : f32 to vector<504x1xf32>
    %18 = arith.maximumf %16, %17 : vector<504x1xf32>
    %19 = math.absf %16 : vector<504x1xf32>
    %cst_10 = arith.constant 0.000000e+00 : f32
    %20 = vector.broadcast %cst_10 : f32 to vector<504x1xf32>
    %21 = arith.subf %20, %19 : vector<504x1xf32>
    %22 = math.exp %21 : vector<504x1xf32>
    %23 = math.log1p %22 : vector<504x1xf32>
    %24 = arith.addf %18, %23 : vector<504x1xf32>
    %cst_11 = arith.constant 1.000000e+00 : f32
    %25 = vector.broadcast %cst_11 : f32 to vector<504x1xf32>
    %26 = arith.divf %24, %25 : vector<504x1xf32>
    %cst_12 = arith.constant 1.000000e+01 : f32
    %27 = vector.broadcast %cst_12 : f32 to vector<504x1xf32>
    %28 = arith.cmpf ogt, %14, %27 : vector<504x1xf32>
    %29 = arith.select %28, %14, %26 : vector<504x1xi1>, vector<504x1xf32>
    %c0_13 = arith.constant 0 : index
    %c0_14 = arith.constant 0 : index
    %30 = vector.load %arg4[%c0_13, %c0_14] : memref<504x1xf32, #tpu.memory_space<vmem>>, vector<504x1xf32>
    tpu.vector_store %arg4[%c0_13, %c0_14], %29 {strides = array<i32>} : memref<504x1xf32, #tpu.memory_space<vmem>>, vector<504x1xf32>,
    return
  }
  func.func @transform_0(%arg0: i32) -> (i32, i32) {
    %c0_i32 = arith.constant 0 : i32
    %c0_i32_0 = arith.constant 0 : i32
    return %arg0, %c0_i32 : i32, i32
  }
  func.func @transform_1(%arg0: i32) -> (i32, i32) {
    %c0_i32 = arith.constant 0 : i32
    %c0_i32_0 = arith.constant 0 : i32
    return %arg0, %c0_i32 : i32, i32
  }
  func.func @transform_2(%arg0: i32) -> (i32, i32) {
    %c0_i32 = arith.constant 0 : i32
    %c0_i32_0 = arith.constant 0 : i32
    return %arg0, %c0_i32 : i32, i32
  }
  func.func @transform_3(%arg0: i32) -> (i32, i32) {
    %c0_i32 = arith.constant 0 : i32
    %c0_i32_0 = arith.constant 0 : i32
    return %arg0, %c0_i32 : i32, i32
  }
}

</mosaic_0001>

<bundles_post_ra>
// kernel: tpu_custom_call.1
= control target key start
LH: loop header
LB: loop body
LE: loop exit
PB: predicated region body
PF: predicated region fallthrough
CT: control target
= control target key end

     0   :  { %vm644_vm0 = vcmask 588800   ;;  %vm2976_vm15 = vcmask 7168   ;;  %s6215_s0 = inlined_call_operand.vmem [shape: f32[500,200], index: 0, kind: input, shape index: {}]   ;;  %s6216_s1 = inlined_call_operand.vmem [shape: f32[500,200], index: 1, kind: input, shape index: {}]   ;;  %s6217_s2 = inlined_call_operand.vmem [shape: f32[500,1], index: 2, kind: input, shape index: {}]   ;;  %s6218_s3 = inlined_call_operand.vmem [shape: f32[500,1], index: 3, kind: output, shape index: {}]  }
   0x1   :  { %v22_v0 = vld [vmem:[%s6215_s0 + $0x40] sm:$0xff]  ;;  %v23_v1 = vld [vmem:[%s6215_s0 + $0x48] sm:$0xff]  ;;  %v24_v20 = vld [vmem:[%s6215_s0 + $0x50] sm:$0xff] }
   0x2   :  { %v148_v2 = vld [vmem:[%s6216_s1 + $0x40] sm:$0xff]  ;;  %v149_v3 = vld [vmem:[%s6216_s1 + $0x48] sm:$0xff]  ;;  %v25_v21 = vld [vmem:[%s6215_s0 + $0x58] sm:$0xff] }
   0x3   :  { %v274_v4 = vsub.f32 %v22_v0, %v148_v2  ;;  %v18_v5 = vld [vmem:[%s6215_s0 + $0x20] sm:$0xff]  ;;  %v19_v6 = vld [vmem:[%s6215_s0 + $0x28] sm:$0xff]  ;;  %v275_v7 = vsub.f32 %v23_v1, %v149_v3  ;;  %v150_v22 = vld [vmem:[%s6216_s1 + $0x50] sm:$0xff] }
   0x4   :  { %v144_v8 = vld [vmem:[%s6216_s1 + $0x20] sm:$0xff]  ;;  %v145_v9 = vld [vmem:[%s6216_s1 + $0x28] sm:$0xff]  ;;  %v151_v26 = vld [vmem:[%s6216_s1 + $0x58] sm:$0xff]  ;;  %v276_v27 = vsub.f32 %v24_v20, %v150_v22 }
   0x5   :  { %v14_v10 = vld [vmem:[%s6215_s0] sm:$0xff]  ;;  %v400_v11 = vadd.f32 1e-06, %v274_v4  ;;  %v270_v12 = vsub.f32 %v18_v5, %v144_v8  ;;  %v271_v13 = vsub.f32 %v19_v6, %v145_v9  ;;  %v15_v14 = vld [vmem:[%s6215_s0 + $0x8] sm:$0xff]  ;;  %v401_v17 = vadd.f32 1e-06, %v275_v7 }
   0x6   :  { %v140_v15 = vld [vmem:[%s6216_s1] sm:$0xff]  ;;  %v141_v16 = vld [vmem:[%s6216_s1 + $0x8] sm:$0xff]  ;;  %v20_v28 = vld [vmem:[%s6215_s0 + $0x30] sm:$0xff]  ;;  %v277_v32 = vsub.f32 %v25_v21, %v151_v26  ;;  %v402_v37 = vadd.f32 1e-06, %v276_v27 }
   0x7   :  { %v266_v18 = vsub.f32 %v14_v10, %v140_v15  ;;  %v267_v19 = vsub.f32 %v15_v14, %v141_v16  ;;  %v526_v23 = vmul.f32 %v400_v11, %v400_v11  ;;  %v396_v24 = vadd.f32 1e-06, %v270_v12  ;;  %v21_v33 = vld [vmem:[%s6215_s0 + $0x38] sm:$0xff]  ;;  %v146_v34 = vld [vmem:[%s6216_s1 + $0x30] sm:$0xff]  ;;  %v30_v48 = vld [vmem:[%s6215_s0 + $0x80] sm:$0xff] }
   0x8   :  { %v397_v25 = vadd.f32 1e-06, %v271_v13  ;;  %v527_v29 = vmul.f32 %v401_v17, %v401_v17  ;;  %v147_v38 = vld [vmem:[%s6216_s1 + $0x38] sm:$0xff]  ;;  %v272_v39 = vsub.f32 %v20_v28, %v146_v34  ;;  %v16_v40 = vld [vmem:[%s6215_s0 + $0x10] sm:$0xff]  ;;  %v403_v45 = vadd.f32 1e-06, %v277_v32 }
   0x9   :  { %v392_v30 = vadd.f32 1e-06, %v266_v18  ;;  %v393_v31 = vadd.f32 1e-06, %v267_v19  ;;  %v522_v35 = vmul.f32 %v396_v24, %v396_v24  ;;  %v17_v41 = vld [vmem:[%s6215_s0 + $0x18] sm:$0xff]  ;;  %v142_v46 = vld [vmem:[%s6216_s1 + $0x10] sm:$0xff]  ;;  %v528_v51 = vmul.f32 %v402_v37, %v402_v37 }
   0xa   :  { %v523_v36 = vmul.f32 %v397_v25, %v397_v25  ;;  %v661_v42 = vsel %vm644_vm0, %v527_v29, 0.0  ;;  %v143_v47 = vld [vmem:[%s6216_s1 + $0x18] sm:$0xff]  ;;  %v273_v52 = vsub.f32 %v21_v33, %v147_v38  ;;  %v31_v53 = vld [vmem:[%s6215_s0 + $0x88] sm:$0xff]  ;;  %v156_v54 = vld [vmem:[%s6216_s1 + $0x80] sm:$0xff]  ;;  %v529_v58 = vmul.f32 %v403_v45, %v403_v45 }
   0xb   :  { %v518_v43 = vmul.f32 %v392_v30, %v392_v30  ;;  %v519_v44 = vmul.f32 %v393_v31, %v393_v31  ;;  %v662_v49 = vadd.f32 %v661_v42, %v526_v23  ;;  %v157_v55 = vld [vmem:[%s6216_s1 + $0x88] sm:$0xff]  ;;  %v398_v59 = vadd.f32 1e-06, %v272_v39  ;;  %v28_v60 = vld [vmem:[%s6215_s0 + $0x70] sm:$0xff]  ;;  %v29_v1 = vld [vmem:[%s6215_s0 + $0x78] sm:$0xff] }
   0xc   :  { %v653_v50 = vsel %vm644_vm0, %v523_v36, 0.0  ;;  %v399_v62 = vadd.f32 1e-06, %v273_v52  ;;  %v268_v63 = vsub.f32 %v16_v40, %v142_v46  ;;  %v269_v0 = vsub.f32 %v17_v41, %v143_v47  ;;  %v154_v2 = vld [vmem:[%s6216_s1 + $0x70] sm:$0xff]  ;;  %v155_v3 = vld [vmem:[%s6216_s1 + $0x78] sm:$0xff]  ;;  %v26_v8 = vld [vmem:[%s6215_s0 + $0x60] sm:$0xff] }
   0xd   :  { %v654_v56 = vadd.f32 %v653_v50, %v522_v35  ;;  %v645_v57 = vsel %vm644_vm0, %v519_v44, 0.0  ;;  %663 = vadd.xlane.f32.xlu2 %v662_v49  ;;  %v665_v4 = vsel %vm644_vm0, %v529_v58, 0.0  ;;  %v524_v5 = vmul.f32 %v398_v59, %v398_v59  ;;  %v152_v9 = vld [vmem:[%s6216_s1 + $0x60] sm:$0xff]  ;;  %v27_v14 = vld [vmem:[%s6215_s0 + $0x68] sm:$0xff]  ;;  %v36_v20 = vld [vmem:[%s6215_s0 + $0xb0] sm:$0xff] }
   0xe   :  { %v646_v61 = vadd.f32 %v645_v57, %v518_v43  ;;  %v282_v6 = vsub.f32 %v30_v48, %v156_v54  ;;  %v283_v7 = vsub.f32 %v31_v53, %v157_v55  ;;  %v666_v10 = vadd.f32 %v665_v4, %v528_v51  ;;  %v153_v19 = vld [vmem:[%s6216_s1 + $0x68] sm:$0xff]  ;;  %v37_v25 = vld [vmem:[%s6215_s0 + $0xb8] sm:$0xff]  ;;  %v162_v26 = vld [vmem:[%s6216_s1 + $0xb0] sm:$0xff] }
   0xf   :  { %655 = vadd.xlane.f32.xlu1 %v654_v56  ;;  %v525_v11 = vmul.f32 %v399_v62, %v399_v62  ;;  %v394_v12 = vadd.f32 1e-06, %v268_v63  ;;  %v395_v13 = vadd.f32 1e-06, %v269_v0  ;;  %v280_v17 = vsub.f32 %v28_v60, %v154_v2  ;;  %v163_v27 = vld [vmem:[%s6216_s1 + $0xb8] sm:$0xff]  ;;  %v34_v28 = vld [vmem:[%s6215_s0 + $0xa0] sm:$0xff] }
  0x10   :  { %647 = vadd.xlane.f32.xlu0 %v646_v61  ;;  %v408_v15 = vadd.f32 1e-06, %v282_v6  ;;  %v409_v16 = vadd.f32 1e-06, %v283_v7  ;;  %v281_v18 = vsub.f32 %v29_v1, %v155_v3  ;;  %v278_v24 = vsub.f32 %v26_v8, %v152_v9  ;;  %v35_v32 = vld [vmem:[%s6215_s0 + $0xa8] sm:$0xff]  ;;  %v160_v33 = vld [vmem:[%s6216_s1 + $0xa0] sm:$0xff] }
  0x11   :  { %v657_v21 = vsel %vm644_vm0, %v525_v11, 0.0  ;;  %v520_v22 = vmul.f32 %v394_v12, %v394_v12  ;;  %v521_v23 = vmul.f32 %v395_v13, %v395_v13  ;;  %v406_v31 = vadd.f32 1e-06, %v280_v17  ;;  %v161_v34 = vld [vmem:[%s6216_s1 + $0xa8] sm:$0xff]  ;;  %v32_v39 = vld [vmem:[%s6215_s0 + $0x90] sm:$0xff]  ;;  %v33_v43 = vld [vmem:[%s6215_s0 + $0x98] sm:$0xff] }
  0x12   :  { %v658_v29 = vadd.f32 %v657_v21, %v524_v5  ;;  %v535_v30 = vmul.f32 %v409_v16, %v409_v16  ;;  %v407_v36 = vadd.f32 1e-06, %v281_v18  ;;  %v279_v37 = vsub.f32 %v27_v14, %v153_v19  ;;  %v158_v44 = vld [vmem:[%s6216_s1 + $0x90] sm:$0xff]  ;;  %v159_v45 = vld [vmem:[%s6216_s1 + $0x98] sm:$0xff]  ;;  %v43_v58 = vld [vmem:[%s6215_s0 + $0xe8] sm:$0xff] }
  0x13   :  { %v649_v35 = vsel %vm644_vm0, %v521_v23, 0.0  ;;  %v404_v38 = vadd.f32 1e-06, %v278_v24  ;;  %v534_v41 = vmul.f32 %v408_v15, %v408_v15  ;;  %v288_v42 = vsub.f32 %v36_v20, %v162_v26  ;;  %v169_v61 = vld [vmem:[%s6216_s1 + $0xe8] sm:$0xff]  ;;  %v41_v62 = vld [vmem:[%s6215_s0 + $0xd8] sm:$0xff]  ;;  %v42_v8 = vld [vmem:[%s6215_s0 + $0xe0] sm:$0xff] }
  0x14   :  { %v650_v40 = vadd.f32 %v649_v35, %v520_v22  ;;  %v677_v46 = vsel %vm644_vm0, %v535_v30, 0.0  ;;  %v532_v47 = vmul.f32 %v406_v31, %v406_v31  ;;  %v533_v48 = vmul.f32 %v407_v36, %v407_v36  ;;  %v167_v3 = vld [vmem:[%s6216_s1 + $0xd8] sm:$0xff]  ;;  %v168_v9 = vld [vmem:[%s6216_s1 + $0xe0] sm:$0xff]  ;;  %v40_v13 = vld [vmem:[%s6215_s0 + $0xd0] sm:$0xff] }
  0x15   :  { %667 = vadd.xlane.f32.xlu2 %v666_v10  ;;  %v405_v49 = vadd.f32 1e-06, %v279_v37  ;;  %v530_v50 = vmul.f32 %v404_v38, %v404_v38  ;;  %v289_v51 = vsub.f32 %v37_v25, %v163_v27  ;;  %v286_v52 = vsub.f32 %v34_v28, %v160_v33  ;;  %v166_v14 = vld [vmem:[%s6216_s1 + $0xd0] sm:$0xff]  ;;  %v38_v15 = vld [vmem:[%s6215_s0 + $0xc0] sm:$0xff]  ;;  %v39_v18 = vld [vmem:[%s6215_s0 + $0xc8] sm:$0xff] }
  0x16   :  { %v287_v53 = vsub.f32 %v35_v32, %v161_v34  ;;  %v673_v54 = vsel %vm644_vm0, %v533_v48, 0.0  ;;  %v284_v56 = vsub.f32 %v32_v39, %v158_v44  ;;  %v285_v57 = vsub.f32 %v33_v43, %v159_v45  ;;  %v164_v19 = vld [vmem:[%s6216_s1 + $0xc0] sm:$0xff]  ;;  %v165_v20 = vld [vmem:[%s6216_s1 + $0xc8] sm:$0xff]  ;;  %v49_v32 = vld [vmem:[%s6215_s0 + $0x118] sm:$0xff] }
  0x17   :  { %659 = vadd.xlane.f32.xlu1 %v658_v29  ;;  %v531_v55 = vmul.f32 %v405_v49, %v405_v49  ;;  %v414_v59 = vadd.f32 1e-06, %v288_v42  ;;  %v415_v60 = vadd.f32 1e-06, %v289_v51  ;;  %v678_v63 = vadd.f32 %v677_v46, %v534_v41  ;;  %v175_v33 = vld [vmem:[%s6216_s1 + $0x118] sm:$0xff]  ;;  %v47_v35 = vld [vmem:[%s6215_s0 + $0x108] sm:$0xff] }
  0x18   :  { %651 = vadd.xlane.f32.xlu0 %v650_v40  ;;  %v412_v1 = vadd.f32 1e-06, %v286_v52  ;;  %v413_v2 = vadd.f32 1e-06, %v287_v53  ;;  %v674_v4 = vadd.f32 %v673_v54, %v532_v47  ;;  %v410_v6 = vadd.f32 1e-06, %v284_v56 }
  0x19   :  { %v669_v0 = vsel %vm644_vm0, %v531_v55, 0.0  ;;  %v541_v5 = vmul.f32 %v415_v60, %v415_v60  ;;  %v411_v7 = vadd.f32 1e-06, %v285_v57  ;;  %v295_v12 = vsub.f32 %v43_v58, %v169_v61  ;;  %v173_v36 = vld [vmem:[%s6216_s1 + $0x108] sm:$0xff]  ;;  %v48_v40 = vld [vmem:[%s6215_s0 + $0x110] sm:$0xff]  ;;  %v45_v46 = vld [vmem:[%s6215_s0 + $0xf8] sm:$0xff] }
  0x1a   :  { %v670_v10 = vadd.f32 %v669_v0, %v530_v50  ;;  %v539_v11 = vmul.f32 %v413_v2, %v413_v2  ;;  %v293_v17 = vsub.f32 %v41_v62, %v167_v3  ;;  %v540_v21 = vmul.f32 %v414_v59, %v414_v59  ;;  %v174_v44 = vld [vmem:[%s6216_s1 + $0x110] sm:$0xff]  ;;  %v171_v47 = vld [vmem:[%s6216_s1 + $0xf8] sm:$0xff]  ;;  %v46_v51 = vld [vmem:[%s6215_s0 + $0x100] sm:$0xff] }
  0x1b   :  { %v537_v16 = vmul.f32 %v411_v7, %v411_v7  ;;  %v538_v22 = vmul.f32 %v412_v1, %v412_v1  ;;  %v294_v23 = vsub.f32 %v42_v8, %v168_v9  ;;  %v689_v24 = vsel %vm644_vm0, %v541_v5, 0.0  ;;  %v172_v52 = vld [vmem:[%s6216_s1 + $0x100] sm:$0xff]  ;;  %v44_v55 = vld [vmem:[%s6215_s0 + $0xf0] sm:$0xff]  ;;  %v181_v5 = vld [vmem:[%s6216_s1 + $0x148] sm:$0xff] }
  0x1c   :  { %v536_v25 = vmul.f32 %v410_v6, %v410_v6  ;;  %v421_v26 = vadd.f32 1e-06, %v295_v12  ;;  %v292_v27 = vsub.f32 %v40_v13, %v166_v14  ;;  %v685_v28 = vsel %vm644_vm0, %v539_v11, 0.0  ;;  %v170_v56 = vld [vmem:[%s6216_s1 + $0xf0] sm:$0xff]  ;;  %v53_v8 = vld [vmem:[%s6215_s0 + $0x138] sm:$0xff]  ;;  %v51_v12 = vld [vmem:[%s6215_s0 + $0x128] sm:$0xff] }
  0x1d   :  { %679 = vadd.xlane.f32.xlu2 %v678_v63  ;;  %v419_v29 = vadd.f32 1e-06, %v293_v17  ;;  %v290_v30 = vsub.f32 %v38_v15, %v164_v19  ;;  %v291_v31 = vsub.f32 %v39_v18, %v165_v20  ;;  %v681_v34 = vsel %vm644_vm0, %v537_v16, 0.0  ;;  %v179_v9 = vld [vmem:[%s6216_s1 + $0x138] sm:$0xff]  ;;  %v177_v13 = vld [vmem:[%s6216_s1 + $0x128] sm:$0xff]  ;;  %v54_v17 = vld [vmem:[%s6215_s0 + $0x140] sm:$0xff] }
  0x1e   :  { %v690_v37 = vadd.f32 %v689_v24, %v540_v21  ;;  %v420_v38 = vadd.f32 1e-06, %v294_v23  ;;  %v686_v41 = vadd.f32 %v685_v28, %v538_v22  ;;  %v547_v42 = vmul.f32 %v421_v26, %v421_v26  ;;  %v180_v18 = vld [vmem:[%s6216_s1 + $0x140] sm:$0xff]  ;;  %v52_v23 = vld [vmem:[%s6215_s0 + $0x130] sm:$0xff] }
  0x1f   :  { %675 = vadd.xlane.f32.xlu1 %v674_v4  ;;  %v417_v39 = vadd.f32 1e-06, %v291_v31  ;;  %v418_v43 = vadd.f32 1e-06, %v292_v27  ;;  %v301_v45 = vsub.f32 %v49_v32, %v175_v33  ;;  %v682_v48 = vadd.f32 %v681_v34, %v536_v25  ;;  %v55_v4 = vld [vmem:[%s6215_s0 + $0x148] sm:$0xff]  ;;  %v178_v24 = vld [vmem:[%s6216_s1 + $0x130] sm:$0xff] }
  0x20   :  { %671 = vadd.xlane.f32.xlu0 %v670_v10  ;;  %v545_v49 = vmul.f32 %v419_v29, %v419_v29  ;;  %v416_v50 = vadd.f32 1e-06, %v290_v30  ;;  %v299_v53 = vsub.f32 %v47_v35, %v173_v36  ;;  %v546_v57 = vmul.f32 %v420_v38, %v420_v38  ;;  %v50_v27 = vld [vmem:[%s6215_s0 + $0x120] sm:$0xff] }
  0x21   :  { %v543_v54 = vmul.f32 %v417_v39, %v417_v39  ;;  %v300_v58 = vsub.f32 %v48_v40, %v174_v44  ;;  %v297_v59 = vsub.f32 %v45_v46, %v171_v47  ;;  %v701_v60 = vsel %vm644_vm0, %v547_v42, 0.0  ;;  %v176_v28 = vld [vmem:[%s6216_s1 + $0x120] sm:$0xff]  ;;  %v61_v40 = vld [vmem:[%s6215_s0 + $0x178] sm:$0xff]  ;;  %v59_v44 = vld [vmem:[%s6215_s0 + $0x168] sm:$0xff] }
  0x22   :  { %v544_v61 = vmul.f32 %v418_v43, %v418_v43  ;;  %v427_v62 = vadd.f32 1e-06, %v301_v45  ;;  %v298_v63 = vsub.f32 %v46_v51, %v172_v52  ;;  %v697_v0 = vsel %vm644_vm0, %v545_v49, 0.0  ;;  %v185_v45 = vld [vmem:[%s6216_s1 + $0x168] sm:$0xff]  ;;  %v183_v49 = vld [vmem:[%s6216_s1 + $0x158] sm:$0xff] }
  0x23   :  { %v542_v1 = vmul.f32 %v416_v50, %v416_v50  ;;  %v425_v2 = vadd.f32 1e-06, %v299_v53  ;;  %v296_v3 = vsub.f32 %v44_v55, %v170_v56  ;;  %v693_v6 = vsel %vm644_vm0, %v543_v54, 0.0  ;;  %v60_v53 = vld [vmem:[%s6215_s0 + $0x170] sm:$0xff] }
  0x24   :  { %v423_v7 = vadd.f32 1e-06, %v297_v59  ;;  %v702_v10 = vadd.f32 %v701_v60, %v546_v57  ;;  %v426_v11 = vadd.f32 1e-06, %v300_v58  ;;  %v698_v14 = vadd.f32 %v697_v0, %v544_v61  ;;  %v186_v54 = vld [vmem:[%s6216_s1 + $0x170] sm:$0xff]  ;;  %v58_v59 = vld [vmem:[%s6215_s0 + $0x160] sm:$0xff] }
  0x25   :  { %691 = vadd.xlane.f32.xlu2 %v690_v37  ;;  %v553_v15 = vmul.f32 %v427_v62, %v427_v62  ;;  %v424_v16 = vadd.f32 1e-06, %v298_v63  ;;  %v307_v19 = vsub.f32 %v55_v4, %v181_v5  ;;  %v694_v20 = vadd.f32 %v693_v6, %v542_v1  ;;  %v184_v60 = vld [vmem:[%s6216_s1 + $0x160] sm:$0xff]  ;;  %v56_v63 = vld [vmem:[%s6215_s0 + $0x150] sm:$0xff] }
  0x26   :  { %v551_v21 = vmul.f32 %v425_v2, %v425_v2  ;;  %v422_v22 = vadd.f32 1e-06, %v296_v3  ;;  %v305_v25 = vsub.f32 %v53_v8, %v179_v9  ;;  %v549_v26 = vmul.f32 %v423_v7, %v423_v7  ;;  %v182_v0 = vld [vmem:[%s6216_s1 + $0x150] sm:$0xff] }
  0x27   :  { %687 = vadd.xlane.f32.xlu1 %v686_v41  ;;  %v303_v29 = vsub.f32 %v51_v12, %v177_v13  ;;  %v552_v30 = vmul.f32 %v426_v11, %v426_v11  ;;  %v306_v31 = vsub.f32 %v54_v17, %v180_v18  ;;  %v713_v32 = vsel %vm644_vm0, %v553_v15, 0.0  ;;  %v187_v41 = vld [vmem:[%s6216_s1 + $0x178] sm:$0xff]  ;;  %v67_v12 = vld [vmem:[%s6215_s0 + $0x1a8] sm:$0xff] }
  0x28   :  { %683 = vadd.xlane.f32.xlu0 %v682_v48  ;;  %v550_v33 = vmul.f32 %v424_v16, %v424_v16  ;;  %v433_v34 = vadd.f32 1e-06, %v307_v19  ;;  %v304_v35 = vsub.f32 %v52_v23, %v178_v24  ;;  %v709_v36 = vsel %vm644_vm0, %v551_v21, 0.0  ;;  %v57_v48 = vld [vmem:[%s6215_s0 + $0x158] sm:$0xff]  ;;  %v193_v13 = vld [vmem:[%s6216_s1 + $0x1a8] sm:$0xff] }
  0x29   :  { %v548_v37 = vmul.f32 %v422_v22, %v422_v22  ;;  %v431_v38 = vadd.f32 1e-06, %v305_v25  ;;  %v302_v39 = vsub.f32 %v50_v27, %v176_v28  ;;  %v705_v42 = vsel %vm644_vm0, %v549_v26, 0.0  ;;  %v65_v16 = vld [vmem:[%s6215_s0 + $0x198] sm:$0xff]  ;;  %v189_v21 = vld [vmem:[%s6216_s1 + $0x188] sm:$0xff]  ;;  %v66_v25 = vld [vmem:[%s6215_s0 + $0x1a0] sm:$0xff] }
  0x2a   :  { %v429_v43 = vadd.f32 1e-06, %v303_v29  ;;  %v714_v46 = vadd.f32 %v713_v32, %v552_v30  ;;  %v432_v47 = vadd.f32 1e-06, %v306_v31  ;;  %v710_v50 = vadd.f32 %v709_v36, %v550_v33  ;;  %v191_v17 = vld [vmem:[%s6216_s1 + $0x198] sm:$0xff]  ;;  %v192_v26 = vld [vmem:[%s6216_s1 + $0x1a0] sm:$0xff] }
  0x2b   :  { %v559_v51 = vmul.f32 %v433_v34, %v433_v34  ;;  %v430_v52 = vadd.f32 1e-06, %v304_v35  ;;  %v313_v55 = vsub.f32 %v61_v40, %v187_v41  ;;  %v706_v56 = vadd.f32 %v705_v42, %v548_v37  ;;  %v64_v31 = vld [vmem:[%s6215_s0 + $0x190] sm:$0xff]  ;;  %v62_v35 = vld [vmem:[%s6215_s0 + $0x180] sm:$0xff] }
  0x2c   :  { %v557_v57 = vmul.f32 %v431_v38, %v431_v38  ;;  %v428_v58 = vadd.f32 1e-06, %v302_v39  ;;  %v311_v61 = vsub.f32 %v59_v44, %v185_v45  ;;  %v555_v62 = vmul.f32 %v429_v43, %v429_v43  ;;  %v190_v32 = vld [vmem:[%s6216_s1 + $0x190] sm:$0xff]  ;;  %v188_v36 = vld [vmem:[%s6216_s1 + $0x180] sm:$0xff] }
  0x2d   :  { %703 = vadd.xlane.f32.xlu2 %v702_v10  ;;  %v309_v1 = vsub.f32 %v57_v48, %v183_v49  ;;  %v558_v2 = vmul.f32 %v432_v47, %v432_v47  ;;  %v312_v3 = vsub.f32 %v60_v53, %v186_v54  ;;  %v725_v4 = vsel %vm644_vm0, %v559_v51, 0.0  ;;  %v73_v48 = vld [vmem:[%s6215_s0 + $0x1d8] sm:$0xff]  ;;  %v197_v53 = vld [vmem:[%s6216_s1 + $0x1c8] sm:$0xff] }
  0x2e   :  { %v556_v5 = vmul.f32 %v430_v52, %v430_v52  ;;  %v439_v6 = vadd.f32 1e-06, %v313_v55  ;;  %v310_v7 = vsub.f32 %v58_v59, %v184_v60  ;;  %v721_v8 = vsel %vm644_vm0, %v557_v57, 0.0  ;;  %v199_v49 = vld [vmem:[%s6216_s1 + $0x1d8] sm:$0xff]  ;;  %v71_v52 = vld [vmem:[%s6215_s0 + $0x1c8] sm:$0xff] }
  0x2f   :  { %699 = vadd.xlane.f32.xlu1 %v698_v14  ;;  %v554_v9 = vmul.f32 %v428_v58, %v428_v58  ;;  %v437_v10 = vadd.f32 1e-06, %v311_v61  ;;  %v308_v11 = vsub.f32 %v56_v63, %v182_v0  ;;  %v717_v14 = vsel %vm644_vm0, %v555_v62, 0.0  ;;  %v195_v57 = vld [vmem:[%s6216_s1 + $0x1b8] sm:$0xff]  ;;  %v72_v61 = vld [vmem:[%s6215_s0 + $0x1d0] sm:$0xff] }
  0x30   :  { %695 = vadd.xlane.f32.xlu0 %v694_v20  ;;  %v435_v15 = vadd.f32 1e-06, %v309_v1  ;;  %v726_v18 = vadd.f32 %v725_v4, %v558_v2  ;;  %v438_v19 = vadd.f32 1e-06, %v312_v3  ;;  %v63_v20 = vld [vmem:[%s6215_s0 + $0x188] sm:$0xff]  ;;  %v722_v22 = vadd.f32 %v721_v8, %v556_v5  ;;  %v198_v62 = vld [vmem:[%s6216_s1 + $0x1d0] sm:$0xff] }
  0x31   :  { %v565_v23 = vmul.f32 %v439_v6, %v439_v6  ;;  %v436_v24 = vadd.f32 1e-06, %v310_v7  ;;  %v319_v27 = vsub.f32 %v67_v12, %v193_v13  ;;  %v718_v28 = vadd.f32 %v717_v14, %v554_v9  ;;  %v70_v3 = vld [vmem:[%s6215_s0 + $0x1c0] sm:$0xff]  ;;  %v68_v7 = vld [vmem:[%s6215_s0 + $0x1b0] sm:$0xff] }
  0x32   :  { %v563_v29 = vmul.f32 %v437_v10, %v437_v10  ;;  %v434_v30 = vadd.f32 1e-06, %v308_v11  ;;  %v317_v33 = vsub.f32 %v65_v16, %v191_v17  ;;  %v561_v34 = vmul.f32 %v435_v15, %v435_v15  ;;  %v196_v4 = vld [vmem:[%s6216_s1 + $0x1c0] sm:$0xff]  ;;  %v194_v8 = vld [vmem:[%s6216_s1 + $0x1b0] sm:$0xff] }
  0x33   :  { %v315_v37 = vsub.f32 %v63_v20, %v189_v21  ;;  %v564_v38 = vmul.f32 %v438_v19, %v438_v19  ;;  %v318_v39 = vsub.f32 %v66_v25, %v192_v26  ;;  %v737_v40 = vsel %vm644_vm0, %v565_v23, 0.0  ;;  %v79_v20 = vld [vmem:[%s6215_s0 + $0x208] sm:$0xff]  ;;  %v203_v25 = vld [vmem:[%s6216_s1 + $0x1f8] sm:$0xff] }
  0x34   :  { %v562_v41 = vmul.f32 %v436_v24, %v436_v24  ;;  %v445_v42 = vadd.f32 1e-06, %v319_v27  ;;  %v316_v43 = vsub.f32 %v64_v31, %v190_v32  ;;  %v733_v44 = vsel %vm644_vm0, %v563_v29, 0.0  ;;  %v205_v21 = vld [vmem:[%s6216_s1 + $0x208] sm:$0xff]  ;;  %v77_v24 = vld [vmem:[%s6215_s0 + $0x1f8] sm:$0xff] }
  0x35   :  { %715 = vadd.xlane.f32.xlu2 %v714_v46  ;;  %v560_v45 = vmul.f32 %v434_v30, %v434_v30  ;;  %v443_v46 = vadd.f32 1e-06, %v317_v33  ;;  %v314_v47 = vsub.f32 %v62_v35, %v188_v36  ;;  %v441_v51 = vadd.f32 1e-06, %v315_v37  ;;  %v201_v29 = vld [vmem:[%s6216_s1 + $0x1e8] sm:$0xff]  ;;  %v78_v33 = vld [vmem:[%s6215_s0 + $0x200] sm:$0xff] }
  0x36   :  { %v738_v54 = vadd.f32 %v737_v40, %v564_v38  ;;  %v444_v55 = vadd.f32 1e-06, %v318_v39  ;;  %v734_v58 = vadd.f32 %v733_v44, %v562_v41  ;;  %v571_v59 = vmul.f32 %v445_v42, %v445_v42  ;;  %v76_v39 = vld [vmem:[%s6215_s0 + $0x1f0] sm:$0xff]  ;;  %v200_v44 = vld [vmem:[%s6216_s1 + $0x1e0] sm:$0xff] }
  0x37   :  { %711 = vadd.xlane.f32.xlu1 %v710_v50  ;;  %v729_v50 = vsel %vm644_vm0, %v561_v34, 0.0  ;;  %v442_v60 = vadd.f32 1e-06, %v316_v43  ;;  %v325_v63 = vsub.f32 %v73_v48, %v199_v49  ;;  %v569_v1 = vmul.f32 %v443_v46, %v443_v46  ;;  %v204_v34 = vld [vmem:[%s6216_s1 + $0x200] sm:$0xff]  ;;  %v202_v40 = vld [vmem:[%s6216_s1 + $0x1f0] sm:$0xff] }
  0x38   :  { %707 = vadd.xlane.f32.xlu0 %v706_v56  ;;  %v69_v56 = vld [vmem:[%s6215_s0 + $0x1b8] sm:$0xff]  ;;  %v730_v0 = vadd.f32 %v729_v50, %v560_v45  ;;  %v440_v2 = vadd.f32 1e-06, %v314_v47  ;;  %v323_v5 = vsub.f32 %v71_v52, %v197_v53  ;;  %v567_v6 = vmul.f32 %v441_v51, %v441_v51  ;;  %v74_v43 = vld [vmem:[%s6215_s0 + $0x1e0] sm:$0xff] }
  0x39   :  { %v321_v9 = vsub.f32 %v69_v56, %v195_v57  ;;  %v570_v10 = vmul.f32 %v444_v55, %v444_v55  ;;  %v324_v11 = vsub.f32 %v72_v61, %v198_v62  ;;  %v749_v12 = vsel %vm644_vm0, %v571_v59, 0.0  ;;  %v85_v56 = vld [vmem:[%s6215_s0 + $0x238] sm:$0xff]  ;;  %v209_v61 = vld [vmem:[%s6216_s1 + $0x228] sm:$0xff] }
  0x3a   :  { %v568_v13 = vmul.f32 %v442_v60, %v442_v60  ;;  %v451_v14 = vadd.f32 1e-06, %v325_v63  ;;  %v322_v15 = vsub.f32 %v70_v3, %v196_v4  ;;  %v745_v16 = vsel %vm644_vm0, %v569_v1, 0.0  ;;  %v211_v57 = vld [vmem:[%s6216_s1 + $0x238] sm:$0xff]  ;;  %v83_v60 = vld [vmem:[%s6215_s0 + $0x228] sm:$0xff] }
  0x3b   :  { %v566_v17 = vmul.f32 %v440_v2, %v440_v2  ;;  %v320_v19 = vsub.f32 %v68_v7, %v194_v8  ;;  %v447_v23 = vadd.f32 1e-06, %v321_v9  ;;  %v750_v26 = vadd.f32 %v749_v12, %v570_v10  ;;  %v207_v1 = vld [vmem:[%s6216_s1 + $0x218] sm:$0xff]  ;;  %v208_v12 = vld [vmem:[%s6216_s1 + $0x220] sm:$0xff] }
  0x3c   :  { %v450_v27 = vadd.f32 1e-06, %v324_v11  ;;  %v746_v30 = vadd.f32 %v745_v16, %v568_v13  ;;  %v577_v31 = vmul.f32 %v451_v14, %v451_v14  ;;  %v448_v32 = vadd.f32 1e-06, %v322_v15  ;;  %v82_v11 = vld [vmem:[%s6215_s0 + $0x220] sm:$0xff]  ;;  %v80_v15 = vld [vmem:[%s6215_s0 + $0x210] sm:$0xff] }
  0x3d   :  { %727 = vadd.xlane.f32.xlu2 %v726_v18  ;;  %v449_v18 = vadd.f32 1e-06, %v323_v5  ;;  %v331_v35 = vsub.f32 %v79_v20, %v205_v21  ;;  %v446_v38 = vadd.f32 1e-06, %v320_v19  ;;  %v329_v41 = vsub.f32 %v77_v24, %v203_v25  ;;  %v84_v5 = vld [vmem:[%s6215_s0 + $0x230] sm:$0xff] }
  0x3e   :  { %v573_v42 = vmul.f32 %v447_v23, %v447_v23  ;;  %v576_v46 = vmul.f32 %v450_v27, %v450_v27  ;;  %v330_v47 = vsub.f32 %v78_v33, %v204_v34  ;;  %v761_v48 = vsel %vm644_vm0, %v577_v31, 0.0  ;;  %v206_v16 = vld [vmem:[%s6216_s1 + $0x210] sm:$0xff]  ;;  %v215_v33 = vld [vmem:[%s6216_s1 + $0x258] sm:$0xff] }
  0x3f   :  { %723 = vadd.xlane.f32.xlu1 %v722_v22  ;;  %v741_v22 = vsel %vm644_vm0, %v567_v6, 0.0  ;;  %v575_v37 = vmul.f32 %v449_v18, %v449_v18  ;;  %v574_v49 = vmul.f32 %v448_v32, %v448_v32  ;;  %v457_v50 = vadd.f32 1e-06, %v331_v35  ;;  %v210_v6 = vld [vmem:[%s6216_s1 + $0x230] sm:$0xff]  ;;  %v89_v32 = vld [vmem:[%s6215_s0 + $0x258] sm:$0xff] }
  0x40   :  { %719 = vadd.xlane.f32.xlu0 %v718_v28  ;;  %v75_v28 = vld [vmem:[%s6215_s0 + $0x1e8] sm:$0xff]  ;;  %v742_v36 = vadd.f32 %v741_v22, %v566_v17  ;;  %v328_v51 = vsub.f32 %v76_v39, %v202_v40  ;;  %v572_v53 = vmul.f32 %v446_v38, %v446_v38  ;;  %v326_v55 = vsub.f32 %v74_v43, %v200_v44 }
  0x41   :  { %v327_v45 = vsub.f32 %v75_v28, %v201_v29  ;;  %v757_v52 = vsel %vm644_vm0, %v575_v37, 0.0  ;;  %v762_v62 = vadd.f32 %v761_v48, %v576_v46  ;;  %v456_v63 = vadd.f32 1e-06, %v330_v47  ;;  %v91_v28 = vld [vmem:[%s6215_s0 + $0x268] sm:$0xff]  ;;  %v88_v47 = vld [vmem:[%s6215_s0 + $0x250] sm:$0xff] }
  0x42   :  { %v758_v2 = vadd.f32 %v757_v52, %v574_v49  ;;  %v583_v3 = vmul.f32 %v457_v50, %v457_v50  ;;  %v454_v4 = vadd.f32 1e-06, %v328_v51  ;;  %v337_v7 = vsub.f32 %v85_v56, %v211_v57  ;;  %v217_v29 = vld [vmem:[%s6216_s1 + $0x268] sm:$0xff]  ;;  %v214_v48 = vld [vmem:[%s6216_s1 + $0x250] sm:$0xff]  ;;  %v86_v51 = vld [vmem:[%s6215_s0 + $0x240] sm:$0xff] }
  0x43   :  { %v453_v59 = vadd.f32 1e-06, %v327_v45  ;;  %v452_v10 = vadd.f32 1e-06, %v326_v55  ;;  %v335_v13 = vsub.f32 %v83_v60, %v209_v61  ;;  %v582_v18 = vmul.f32 %v456_v63, %v456_v63  ;;  %v213_v37 = vld [vmem:[%s6216_s1 + $0x248] sm:$0xff]  ;;  %v212_v52 = vld [vmem:[%s6216_s1 + $0x240] sm:$0xff] }
  0x44   :  { %v336_v19 = vsub.f32 %v84_v5, %v210_v6  ;;  %v773_v20 = vsel %vm644_vm0, %v583_v3, 0.0  ;;  %v580_v21 = vmul.f32 %v454_v4, %v454_v4  ;;  %v463_v22 = vadd.f32 1e-06, %v337_v7  ;;  %v95_v4 = vld [vmem:[%s6215_s0 + $0x288] sm:$0xff] }
  0x45   :  { %739 = vadd.xlane.f32.xlu2 %v738_v54  ;;  %v455_v54 = vadd.f32 1e-06, %v329_v41  ;;  %v579_v14 = vmul.f32 %v453_v59, %v453_v59  ;;  %v334_v23 = vsub.f32 %v82_v11, %v208_v12  ;;  %v578_v25 = vmul.f32 %v452_v10, %v452_v10  ;;  %v90_v41 = vld [vmem:[%s6215_s0 + $0x260] sm:$0xff]  ;;  %v221_v5 = vld [vmem:[%s6216_s1 + $0x288] sm:$0xff] }
  0x46   :  { %v332_v27 = vsub.f32 %v80_v15, %v206_v16  ;;  %v774_v34 = vadd.f32 %v773_v20, %v582_v18  ;;  %v462_v35 = vadd.f32 1e-06, %v336_v19  ;;  %v589_v39 = vmul.f32 %v463_v22, %v463_v22  ;;  %v94_v19 = vld [vmem:[%s6215_s0 + $0x280] sm:$0xff] }
  0x47   :  { %735 = vadd.xlane.f32.xlu1 %v734_v58  ;;  %v753_v58 = vsel %vm644_vm0, %v573_v42, 0.0  ;;  %v581_v9 = vmul.f32 %v455_v54, %v455_v54  ;;  %v460_v40 = vadd.f32 1e-06, %v334_v23  ;;  %v216_v42 = vld [vmem:[%s6216_s1 + $0x260] sm:$0xff]  ;;  %v343_v43 = vsub.f32 %v91_v28, %v217_v29  ;;  %v92_v23 = vld [vmem:[%s6215_s0 + $0x270] sm:$0xff] }
  0x48   :  { %731 = vadd.xlane.f32.xlu0 %v730_v0  ;;  %v81_v0 = vld [vmem:[%s6215_s0 + $0x218] sm:$0xff]  ;;  %v754_v8 = vadd.f32 %v753_v58, %v572_v53  ;;  %v458_v46 = vadd.f32 1e-06, %v332_v27  ;;  %v341_v49 = vsub.f32 %v89_v32, %v215_v33  ;;  %v588_v54 = vmul.f32 %v462_v35, %v462_v35  ;;  %v220_v20 = vld [vmem:[%s6216_s1 + $0x280] sm:$0xff] }
  0x49   :  { %v333_v17 = vsub.f32 %v81_v0, %v207_v1  ;;  %v769_v24 = vsel %vm644_vm0, %v581_v9, 0.0  ;;  %v342_v55 = vsub.f32 %v90_v41, %v216_v42  ;;  %v785_v56 = vsel %vm644_vm0, %v589_v39, 0.0  ;;  %v97_v0 = vld [vmem:[%s6215_s0 + $0x298] sm:$0xff] }
  0x4a   :  { %v770_v38 = vadd.f32 %v769_v24, %v580_v21  ;;  %v586_v57 = vmul.f32 %v460_v40, %v460_v40  ;;  %v469_v58 = vadd.f32 1e-06, %v343_v43  ;;  %v340_v59 = vsub.f32 %v88_v47, %v214_v48  ;;  %v223_v1 = vld [vmem:[%s6216_s1 + $0x298] sm:$0xff]  ;;  %v218_v24 = vld [vmem:[%s6216_s1 + $0x270] sm:$0xff] }
  0x4b   :  { %v459_v31 = vadd.f32 1e-06, %v333_v17  ;;  %v584_v61 = vmul.f32 %v458_v46, %v458_v46  ;;  %v338_v63 = vsub.f32 %v86_v51, %v212_v52  ;;  %v786_v6 = vadd.f32 %v785_v56, %v588_v54  ;;  %v219_v9 = vld [vmem:[%s6216_s1 + $0x278] sm:$0xff]  ;;  %v226_v56 = vld [vmem:[%s6216_s1 + $0x2b0] sm:$0xff] }
  0x4c   :  { %v468_v7 = vadd.f32 1e-06, %v342_v55  ;;  %v595_v11 = vmul.f32 %v469_v58, %v469_v58  ;;  %v466_v12 = vadd.f32 1e-06, %v340_v59  ;;  %v349_v15 = vsub.f32 %v97_v0, %v223_v1  ;;  %v101_v40 = vld [vmem:[%s6215_s0 + $0x2b8] sm:$0xff]  ;;  %v100_v55 = vld [vmem:[%s6215_s0 + $0x2b0] sm:$0xff] }
  0x4d   :  { %751 = vadd.xlane.f32.xlu2 %v750_v26  ;;  %v461_v26 = vadd.f32 1e-06, %v335_v13  ;;  %v585_v50 = vmul.f32 %v459_v31, %v459_v31  ;;  %v96_v13 = vld [vmem:[%s6215_s0 + $0x290] sm:$0xff]  ;;  %v464_v18 = vadd.f32 1e-06, %v338_v63  ;;  %v347_v21 = vsub.f32 %v95_v4, %v221_v5  ;;  %v227_v41 = vld [vmem:[%s6216_s1 + $0x2b8] sm:$0xff] }
  0x4e   :  { %v797_v28 = vsel %vm644_vm0, %v595_v11, 0.0  ;;  %v592_v29 = vmul.f32 %v466_v12, %v466_v12  ;;  %v346_v31 = vsub.f32 %v94_v19, %v220_v20  ;;  %v344_v35 = vsub.f32 %v92_v23, %v218_v24  ;;  %v98_v59 = vld [vmem:[%s6215_s0 + $0x2a0] sm:$0xff]  ;;  %v107_v12 = vld [vmem:[%s6215_s0 + $0x2e8] sm:$0xff] }
  0x4f   :  { %747 = vadd.xlane.f32.xlu1 %v746_v30  ;;  %v765_v30 = vsel %vm644_vm0, %v579_v14, 0.0  ;;  %v587_v45 = vmul.f32 %v461_v26, %v461_v26  ;;  %v222_v14 = vld [vmem:[%s6216_s1 + $0x290] sm:$0xff]  ;;  %v594_v26 = vmul.f32 %v468_v7, %v468_v7  ;;  %v590_v33 = vmul.f32 %v464_v18, %v464_v18 }
  0x50   :  { %743 = vadd.xlane.f32.xlu0 %v742_v36  ;;  %v87_v36 = vld [vmem:[%s6215_s0 + $0x248] sm:$0xff]  ;;  %v766_v44 = vadd.f32 %v765_v30, %v578_v25  ;;  %v348_v27 = vsub.f32 %v96_v13, %v222_v14  ;;  %v475_v30 = vadd.f32 1e-06, %v349_v15  ;;  %v472_v48 = vadd.f32 1e-06, %v346_v31  ;;  %v104_v31 = vld [vmem:[%s6215_s0 + $0x2d0] sm:$0xff] }
  0x51   :  { %v339_v53 = vsub.f32 %v87_v36, %v213_v37  ;;  %v781_v60 = vsel %vm644_vm0, %v587_v45, 0.0  ;;  %v103_v36 = vld [vmem:[%s6215_s0 + $0x2c8] sm:$0xff]  ;;  %v798_v42 = vadd.f32 %v797_v28, %v594_v26  ;;  %v470_v54 = vadd.f32 1e-06, %v344_v35  ;;  %v232_v28 = vld [vmem:[%s6216_s1 + $0x2e0] sm:$0xff] }
  0x52   :  { %v782_v10 = vadd.f32 %v781_v60, %v586_v57  ;;  %v229_v37 = vld [vmem:[%s6216_s1 + $0x2c8] sm:$0xff]  ;;  %v474_v43 = vadd.f32 1e-06, %v348_v27  ;;  %v601_v47 = vmul.f32 %v475_v30, %v475_v30  ;;  %v353_v57 = vsub.f32 %v101_v40, %v227_v41  ;;  %v224_v60 = vld [vmem:[%s6216_s1 + $0x2a0] sm:$0xff] }
  0x53   :  { %v465_v3 = vadd.f32 1e-06, %v339_v53  ;;  %v225_v45 = vld [vmem:[%s6216_s1 + $0x2a8] sm:$0xff]  ;;  %v355_v51 = vsub.f32 %v103_v36, %v229_v37  ;;  %v598_v1 = vmul.f32 %v472_v48, %v472_v48  ;;  %v596_v5 = vmul.f32 %v470_v54, %v470_v54  ;;  %v106_v27 = vld [vmem:[%s6215_s0 + $0x2e0] sm:$0xff]  ;;  %v113_v48 = vld [vmem:[%s6215_s0 + $0x318] sm:$0xff] }
  0x54   :  { %v809_v0 = vsel %vm644_vm0, %v601_v47, 0.0  ;;  %v350_v7 = vsub.f32 %v98_v59, %v224_v60  ;;  %v233_v13 = vld [vmem:[%s6216_s1 + $0x2e8] sm:$0xff] }
  0x55   :  { %763 = vadd.xlane.f32.xlu2 %v762_v62  ;;  %v467_v62 = vadd.f32 1e-06, %v341_v49  ;;  %v591_v22 = vmul.f32 %v465_v3, %v465_v3  ;;  %v102_v49 = vld [vmem:[%s6215_s0 + $0x2c0] sm:$0xff]  ;;  %v352_v3 = vsub.f32 %v100_v55, %v226_v56 }
  0x56   :  { %v476_v26 = vadd.f32 1e-06, %v350_v7 }
  0x57   :  { %759 = vadd.xlane.f32.xlu1 %v758_v2  ;;  %v777_v2 = vsel %vm644_vm0, %v585_v50, 0.0  ;;  %v593_v17 = vmul.f32 %v467_v62, %v467_v62  ;;  %v228_v50 = vld [vmem:[%s6216_s1 + $0x2c0] sm:$0xff]  ;;  %v600_v62 = vmul.f32 %v474_v43, %v474_v43  ;;  %v478_v20 = vadd.f32 1e-06, %v352_v3 }
  0x58   :  { %755 = vadd.xlane.f32.xlu0 %v754_v8  ;;  %v93_v8 = vld [vmem:[%s6215_s0 + $0x278] sm:$0xff]  ;;  %v778_v16 = vadd.f32 %v777_v2, %v584_v61  ;;  %v354_v63 = vsub.f32 %v102_v49, %v228_v50  ;;  %v481_v2 = vadd.f32 1e-06, %v355_v51  ;;  %v602_v41 = vmul.f32 %v476_v26, %v476_v26  ;;  %v110_v3 = vld [vmem:[%s6215_s0 + $0x300] sm:$0xff] }
  0x59   :  { %v345_v25 = vsub.f32 %v93_v8, %v219_v9  ;;  %v793_v32 = vsel %vm644_vm0, %v593_v17, 0.0  ;;  %v109_v8 = vld [vmem:[%s6215_s0 + $0x2f8] sm:$0xff]  ;;  %v810_v14 = vadd.f32 %v809_v0, %v600_v62  ;;  %v604_v37 = vmul.f32 %v478_v20, %v478_v20  ;;  %v238_v0 = vld [vmem:[%s6216_s1 + $0x310] sm:$0xff] }
  0x5a   :  { %v794_v46 = vadd.f32 %v793_v32, %v592_v29  ;;  %v235_v9 = vld [vmem:[%s6216_s1 + $0x2f8] sm:$0xff]  ;;  %v480_v15 = vadd.f32 1e-06, %v354_v63  ;;  %v607_v19 = vmul.f32 %v481_v2, %v481_v2  ;;  %v359_v29 = vsub.f32 %v107_v12, %v233_v13  ;;  %v230_v32 = vld [vmem:[%s6216_s1 + $0x2d0] sm:$0xff] }
  0x5b   :  { %v471_v39 = vadd.f32 1e-06, %v345_v25  ;;  %v231_v17 = vld [vmem:[%s6216_s1 + $0x2d8] sm:$0xff]  ;;  %v361_v23 = vsub.f32 %v109_v8, %v235_v9  ;;  %v356_v43 = vsub.f32 %v104_v31, %v230_v32  ;;  %v112_v63 = vld [vmem:[%s6215_s0 + $0x310] sm:$0xff] }
  0x5c   :  { %v821_v36 = vsel %vm644_vm0, %v607_v19, 0.0  ;;  %v239_v49 = vld [vmem:[%s6216_s1 + $0x318] sm:$0xff] }
  0x5d   :  { %775 = vadd.xlane.f32.xlu2 %v774_v34  ;;  %v473_v34 = vadd.f32 1e-06, %v347_v21  ;;  %v597_v58 = vmul.f32 %v471_v39, %v471_v39  ;;  %v108_v21 = vld [vmem:[%s6215_s0 + $0x2f0] sm:$0xff]  ;;  %v358_v39 = vsub.f32 %v106_v27, %v232_v28  ;;  %v482_v62 = vadd.f32 1e-06, %v356_v43 }
  0x5f   :  { %771 = vadd.xlane.f32.xlu1 %v770_v38  ;;  %v789_v38 = vsel %vm644_vm0, %v591_v22, 0.0  ;;  %v599_v53 = vmul.f32 %v473_v34, %v473_v34  ;;  %v234_v22 = vld [vmem:[%s6216_s1 + $0x2f0] sm:$0xff]  ;;  %v606_v34 = vmul.f32 %v480_v15, %v480_v15  ;;  %v484_v56 = vadd.f32 1e-06, %v358_v39 }
  0x60   :  { %767 = vadd.xlane.f32.xlu0 %v766_v44  ;;  %v99_v44 = vld [vmem:[%s6215_s0 + $0x2a8] sm:$0xff]  ;;  %v790_v52 = vadd.f32 %v789_v38, %v590_v33  ;;  %v360_v35 = vsub.f32 %v108_v21, %v234_v22  ;;  %v487_v38 = vadd.f32 1e-06, %v361_v23  ;;  %v608_v13 = vmul.f32 %v482_v62, %v482_v62 }
  0x61   :  { %v351_v61 = vsub.f32 %v99_v44, %v225_v45  ;;  %v805_v4 = vsel %vm644_vm0, %v599_v53, 0.0  ;;  %v115_v44 = vld [vmem:[%s6215_s0 + $0x328] sm:$0xff]  ;;  %v822_v50 = vadd.f32 %v821_v36, %v606_v34  ;;  %v610_v9 = vmul.f32 %v484_v56, %v484_v56 }
  0x62   :  { %v806_v18 = vadd.f32 %v805_v4, %v598_v1  ;;  %v241_v45 = vld [vmem:[%s6216_s1 + $0x328] sm:$0xff]  ;;  %v486_v51 = vadd.f32 1e-06, %v360_v35  ;;  %v613_v55 = vmul.f32 %v487_v38, %v487_v38  ;;  %v365_v1 = vsub.f32 %v113_v48, %v239_v49  ;;  %v236_v4 = vld [vmem:[%s6216_s1 + $0x300] sm:$0xff] }
  0x63   :  { %v477_v11 = vadd.f32 1e-06, %v351_v61  ;;  %v237_v53 = vld [vmem:[%s6216_s1 + $0x308] sm:$0xff]  ;;  %v367_v59 = vsub.f32 %v115_v44, %v241_v45  ;;  %v362_v15 = vsub.f32 %v110_v3, %v236_v4 }
  0x64   :  { %v833_v8 = vsel %vm644_vm0, %v613_v55, 0.0 }
  0x65   :  { %787 = vadd.xlane.f32.xlu2 %v786_v6  ;;  %v479_v6 = vadd.f32 1e-06, %v353_v57  ;;  %v603_v30 = vmul.f32 %v477_v11, %v477_v11  ;;  %v114_v57 = vld [vmem:[%s6215_s0 + $0x320] sm:$0xff]  ;;  %v364_v11 = vsub.f32 %v112_v63, %v238_v0  ;;  %v488_v28 = vadd.f32 1e-06, %v362_v15 }
  0x67   :  { %783 = vadd.xlane.f32.xlu1 %v782_v10  ;;  %v801_v10 = vsel %vm644_vm0, %v597_v58, 0.0  ;;  %v605_v25 = vmul.f32 %v479_v6, %v479_v6  ;;  %v240_v58 = vld [vmem:[%s6216_s1 + $0x320] sm:$0xff]  ;;  %v612_v6 = vmul.f32 %v486_v51, %v486_v51  ;;  %v614_v35 = vmul.f32 %v488_v28, %v488_v28 }
  0x68   :  { %779 = vadd.xlane.f32.xlu0 %v778_v16  ;;  %v105_v16 = vld [vmem:[%s6215_s0 + $0x2d8] sm:$0xff]  ;;  %v802_v24 = vadd.f32 %v801_v10, %v596_v5  ;;  %v366_v7 = vsub.f32 %v114_v57, %v240_v58  ;;  %v493_v10 = vadd.f32 1e-06, %v367_v59  ;;  %v1653_v28 = vld [vmem:[%s6217_s2] sm:$0xff] }
  0x69   :  { %v357_v33 = vsub.f32 %v105_v16, %v231_v17  ;;  %v817_v40 = vsel %vm644_vm0, %v605_v25, 0.0  ;;  %v834_v20 = vadd.f32 %v833_v8, %v612_v6  ;;  %v490_v25 = vadd.f32 1e-06, %v364_v11 }
  0x6a   :  { %v818_v54 = vadd.f32 %v817_v40, %v604_v37  ;;  %v492_v21 = vadd.f32 1e-06, %v366_v7 }
  0x6b   :  { %v483_v47 = vadd.f32 1e-06, %v357_v33  ;;  %v616_v32 = vmul.f32 %v490_v25, %v490_v25 }
  0x6d   :  { %799 = vadd.xlane.f32.xlu2 %v798_v42  ;;  %v485_v42 = vadd.f32 1e-06, %v359_v29  ;;  %v609_v2 = vmul.f32 %v483_v47, %v483_v47 }
  0x6f   :  { %795 = vadd.xlane.f32.xlu1 %v794_v46  ;;  %v813_v46 = vsel %vm644_vm0, %v603_v30, 0.0  ;;  %v611_v61 = vmul.f32 %v485_v42, %v485_v42  ;;  %v825_v17 = vsel %vm644_vm0, %v609_v2, 0.0  ;;  %v618_v30 = vmul.f32 %v492_v21, %v492_v21 }
  0x70   :  { %791 = vadd.xlane.f32.xlu0 %v790_v52  ;;  %v111_v52 = vld [vmem:[%s6215_s0 + $0x308] sm:$0xff]  ;;  %v814_v60 = vadd.f32 %v813_v46, %v602_v41  ;;  %v826_v26 = vadd.f32 %v825_v17, %v608_v13 }
  0x71   :  { %v363_v5 = vsub.f32 %v111_v52, %v237_v53  ;;  %v829_v12 = vsel %vm644_vm0, %v611_v61, 0.0 }
  0x72   :  { %v830_v23 = vadd.f32 %v829_v12, %v610_v9 }
  0x75   :  { %811 = vadd.xlane.f32.xlu2 %v810_v14  ;;  %v491_v14 = vadd.f32 1e-06, %v365_v1 }
  0x77   :  { %807 = vadd.xlane.f32.xlu1 %v806_v18  ;;  %v489_v18 = vadd.f32 1e-06, %v363_v5  ;;  %v617_v27 = vmul.f32 %v491_v14, %v491_v14  ;;  %v1657_v14 = vld [vmem:[%s6217_s2 + $0x20] sm:$0xff] }
  0x78   :  { %803 = vadd.xlane.f32.xlu0 %v802_v24  ;;  %v619_v24 = vmul.f32 %v493_v10, %v493_v10 }
  0x79   :  { %v615_v29 = vmul.f32 %v489_v18, %v489_v18  ;;  %v841_v34 = vsel %vm644_vm0, %v617_v27, 0.0 }
  0x7a   :  { %v845_v31 = vsel %vm644_vm0, %v619_v24, 0.0  ;;  %v842_v47 = vadd.f32 %v841_v34, %v616_v32 }
  0x7b   :  { %v837_v39 = vsel %vm644_vm0, %v615_v29, 0.0  ;;  %v846_v43 = vadd.f32 %v845_v31, %v618_v30 }
  0x7c   :  { %v838_v49 = vadd.f32 %v837_v39, %v614_v35 }
  0x7d   :  { %823 = vadd.xlane.f32.xlu2 %v822_v50 }
  0x7f   :  { %819 = vadd.xlane.f32.xlu1 %v818_v54 }
  0x80   :  { %815 = vadd.xlane.f32.xlu0 %v814_v60  ;;  %v4101_v16 = vpop.xlane.xlu2 %663 }
  0x81   :  { %3044 = vrsqrt.f32 %v4101_v16  ;;  %vm952_vm1 = vcmp.eq.f32.partialorder %v4101_v16, inf  ;;  %vm954_vm2 = vcmp.eq.f32.partialorder %v4101_v16, 0.0  ;;  %v955_v56 = vand.u32 2147483648, %v4101_v16 }
  0x82   :  { %v4105_v19 = vpop.xlane.xlu1 %655 }
  0x83   :  { %3046 = vrsqrt.f32 %v4105_v19  ;;  %v4108_v22 = vpop.xlane.xlu0 %647  ;;  %vm928_vm3 = vcmp.eq.f32.partialorder %v4105_v19, inf  ;;  %vm930_vm4 = vcmp.eq.f32.partialorder %v4105_v19, 0.0  ;;  %v931_v60 = vand.u32 2147483648, %v4105_v19 }
  0x84   :  { %3048 = vrsqrt.f32 %v4108_v22  ;;  %vm904_vm5 = vcmp.eq.f32.partialorder %v4108_v22, inf  ;;  %vm906_vm6 = vcmp.eq.f32.partialorder %v4108_v22, 0.0  ;;  %v907_v8 = vand.u32 2147483648, %v4108_v22 }
  0x85   :  { %835 = vadd.xlane.f32.xlu2 %v834_v20 }
  0x87   :  { %831 = vadd.xlane.f32.xlu1 %v830_v23  ;;  %v3045_v33 = vpop.eup %3044  ;;  %v1655_v23 = vld [vmem:[%s6217_s2 + $0x10] sm:$0xff] }
  0x88   :  { %827 = vadd.xlane.f32.xlu0 %v826_v26  ;;  %v946_v37 = vmul.f32 %v3045_v33, %v4101_v16  ;;  %v4114_v38 = vpop.xlane.xlu2 %667 }
  0x89   :  { %v3047_v36 = vpop.eup %3046  ;;  %3050 = vrsqrt.f32 %v4114_v38  ;;  %vm964_vm7 = vcmp.eq.f32.partialorder %v4114_v38, inf  ;;  %vm966_vm8 = vcmp.eq.f32.partialorder %v4114_v38, 0.0  ;;  %v967_v34 = vand.u32 2147483648, %v4114_v38 }
  0x8a   :  { %v3049_v40 = vpop.eup %3048  ;;  %v922_v41 = vmul.f32 %v3047_v36, %v4105_v19  ;;  %v4119_v42 = vpop.xlane.xlu1 %659  ;;  %v947_v44 = vmul.f32 %v3045_v33, %v946_v37 }
  0x8b   :  { %v898_v45 = vmul.f32 %v3049_v40, %v4108_v22  ;;  %3052 = vrsqrt.f32 %v4119_v42  ;;  %v4123_v46 = vpop.xlane.xlu0 %651  ;;  %vm940_vm9 = vcmp.eq.f32.partialorder %v4119_v42, inf  ;;  %vm942_vm10 = vcmp.eq.f32.partialorder %v4119_v42, 0.0 }
  0x8c   :  { %v923_v48 = vmul.f32 %v3047_v36, %v922_v41  ;;  %v948_v50 = vmul.f32 0.5, %v947_v44  ;;  %3054 = vrsqrt.f32 %v4123_v46  ;;  %vm916_vm11 = vcmp.eq.f32.partialorder %v4123_v46, inf }
  0x8d   :  { %v899_v51 = vmul.f32 %v3049_v40, %v898_v45  ;;  %847 = vadd.xlane.f32.xlu2 %v846_v43  ;;  %vm918_vm12 = vcmp.eq.f32.partialorder %v4123_v46, 0.0 }
  0x8e   :  { %v924_v52 = vmul.f32 0.5, %v923_v48  ;;  %v949_v53 = vsub.f32 1.5, %v948_v50  ;;  %v943_v50 = vand.u32 2147483648, %v4119_v42 }
  0x8f   :  { %v900_v54 = vmul.f32 0.5, %v899_v51  ;;  %843 = vadd.xlane.f32.xlu1 %v842_v47  ;;  %v3051_v55 = vpop.eup %3050 }
  0x90   :  { %v925_v57 = vsub.f32 1.5, %v924_v52  ;;  %839 = vadd.xlane.f32.xlu0 %v838_v49  ;;  %v950_v59 = vmul.f32 %v3045_v33, %v949_v53  ;;  %v958_v62 = vmul.f32 %v3051_v55, %v4114_v38  ;;  %v4133_v63 = vpop.xlane.xlu2 %679 }
  0x91   :  { %v3053_v58 = vpop.eup %3052  ;;  %v901_v61 = vsub.f32 1.5, %v900_v54  ;;  %3056 = vrsqrt.f32 %v4133_v63  ;;  %vm1000_vm13 = vcmp.eq.f32.partialorder %v4133_v63, inf  ;;  %vm1002_vm14 = vcmp.eq.f32.partialorder %v4133_v63, 0.0 }
  0x92   :  { %v926_v0 = vmul.f32 %v3047_v36, %v925_v57  ;;  %v934_v1 = vmul.f32 %v3053_v58, %v4119_v42  ;;  %v4138_v2 = vpop.xlane.xlu1 %675  ;;  %v3055_v3 = vpop.eup %3054  ;;  %v951_v4 = vmul.f32 %v950_v59, %v4101_v16  ;;  %v959_v6 = vmul.f32 %v3051_v55, %v958_v62  ;;  %v1658_v59 = vld [vmem:[%s6217_s2 + $0x28] sm:$0xff] }
  0x93   :  { %v902_v5 = vmul.f32 %v3049_v40, %v901_v61  ;;  %v910_v10 = vmul.f32 %v3055_v3, %v4123_v46  ;;  %3058 = vrsqrt.f32 %v4138_v2 }
  0x94   :  { %v927_v7 = vmul.f32 %v926_v0, %v4105_v19  ;;  %v935_v9 = vmul.f32 %v3053_v58, %v934_v1  ;;  %v953_v11 = vsel %vm952_vm1, %v4101_v16, %v951_v4  ;;  %v960_v13 = vmul.f32 0.5, %v959_v6  ;;  %v1656_v4 = vld [vmem:[%s6217_s2 + $0x18] sm:$0xff] }
  0x95   :  { %v903_v12 = vmul.f32 %v902_v5, %v4108_v22  ;;  %v956_v15 = vsel %vm954_vm2, %v955_v56, %v953_v11  ;;  %v911_v20 = vmul.f32 %v3055_v3, %v910_v10  ;;  %v919_v56 = vand.u32 2147483648, %v4123_v46 }
  0x96   :  { %v929_v17 = vsel %vm928_vm3, %v4105_v19, %v927_v7  ;;  %v936_v18 = vmul.f32 0.5, %v935_v9  ;;  %v1720_v21 = vsub.f32 10.0, %v956_v15  ;;  %v961_v16 = vsub.f32 1.5, %v960_v13 }
  0x97   :  { %v932_v24 = vsel %vm930_vm4, %v931_v60, %v929_v17  ;;  %v905_v25 = vsel %vm904_vm5, %v4108_v22, %v903_v12  ;;  %v4168_v26 = vpop.eup %3056  ;;  %v912_v19 = vmul.f32 0.5, %v911_v20  ;;  %v4241_v20 = vld [vmem:[%s6215_s0 + $0x350] sm:$0xff]  ;;  %vm988_vm2 = vcmp.eq.f32.partialorder %v4138_v2, inf }
  0x98   :  { %v1718_v27 = vsub.f32 10.0, %v932_v24  ;;  %v908_v29 = vsel %vm906_vm6, %v907_v8, %v905_v25  ;;  %v937_v30 = vsub.f32 1.5, %v936_v18  ;;  %v1783_v31 = vmul.f32 %v1720_v21, %v1657_v14  ;;  %v4230_v14 = vld [vmem:[%s6216_s1 + $0x358] sm:$0xff]  ;;  %v4246_v21 = vld [vmem:[%s6216_s1 + $0x350] sm:$0xff]  ;;  %v4250_v24 = vpop.xlane.xlu0 %671 }
  0x99   :  { %v1716_v32 = vsub.f32 10.0, %v908_v29  ;;  %v962_v33 = vmul.f32 %v3051_v55, %v961_v16  ;;  %v913_v37 = vsub.f32 1.5, %v912_v19  ;;  %v994_v39 = vmul.f32 %v4168_v26, %v4133_v63  ;;  %v4178_v40 = vpop.eup %3058 }
  0x9a   :  { %v1781_v35 = vmul.f32 %v1718_v27, %v1655_v23  ;;  %v938_v36 = vmul.f32 %v3053_v58, %v937_v30  ;;  %v4180_v41 = vsub.f32 1.0, %v1783_v31  ;;  %v982_v57 = vmul.f32 %v4178_v40, %v4138_v2 }
  0x9b   :  { %v1779_v43 = vmul.f32 %v1716_v32, %v1653_v28  ;;  %v963_v22 = vmul.f32 %v962_v33, %v4114_v38  ;;  %v914_v47 = vmul.f32 %v3055_v3, %v913_v37  ;;  %v995_v53 = vmul.f32 %v4168_v26, %v994_v39 }
  0x9c   :  { %v4184_v44 = vsub.f32 1.0, %v1781_v35  ;;  %v939_v45 = vmul.f32 %v938_v36, %v4119_v42  ;;  %v1972_v48 = vand.u32 2147483647, %v4180_v41  ;;  %v983_v18 = vmul.f32 %v4178_v40, %v982_v57 }
  0x9d   :  { %v4189_v49 = vsub.f32 1.0, %v1779_v43  ;;  %v965_v52 = vsel %vm964_vm7, %v4114_v38, %v963_v22  ;;  %v915_v62 = vmul.f32 %v914_v47, %v4123_v46  ;;  %v996_v8 = vmul.f32 0.5, %v995_v53 }
  0x9e   :  { %v1970_v51 = vand.u32 2147483647, %v4184_v44  ;;  %v2035_v54 = vsub.f32 0.0, %v1972_v48  ;;  %v968_v60 = vsel %vm966_vm8, %v967_v34, %v965_v52  ;;  %v941_v61 = vsel %vm940_vm9, %v4119_v42, %v939_v45  ;;  %v4225_v42 = vld [vmem:[%s6215_s0 + $0x358] sm:$0xff] }
  0x9f   :  { %v1968_v55 = vand.u32 2147483647, %v4189_v49  ;;  %v1721_v3 = vsub.f32 10.0, %v968_v60  ;;  %v944_v5 = vsel %vm942_vm10, %v943_v50, %v941_v61  ;;  %v917_v38 = vsel %vm916_vm11, %v4123_v46, %v915_v62  ;;  %v1654_v46 = vld [vmem:[%s6217_s2 + $0x8] sm:$0xff] }
  0xa0   :  { %v2033_v58 = vsub.f32 0.0, %v1970_v51  ;;  %v2102_v0 = vmul.f32 1.442695, %v2035_v54  ;;  %v1719_v7 = vsub.f32 10.0, %v944_v5  ;;  %v920_v11 = vsel %vm918_vm12, %v919_v56, %v917_v38 }
  0xa1   :  { %v2031_v1 = vsub.f32 0.0, %v1968_v55  ;;  %v1784_v10 = vmul.f32 %v1721_v3, %v1658_v59  ;;  %v1717_v13 = vsub.f32 10.0, %v920_v11  ;;  %v997_v17 = vsub.f32 1.5, %v996_v8 }
  0xa2   :  { %v2098_v6 = vmul.f32 1.442695, %v2033_v58  ;;  %3060 = vpow2.f32 %v2102_v0  ;;  %v1782_v12 = vmul.f32 %v1719_v7, %v1656_v4  ;;  %v373_v16 = vsub.f32 %v4225_v42, %v4230_v14  ;;  %v116_v42 = vld [vmem:[%s6215_s0 + $0x330] sm:$0xff] }
  0xa3   :  { %v2094_v9 = vmul.f32 1.442695, %v2031_v1  ;;  %v4232_v15 = vsub.f32 1.0, %v1784_v10  ;;  %v1780_v28 = vmul.f32 %v1717_v13, %v1654_v46  ;;  %v372_v29 = vsub.f32 %v4241_v20, %v4246_v21  ;;  %v242_v14 = vld [vmem:[%s6216_s1 + $0x330] sm:$0xff] }
  0xa4   :  { %3062 = vpow2.f32 %v2098_v6  ;;  %v4248_v23 = vsub.f32 1.0, %v1782_v12  ;;  %v998_v31 = vmul.f32 %v4168_v26, %v997_v17  ;;  %v984_v32 = vmul.f32 0.5, %v983_v18 }
  0xa5   :  { %3064 = vpow2.f32 %v2094_v9  ;;  %v1973_v25 = vand.u32 2147483647, %v4232_v15  ;;  %v1909_v34 = vmax.f32 %v4180_v41, 0.0  ;;  %v1003_v37 = vand.u32 2147483648, %v4133_v63 }
  0xa6   :  { %v1971_v27 = vand.u32 2147483647, %v4248_v23  ;;  %3066 = vrsqrt.f32 %v4250_v24  ;;  %v1907_v26 = vmax.f32 %v4184_v44, 0.0  ;;  %v4265_v50 = vsub.f32 1.0, %v1780_v28 }
  0xa7   :  { %v2036_v19 = vsub.f32 0.0, %v1973_v25  ;;  %v999_v52 = vmul.f32 %v998_v31, %v4133_v63  ;;  %v985_v53 = vsub.f32 1.5, %v984_v32  ;;  %vm2854_vm1 = vcmp.gt.f32.partialorder %v4180_v41, 10.0 }
  0xa8   :  { %v3061_v30 = vpop.eup %3060  ;;  %v2034_v36 = vsub.f32 0.0, %v1971_v27  ;;  %v1905_v60 = vmax.f32 %v4189_v49, 0.0  ;;  %vm2852_vm3 = vcmp.gt.f32.partialorder %v4184_v44, 10.0  ;;  %v1969_v0 = vand.u32 2147483647, %v4265_v50  ;;  %v1661_v27 = vld [vmem:[%s6217_s2 + $0x40] sm:$0xff] }
  0xa9   :  { %v2256_v35 = vadd.f32 1.0, %v3061_v30  ;;  %v2259_v43 = vmul.f32 -0.5, %v3061_v30  ;;  %v2104_v47 = vmul.f32 1.442695, %v2036_v19  ;;  %v2262_v54 = vand.u32 2147483647, %v3061_v30 }
  0xaa   :  { %v3063_v33 = vpop.eup %3062  ;;  %v2100_v56 = vmul.f32 1.442695, %v2034_v36  ;;  %vm2850_vm4 = vcmp.gt.f32.partialorder %v4189_v49, 10.0  ;;  %v1001_v1 = vsel %vm1000_vm13, %v4133_v63, %v999_v52  ;;  %v986_v3 = vmul.f32 %v4178_v40, %v985_v53 }
  0xab   :  { %v3065_v39 = vpop.eup %3064  ;;  %v2238_v22 = vadd.f32 1.0, %v3063_v33  ;;  %v2241_v45 = vmul.f32 -0.5, %v3063_v33  ;;  %3068 = vlog2.f32 %v2256_v35  ;;  %v2244_v55 = vand.u32 2147483647, %v3063_v33 }
  0xac   :  { %v2220_v48 = vadd.f32 1.0, %v3065_v39  ;;  %v2223_v51 = vmul.f32 -0.5, %v3065_v39  ;;  %v4268_v57 = vpop.eup %3066  ;;  %v2260_v58 = vadd.f32 1.0, %v2259_v43  ;;  %v2226_v62 = vand.u32 2147483647, %v3065_v39 }
  0xad   :  { %3070 = vlog2.f32 %v2238_v22  ;;  %v2242_v59 = vadd.f32 1.0, %v2241_v45  ;;  %v991_v4 = vand.u32 2147483648, %v4138_v2  ;;  %v970_v5 = vmul.f32 %v4268_v57, %v4250_v24 }
  0xae   :  { %3072 = vlog2.f32 %v2220_v48  ;;  %v2224_v61 = vadd.f32 1.0, %v2223_v51  ;;  %vm4283_vm5 = vcmp.lt.f32.partialorder %v2262_v54, 0.0004427343  ;;  %vm4287_vm6 = vcmp.lt.f32.partialorder %v2244_v55, 0.0004427343 }
  0xaf   :  { %3074 = vpow2.f32 %v2104_v47  ;;  %v2032_v8 = vsub.f32 0.0, %v1969_v0  ;;  %v1004_v9 = vsel %vm1002_vm14, %v1003_v37, %v1001_v1  ;;  %vm990_vm7 = vcmp.eq.f32.partialorder %v4138_v2, 0.0 }
  0xb0   :  { %3076 = vpow2.f32 %v2100_v56  ;;  %v2261_v11 = vmul.f32 %v3061_v30, %v2260_v58  ;;  %v2243_v12 = vmul.f32 %v3063_v33, %v2242_v59  ;;  %v1724_v13 = vsub.f32 10.0, %v1004_v9  ;;  %v118_v56 = vld [vmem:[%s6215_s0 + $0x340] sm:$0xff] }
  0xb1   :  { %v3069_v6 = vpop.eup %3068  ;;  %v2225_v18 = vmul.f32 %v3065_v39, %v2224_v61  ;;  %vm4294_vm8 = vcmp.lt.f32.partialorder %v2226_v62, 0.0004427343  ;;  %v987_v63 = vmul.f32 %v986_v3, %v4138_v2  ;;  %v2096_v31 = vmul.f32 1.442695, %v2032_v8  ;;  %v244_v58 = vld [vmem:[%s6216_s1 + $0x340] sm:$0xff]  ;;  %v119_v62 = vld [vmem:[%s6215_s0 + $0x348] sm:$0xff] }
  0xb2   :  { %v2258_v10 = vmul.f32 0.6931472, %v3069_v6  ;;  %v971_v32 = vmul.f32 %v4268_v57, %v970_v5  ;;  %v1787_v47 = vmul.f32 %v1724_v13, %v1661_v27  ;;  %v1910_v54 = vmax.f32 %v4232_v15, 0.0  ;;  %v245_v6 = vld [vmem:[%s6216_s1 + $0x348] sm:$0xff] }
  0xb3   :  { %v3071_v40 = vpop.eup %3070  ;;  %vm2855_vm9 = vcmp.gt.f32.partialorder %v4232_v15, 10.0  ;;  %v1908_v0 = vmax.f32 %v4248_v23, 0.0  ;;  %v498_v5 = vadd.f32 1e-06, %v372_v29  ;;  %vm2853_vm11 = vcmp.gt.f32.partialorder %v4248_v23, 10.0 }
  0xb4   :  { %v3073_v46 = vpop.eup %3072  ;;  %v2240_v17 = vmul.f32 0.6931472, %v3071_v40  ;;  %v2264_v19 = vsel %vm4283_vm5, %v2261_v11, %v2258_v10  ;;  %v4346_v59 = vsub.f32 1.0, %v1787_v47  ;;  %v972_v61 = vmul.f32 0.5, %v971_v32 }
  0xb5   :  { %v3075_v28 = vpop.eup %3074  ;;  %v2222_v30 = vmul.f32 0.6931472, %v3073_v46  ;;  %v2791_v35 = vadd.f32 %v2264_v19, %v1909_v34  ;;  %v989_v34 = vsel %vm988_vm2, %v4138_v2, %v987_v63  ;;  %v370_v7 = vsub.f32 %v118_v56, %v244_v58 }
  0xb6   :  { %v3077_v33 = vpop.eup %3076  ;;  %v2246_v36 = vsel %vm4287_vm6, %v2243_v12, %v2240_v17  ;;  %v2265_v37 = vadd.f32 1.0, %v3075_v28  ;;  %v2268_v39 = vmul.f32 -0.5, %v3075_v28  ;;  %v2271_v52 = vand.u32 2147483647, %v3075_v28 }
  0xb7   :  { %v2789_v43 = vadd.f32 %v2246_v36, %v1907_v26  ;;  %v2228_v22 = vsel %vm4294_vm8, %v2225_v18, %v2222_v30  ;;  %v2247_v45 = vadd.f32 1.0, %v3077_v33  ;;  %v2917_v48 = vsel %vm2854_vm1, %v4180_v41, %v2791_v35 }
  0xb8   :  { %v2787_v51 = vadd.f32 %v2228_v22, %v1905_v60  ;;  %3078 = vlog2.f32 %v2265_v37  ;;  %2981 = vst.msk [vmem:[%s6218_s3 + $0x20] sm:$0xff] %vm2976_vm15, %v2917_v48  ;;  %v2250_v53 = vmul.f32 -0.5, %v3077_v33  ;;  %v2269_v55 = vadd.f32 1.0, %v2268_v39  ;;  %v243_v22 = vld [vmem:[%s6216_s1 + $0x338] sm:$0xff] }
  0xb9   :  { %v2915_v26 = vsel %vm2852_vm3, %v4184_v44, %v2789_v43  ;;  %3080 = vlog2.f32 %v2247_v45  ;;  %v1660_v44 = vld [vmem:[%s6217_s2 + $0x38] sm:$0xff]  ;;  %v992_v60 = vsel %vm990_vm7, %v991_v4, %v989_v34  ;;  %vm4360_vm10 = vcmp.lt.f32.partialorder %v2271_v52, 0.0004427343  ;;  %v4399_v45 = vpop.xlane.xlu2 %691 }
  0xba   :  { %2979 = vst.msk [vmem:[%s6218_s3 + $0x10] sm:$0xff] %vm2976_vm15, %v2915_v26  ;;  %v2913_v41 = vsel %vm2850_vm4, %v4189_v49, %v2787_v51  ;;  %3082 = vpow2.f32 %v2096_v31  ;;  %v2253_v49 = vand.u32 2147483647, %v3077_v33  ;;  %v2251_v1 = vadd.f32 1.0, %v2250_v53  ;;  %v117_v43 = vld [vmem:[%s6215_s0 + $0x338] sm:$0xff] }
  0xbb   :  { %2977 = vst.msk [vmem:[%s6218_s3] sm:$0xff] %vm2976_vm15, %v2913_v41  ;;  %v1723_v3 = vsub.f32 10.0, %v992_v60  ;;  %v1976_v4 = vand.u32 2147483647, %v4346_v59  ;;  %v2270_v8 = vmul.f32 %v3075_v28, %v2269_v55  ;;  %v973_v40 = vsub.f32 1.5, %v972_v61 }
  0xbc   :  { %vm976_vm12 = vcmp.eq.f32.partialorder %v4250_v24, inf  ;;  %v499_v20 = vadd.f32 1e-06, %v373_v16  ;;  %vm4370_vm13 = vcmp.lt.f32.partialorder %v2253_v49, 0.0004427343  ;;  %vm978_vm14 = vcmp.eq.f32.partialorder %v4250_v24, 0.0 }
  0xbd   :  { %v1786_v9 = vmul.f32 %v1723_v3, %v1660_v44  ;;  %v2039_v11 = vsub.f32 0.0, %v1976_v4  ;;  %v371_v12 = vsub.f32 %v119_v62, %v245_v6  ;;  %v2252_v17 = vmul.f32 %v3077_v33, %v2251_v1  ;;  %v1659_v44 = vld [vmem:[%s6217_s2 + $0x30] sm:$0xff]  ;;  %v4428_v3 = vpop.xlane.xlu1 %687 }
  0xbe   :  { %v3079_v38 = vpop.eup %3078  ;;  %v624_v25 = vmul.f32 %v498_v5, %v498_v5  ;;  %v974_v63 = vmul.f32 %v4268_v57, %v973_v40  ;;  %v625_v28 = vmul.f32 %v499_v20, %v499_v20  ;;  %v979_v35 = vand.u32 2147483648, %v4250_v24 }
  0xbf   :  { %v3081_v21 = vpop.eup %3080  ;;  %v2267_v29 = vmul.f32 0.6931472, %v3079_v38  ;;  %v4375_v18 = vsub.f32 1.0, %v1786_v9  ;;  %v2110_v32 = vmul.f32 1.442695, %v2039_v11  ;;  %v368_v36 = vsub.f32 %v116_v42, %v242_v14 }
  0xc0   :  { %v3083_v13 = vpop.eup %3082  ;;  %v2249_v46 = vmul.f32 0.6931472, %v3081_v21  ;;  %v496_v57 = vadd.f32 1e-06, %v370_v7  ;;  %v975_v48 = vmul.f32 %v974_v63, %v4250_v24  ;;  %v857_v51 = vsel %vm644_vm0, %v625_v28, 0.0 }
  0xc1   :  { %v2273_v16 = vsel %vm4360_vm10, %v2270_v8, %v2267_v29  ;;  %v2229_v27 = vadd.f32 1.0, %v3083_v13  ;;  %v2232_v31 = vmul.f32 -0.5, %v3083_v13  ;;  %v1975_v39 = vand.u32 2147483647, %v4375_v18 }
  0xc2   :  { %v2792_v19 = vadd.f32 %v2273_v16, %v1910_v54  ;;  %v2255_v30 = vsel %vm4370_vm13, %v2252_v17, %v2249_v46  ;;  %v2235_v47 = vand.u32 2147483647, %v3083_v13  ;;  %v858_v52 = vadd.f32 %v857_v51, %v624_v25  ;;  %v4441_v25 = vpop.xlane.xlu0 %683 }
  0xc3   :  { %v2790_v33 = vadd.f32 %v2255_v30, %v1908_v0  ;;  %3084 = vlog2.f32 %v2229_v27  ;;  %v2233_v34 = vadd.f32 1.0, %v2232_v31  ;;  %v2038_v26 = vsub.f32 0.0, %v1975_v39 }
  0xc4   :  { %v2918_v37 = vsel %vm2855_vm9, %v4232_v15, %v2792_v19  ;;  %3086 = vpow2.f32 %v2110_v32  ;;  %v497_v53 = vadd.f32 1e-06, %v371_v12  ;;  %v977_v41 = vsel %vm976_vm12, %v4250_v24, %v975_v48  ;;  %859 = vadd.xlane.f32.xlu2 %v858_v52 }
  0xc5   :  { %2982 = vst.msk [vmem:[%s6218_s3 + $0x28] sm:$0xff] %vm2976_vm15, %v2918_v37  ;;  %v2916_v15 = vsel %vm2853_vm11, %v4248_v23, %v2790_v33  ;;  %v369_v54 = vsub.f32 %v117_v43, %v243_v22  ;;  %v494_v23 = vadd.f32 1e-06, %v368_v36  ;;  %3088 = vrsqrt.f32 %v4399_v45  ;;  %v126_v33 = vld [vmem:[%s6215_s0 + $0x380] sm:$0xff]  ;;  %v127_v43 = vld [vmem:[%s6215_s0 + $0x388] sm:$0xff] }
  0xc6   :  { %2980 = vst.msk [vmem:[%s6218_s3 + $0x18] sm:$0xff] %vm2976_vm15, %v2916_v15  ;;  %v2108_v55 = vmul.f32 1.442695, %v2038_v26  ;;  %v980_v56 = vsel %vm978_vm14, %v979_v35, %v977_v41  ;;  %v622_v58 = vmul.f32 %v496_v57, %v496_v57  ;;  %v623_v49 = vmul.f32 %v497_v53, %v497_v53  ;;  %v252_v35 = vld [vmem:[%s6216_s1 + $0x380] sm:$0xff]  ;;  %v253_v22 = vld [vmem:[%s6216_s1 + $0x388] sm:$0xff]  ;;  %v124_v15 = vld [vmem:[%s6215_s0 + $0x370] sm:$0xff] }
  0xc7   :  { %v1906_v61 = vmax.f32 %v4265_v50, 0.0  ;;  %vm4424_vm1 = vcmp.lt.f32.partialorder %v2235_v47, 0.0004427343  ;;  %v1722_v0 = vsub.f32 10.0, %v980_v56  ;;  %v495_v1 = vadd.f32 1e-06, %v369_v54 }
  0xc8   :  { %v2234_v2 = vmul.f32 %v3083_v13, %v2233_v34  ;;  %3090 = vpow2.f32 %v2108_v55  ;;  %v853_v24 = vsel %vm644_vm0, %v623_v49, 0.0  ;;  %v620_v8 = vmul.f32 %v494_v23, %v494_v23  ;;  %v250_v26 = vld [vmem:[%s6216_s1 + $0x370] sm:$0xff]  ;;  %v125_v54 = vld [vmem:[%s6215_s0 + $0x378] sm:$0xff] }
  0xc9   :  { %v3085_v60 = vpop.eup %3084  ;;  %v1785_v38 = vmul.f32 %v1722_v0, %v1659_v44  ;;  %v854_v40 = vadd.f32 %v853_v24, %v622_v58  ;;  %v621_v20 = vmul.f32 %v495_v1, %v495_v1  ;;  %3092 = vrsqrt.f32 %v4428_v3  ;;  %v251_v23 = vld [vmem:[%s6216_s1 + $0x378] sm:$0xff] }
  0xca   :  { %v3087_v5 = vpop.eup %3086  ;;  %v2231_v6 = vmul.f32 0.6931472, %v3085_v60  ;;  %vm2851_vm2 = vcmp.gt.f32.partialorder %v4265_v50, 10.0  ;;  %v1913_v46 = vmax.f32 %v4346_v59, 0.0  ;;  %vm2858_vm3 = vcmp.gt.f32.partialorder %v4346_v59, 10.0 }
  0xcb   :  { %v2292_v4 = vadd.f32 1.0, %v3087_v5  ;;  %v2295_v7 = vmul.f32 -0.5, %v3087_v5  ;;  %v3089_v21 = vpop.eup %3088  ;;  %v4435_v10 = vsub.f32 1.0, %v1785_v38  ;;  %855 = vadd.xlane.f32.xlu1 %v854_v40  ;;  %v849_v11 = vsel %vm644_vm0, %v621_v20, 0.0 }
  0xcc   :  { %v2237_v9 = vsel %vm4424_vm1, %v2234_v2, %v2231_v6  ;;  %v1030_v12 = vmul.f32 %v3089_v21, %v4399_v45  ;;  %v850_v17 = vadd.f32 %v849_v11, %v620_v8  ;;  %v1912_v16 = vmax.f32 %v4375_v18, 0.0 }
  0xcd   :  { %v2788_v29 = vadd.f32 %v2237_v9, %v1906_v61  ;;  %3094 = vlog2.f32 %v2292_v4  ;;  %v2296_v14 = vadd.f32 1.0, %v2295_v7  ;;  %v1974_v27 = vand.u32 2147483647, %v4435_v10 }
  0xce   :  { %v3091_v42 = vpop.eup %3090  ;;  %v1031_v63 = vmul.f32 %v3089_v21, %v1030_v12  ;;  %851 = vadd.xlane.f32.xlu0 %v850_v17  ;;  %vm1036_vm4 = vcmp.eq.f32.partialorder %v4399_v45, inf  ;;  %vm1038_vm5 = vcmp.eq.f32.partialorder %v4399_v45, 0.0  ;;  %3096 = vrsqrt.f32 %v4441_v25 }
  0xcf   :  { %v2914_v13 = vsel %vm2851_vm2, %v4265_v50, %v2788_v29  ;;  %v2298_v50 = vand.u32 2147483647, %v3087_v5  ;;  %v2283_v28 = vadd.f32 1.0, %v3091_v42  ;;  %v2286_v19 = vmul.f32 -0.5, %v3091_v42  ;;  %v3093_v30 = vpop.eup %3092  ;;  %v1664_v29 = vld [vmem:[%s6217_s2 + $0x58] sm:$0xff] }
  0xd0   :  { %2978 = vst.msk [vmem:[%s6218_s3 + $0x8] sm:$0xff] %vm2976_vm15, %v2914_v13  ;;  %v2037_v31 = vsub.f32 0.0, %v1974_v27  ;;  %v1032_v32 = vmul.f32 0.5, %v1031_v63  ;;  %v2289_v37 = vand.u32 2147483647, %v3091_v42  ;;  %v1039_v39 = vand.u32 2147483648, %v4399_v45 }
  0xd1   :  { %3098 = vlog2.f32 %v2283_v28  ;;  %v1018_v57 = vmul.f32 %v3093_v30, %v4428_v3  ;;  %v2297_v48 = vmul.f32 %v3087_v5, %v2296_v14  ;;  %vm2299_vm6 = vcmp.lt.f32.partialorder %v2298_v50, 0.0004427343 }
  0xd2   :  { %v2106_v51 = vmul.f32 1.442695, %v2037_v31  ;;  %v1033_v34 = vsub.f32 1.5, %v1032_v32  ;;  %v2287_v52 = vadd.f32 1.0, %v2286_v19  ;;  %v378_v41 = vsub.f32 %v126_v33, %v252_v35  ;;  %v123_v35 = vld [vmem:[%s6215_s0 + $0x368] sm:$0xff] }
  0xd3   :  { %v3095_v36 = vpop.eup %3094  ;;  %v1019_v53 = vmul.f32 %v3093_v30, %v1018_v57  ;;  %vm2857_vm7 = vcmp.gt.f32.partialorder %v4375_v18, 10.0  ;;  %v379_v56 = vsub.f32 %v127_v43, %v253_v22  ;;  %vm1024_vm8 = vcmp.eq.f32.partialorder %v4428_v3, inf }
  0xd4   :  { %v2294_v47 = vmul.f32 0.6931472, %v3095_v36  ;;  %3100 = vpow2.f32 %v2106_v51  ;;  %v1034_v44 = vmul.f32 %v3089_v21, %v1033_v34  ;;  %v504_v60 = vadd.f32 1e-06, %v378_v41  ;;  %v3097_v62 = vpop.eup %3096  ;;  %v248_v21 = vld [vmem:[%s6216_s1 + $0x360] sm:$0xff]  ;;  %v249_v36 = vld [vmem:[%s6216_s1 + $0x368] sm:$0xff] }
  0xd5   :  { %v1020_v49 = vmul.f32 0.5, %v1019_v53  ;;  %v376_v61 = vsub.f32 %v124_v15, %v250_v26  ;;  %vm4481_vm9 = vcmp.lt.f32.partialorder %v2289_v37, 0.0004427343  ;;  %vm1026_vm10 = vcmp.eq.f32.partialorder %v4428_v3, 0.0  ;;  %v4540_v26 = vpop.xlane.xlu2 %703 }
  0xd6   :  { %v2300_v55 = vsel %vm2299_vm6, %v2297_v48, %v2294_v47  ;;  %v1035_v1 = vmul.f32 %v1034_v44, %v4399_v45  ;;  %v505_v5 = vadd.f32 1e-06, %v379_v56  ;;  %v377_v6 = vsub.f32 %v125_v54, %v251_v23  ;;  %v1663_v47 = vld [vmem:[%s6217_s2 + $0x50] sm:$0xff] }
  0xd7   :  { %v2795_v58 = vadd.f32 %v2300_v55, %v1913_v46  ;;  %v3099_v2 = vpop.eup %3098  ;;  %v2288_v4 = vmul.f32 %v3091_v42, %v2287_v52  ;;  %v1021_v7 = vsub.f32 1.5, %v1020_v49  ;;  %v1006_v38 = vmul.f32 %v3097_v62, %v4441_v25 }
  0xd8   :  { %v2285_v8 = vmul.f32 0.6931472, %v3099_v2  ;;  %v1037_v9 = vsel %vm1036_vm4, %v4399_v45, %v1035_v1  ;;  %v630_v40 = vmul.f32 %v504_v60, %v504_v60  ;;  %v631_v20 = vmul.f32 %v505_v5, %v505_v5 }
  0xd9   :  { %v2921_v24 = vsel %vm2858_vm3, %v4346_v59, %v2795_v58  ;;  %v122_v59 = vld [vmem:[%s6215_s0 + $0x360] sm:$0xff]  ;;  %v1040_v11 = vsel %vm1038_vm5, %v1039_v39, %v1037_v9  ;;  %v1022_v12 = vmul.f32 %v3093_v30, %v1021_v7  ;;  %v1007_v13 = vmul.f32 %v3097_v62, %v1006_v38  ;;  %v4559_v9 = vpop.xlane.xlu0 %695 }
  0xda   :  { %2985 = vst.msk [vmem:[%s6218_s3 + $0x40] sm:$0xff] %vm2976_vm15, %v2921_v24  ;;  %v502_v46 = vadd.f32 1e-06, %v376_v61  ;;  %v3101_v17 = vpop.eup %3100  ;;  %v2291_v42 = vsel %vm4481_vm9, %v2288_v4, %v2285_v8  ;;  %v1727_v14 = vsub.f32 10.0, %v1040_v11  ;;  %v869_v27 = vsel %vm644_vm0, %v631_v20, 0.0  ;;  %v1662_v20 = vld [vmem:[%s6217_s2 + $0x48] sm:$0xff] }
  0xdb   :  { %v503_v63 = vadd.f32 1e-06, %v377_v6  ;;  %v2794_v50 = vadd.f32 %v2291_v42, %v1912_v16  ;;  %v2274_v28 = vadd.f32 1.0, %v3101_v17  ;;  %v2277_v19 = vmul.f32 -0.5, %v3101_v17 }
  0xdc   :  { %v374_v31 = vsub.f32 %v122_v59, %v248_v21  ;;  %v1790_v32 = vmul.f32 %v1727_v14, %v1664_v29  ;;  %v1023_v45 = vmul.f32 %v1022_v12, %v4428_v3  ;;  %v1008_v30 = vmul.f32 0.5, %v1007_v13  ;;  %v133_v14 = vld [vmem:[%s6215_s0 + $0x3b8] sm:$0xff] }
  0xdd   :  { %v870_v33 = vadd.f32 %v869_v27, %v630_v40  ;;  %v2920_v16 = vsel %vm2857_vm7, %v4375_v18, %v2794_v50  ;;  %3102 = vlog2.f32 %v2274_v28  ;;  %v1027_v37 = vand.u32 2147483648, %v4428_v3  ;;  %v259_v27 = vld [vmem:[%s6216_s1 + $0x3b8] sm:$0xff] }
  0xde   :  { %v628_v39 = vmul.f32 %v502_v46, %v502_v46  ;;  %2984 = vst.msk [vmem:[%s6218_s3 + $0x38] sm:$0xff] %vm2976_vm15, %v2920_v16  ;;  %v4529_v57 = vsub.f32 1.0, %v1790_v32  ;;  %v1025_v43 = vsel %vm1024_vm8, %v4428_v3, %v1023_v45  ;;  %v1009_v22 = vsub.f32 1.5, %v1008_v30  ;;  %v4546_v3 = vpop.xlane.xlu1 %699 }
  0xdf   :  { %871 = vadd.xlane.f32.xlu2 %v870_v33  ;;  %v629_v15 = vmul.f32 %v503_v63, %v503_v63  ;;  %v1911_v18 = vmax.f32 %v4435_v10, 0.0  ;;  %v1028_v48 = vsel %vm1026_vm10, %v1027_v37, %v1025_v43  ;;  %v375_v51 = vsub.f32 %v123_v35, %v249_v36  ;;  %v130_v33 = vld [vmem:[%s6215_s0 + $0x3a0] sm:$0xff]  ;;  %v131_v43 = vld [vmem:[%s6215_s0 + $0x3a8] sm:$0xff] }
  0xe0   :  { %v500_v34 = vadd.f32 1e-06, %v374_v31  ;;  %v2278_v52 = vadd.f32 1.0, %v2277_v19  ;;  %v1979_v53 = vand.u32 2147483647, %v4529_v57  ;;  %v1726_v41 = vsub.f32 10.0, %v1028_v48 }
  0xe1   :  { %vm1012_vm11 = vcmp.eq.f32.partialorder %v4441_v25, inf  ;;  %v2280_v54 = vand.u32 2147483647, %v3101_v17  ;;  %v1010_v23 = vmul.f32 %v3097_v62, %v1009_v22  ;;  %v865_v55 = vsel %vm644_vm0, %v629_v15, 0.0  ;;  %v256_v35 = vld [vmem:[%s6216_s1 + $0x3a0] sm:$0xff]  ;;  %v257_v48 = vld [vmem:[%s6216_s1 + $0x3a8] sm:$0xff] }
  0xe2   :  { %v501_v44 = vadd.f32 1e-06, %v375_v51  ;;  %v2042_v56 = vsub.f32 0.0, %v1979_v53  ;;  %v1789_v58 = vmul.f32 %v1726_v41, %v1663_v47  ;;  %v866_v49 = vadd.f32 %v865_v55, %v628_v39 }
  0xe3   :  { %3104 = vrsqrt.f32 %v4540_v26  ;;  %v3103_v60 = vpop.eup %3102  ;;  %v1011_v61 = vmul.f32 %v1010_v23, %v4441_v25  ;;  %v1015_v0 = vand.u32 2147483648, %v4441_v25  ;;  %v626_v1 = vmul.f32 %v500_v34, %v500_v34 }
  0xe4   :  { %v627_v5 = vmul.f32 %v501_v44, %v501_v44  ;;  %v2276_v6 = vmul.f32 0.6931472, %v3103_v60  ;;  %v2279_v2 = vmul.f32 %v3101_v17, %v2278_v52  ;;  %v2116_v62 = vmul.f32 1.442695, %v2042_v56  ;;  %867 = vadd.xlane.f32.xlu1 %v866_v49  ;;  %v258_v17 = vld [vmem:[%s6216_s1 + $0x3b0] sm:$0xff] }
  0xe5   :  { %v4550_v24 = vsub.f32 1.0, %v1789_v58  ;;  %vm2281_vm12 = vcmp.lt.f32.partialorder %v2280_v54, 0.0004427343  ;;  %v1013_v4 = vsel %vm1012_vm11, %v4441_v25, %v1011_v61  ;;  %3106 = vrsqrt.f32 %v4546_v3 }
  0xe6   :  { %v861_v7 = vsel %vm644_vm0, %v627_v5, 0.0  ;;  %v2282_v38 = vsel %vm2281_vm12, %v2279_v2, %v2276_v6  ;;  %3108 = vpow2.f32 %v2116_v62  ;;  %vm1014_vm13 = vcmp.eq.f32.partialorder %v4441_v25, 0.0  ;;  %v132_v25 = vld [vmem:[%s6215_s0 + $0x3b0] sm:$0xff] }
  0xe7   :  { %v1978_v8 = vand.u32 2147483647, %v4550_v24  ;;  %v2793_v40 = vadd.f32 %v2282_v38, %v1911_v18  ;;  %v1016_v59 = vsel %vm1014_vm13, %v1015_v0, %v1013_v4  ;;  %v862_v21 = vadd.f32 %v861_v7, %v626_v1 }
  0xe8   :  { %vm2856_vm14 = vcmp.gt.f32.partialorder %v4435_v10, 10.0  ;;  %v1725_v12 = vsub.f32 10.0, %v1016_v59  ;;  %3110 = vrsqrt.f32 %v4559_v9  ;;  %v1916_v50 = vmax.f32 %v4529_v57, 0.0 }
  0xe9   :  { %v3105_v29 = vpop.eup %3104  ;;  %v2041_v11 = vsub.f32 0.0, %v1978_v8  ;;  %v2919_v13 = vsel %vm2856_vm14, %v4435_v10, %v2793_v40  ;;  %863 = vadd.xlane.f32.xlu0 %v862_v21  ;;  %v1075_v19 = vand.u32 2147483648, %v4540_v26  ;;  %vm1072_vm1 = vcmp.eq.f32.partialorder %v4540_v26, inf }
  0xea   :  { %v1066_v46 = vmul.f32 %v3105_v29, %v4540_v26  ;;  %2983 = vst.msk [vmem:[%s6218_s3 + $0x30] sm:$0xff] %vm2976_vm15, %v2919_v13  ;;  %v1788_v10 = vmul.f32 %v1725_v12, %v1662_v20  ;;  %v384_v30 = vsub.f32 %v132_v25, %v258_v17  ;;  %vm1074_vm2 = vcmp.eq.f32.partialorder %v4540_v26, 0.0 }
  0xeb   :  { %v2114_v42 = vmul.f32 1.442695, %v2041_v11  ;;  %v3107_v63 = vpop.eup %3106  ;;  %v385_v39 = vsub.f32 %v133_v14, %v259_v27  ;;  %v1063_v47 = vand.u32 2147483648, %v4546_v3  ;;  %vm1060_vm3 = vcmp.eq.f32.partialorder %v4546_v3, inf  ;;  %v1667_v11 = vld [vmem:[%s6217_s2 + $0x70] sm:$0xff] }
  0xec   :  { %v1067_v28 = vmul.f32 %v3105_v29, %v1066_v46  ;;  %v3109_v31 = vpop.eup %3108  ;;  %v4586_v32 = vsub.f32 1.0, %v1788_v10  ;;  %v1054_v45 = vmul.f32 %v3107_v63, %v4546_v3  ;;  %v1051_v52 = vand.u32 2147483648, %v4559_v9 }
  0xed   :  { %3112 = vpow2.f32 %v2114_v42  ;;  %v2319_v36 = vadd.f32 1.0, %v3109_v31  ;;  %v2322_v16 = vmul.f32 -0.5, %v3109_v31  ;;  %v2325_v22 = vand.u32 2147483647, %v3109_v31 }
  0xee   :  { %v1068_v37 = vmul.f32 0.5, %v1067_v28  ;;  %v1977_v15 = vand.u32 2147483647, %v4586_v32  ;;  %v1055_v18 = vmul.f32 %v3107_v63, %v1054_v45  ;;  %v3111_v51 = vpop.eup %3110  ;;  %v382_v53 = vsub.f32 %v130_v33, %v256_v35  ;;  %v1666_v33 = vld [vmem:[%s6217_s2 + $0x68] sm:$0xff] }
  0xef   :  { %3114 = vlog2.f32 %v2319_v36  ;;  %vm1062_vm4 = vcmp.eq.f32.partialorder %v4546_v3, 0.0  ;;  %v1042_v23 = vmul.f32 %v3111_v51, %v4559_v9  ;;  %v510_v55 = vadd.f32 1e-06, %v384_v30 }
  0xf0   :  { %v1069_v34 = vsub.f32 1.5, %v1068_v37  ;;  %v2040_v41 = vsub.f32 0.0, %v1977_v15  ;;  %v1056_v54 = vmul.f32 0.5, %v1055_v18  ;;  %v2323_v44 = vadd.f32 1.0, %v2322_v16 }
  0xf1   :  { %v511_v58 = vadd.f32 1e-06, %v385_v39  ;;  %v383_v49 = vsub.f32 %v131_v43, %v257_v48  ;;  %vm4609_vm5 = vcmp.lt.f32.partialorder %v2325_v22, 0.0004427343  ;;  %vm2861_vm6 = vcmp.gt.f32.partialorder %v4529_v57, 10.0 }
  0xf2   :  { %v1070_v56 = vmul.f32 %v3105_v29, %v1069_v34  ;;  %v2112_v0 = vmul.f32 1.442695, %v2040_v41  ;;  %v1057_v1 = vsub.f32 1.5, %v1056_v54  ;;  %v1043_v5 = vmul.f32 %v3111_v51, %v1042_v23  ;;  %v129_v41 = vld [vmem:[%s6215_s0 + $0x398] sm:$0xff] }
  0xf3   :  { %v3113_v60 = vpop.eup %3112  ;;  %vm1048_vm7 = vcmp.eq.f32.partialorder %v4559_v9, inf  ;;  %v636_v4 = vmul.f32 %v510_v55, %v510_v55  ;;  %vm1050_vm8 = vcmp.eq.f32.partialorder %v4559_v9, 0.0  ;;  %v637_v8 = vmul.f32 %v511_v58, %v511_v58  ;;  %v255_v54 = vld [vmem:[%s6216_s1 + $0x398] sm:$0xff] }
  0xf4   :  { %v2310_v6 = vadd.f32 1.0, %v3113_v60  ;;  %v2313_v2 = vmul.f32 -0.5, %v3113_v60  ;;  %v1071_v62 = vmul.f32 %v1070_v56, %v4540_v26  ;;  %3116 = vpow2.f32 %v2112_v0 }
  0xf5   :  { %v1058_v7 = vmul.f32 %v3107_v63, %v1057_v1  ;;  %v1044_v38 = vmul.f32 0.5, %v1043_v5  ;;  %v3115_v40 = vpop.eup %3114  ;;  %v2324_v20 = vmul.f32 %v3109_v31, %v2323_v44  ;;  %v881_v17 = vsel %vm644_vm0, %v637_v8, 0.0  ;;  %v4677_v5 = vpop.xlane.xlu2 %715 }
  0xf6   :  { %3118 = vlog2.f32 %v2310_v6  ;;  %v2314_v59 = vadd.f32 1.0, %v2313_v2  ;;  %v1073_v21 = vsel %vm1072_vm1, %v4540_v26, %v1071_v62  ;;  %v2321_v29 = vmul.f32 0.6931472, %v3115_v40  ;;  %v128_v26 = vld [vmem:[%s6215_s0 + $0x390] sm:$0xff]  ;;  %v4685_v40 = vpop.xlane.xlu1 %711 }
  0xf7   :  { %v1076_v12 = vsel %vm1074_vm2, %v1075_v19, %v1073_v21  ;;  %v1059_v13 = vmul.f32 %v1058_v7, %v4546_v3  ;;  %v1045_v46 = vsub.f32 1.5, %v1044_v38  ;;  %v508_v42 = vadd.f32 1e-06, %v382_v53  ;;  %v254_v19 = vld [vmem:[%s6216_s1 + $0x390] sm:$0xff] }
  0xf8   :  { %v1730_v25 = vsub.f32 10.0, %v1076_v12  ;;  %v509_v10 = vadd.f32 1e-06, %v383_v49  ;;  %v2327_v14 = vsel %vm4609_vm5, %v2324_v20, %v2321_v29  ;;  %v882_v28 = vadd.f32 %v881_v17, %v636_v4 }
  0xf9   :  { %v1061_v27 = vsel %vm1060_vm3, %v4546_v3, %v1059_v13  ;;  %v1046_v63 = vmul.f32 %v3111_v51, %v1045_v46  ;;  %v2798_v31 = vadd.f32 %v2327_v14, %v1916_v50  ;;  %v2316_v45 = vand.u32 2147483647, %v3113_v60 }
  0xfa   :  { %v1793_v30 = vmul.f32 %v1730_v25, %v1667_v11  ;;  %v1064_v35 = vsel %vm1062_vm4, %v1063_v47, %v1061_v27  ;;  %v3117_v36 = vpop.eup %3116  ;;  %v2315_v16 = vmul.f32 %v3113_v60, %v2314_v59  ;;  %883 = vadd.xlane.f32.xlu2 %v882_v28  ;;  %v635_v43 = vmul.f32 %v509_v10, %v509_v10  ;;  %v138_v27 = vld [vmem:[%s6215_s0 + $0x3e0] sm:$0xff] }
  0xfb   :  { %v1729_v37 = vsub.f32 10.0, %v1064_v35  ;;  %v1047_v39 = vmul.f32 %v1046_v63, %v4559_v9  ;;  %v2924_v50 = vsel %vm2861_vm6, %v4529_v57, %v2798_v31  ;;  %v2301_v15 = vadd.f32 1.0, %v3117_v36  ;;  %v264_v63 = vld [vmem:[%s6216_s1 + $0x3e0] sm:$0xff]  ;;  %v139_v31 = vld [vmem:[%s6215_s0 + $0x3e8] sm:$0xff] }
  0xfc   :  { %v3119_v22 = vpop.eup %3118  ;;  %v2304_v18 = vmul.f32 -0.5, %v3117_v36  ;;  %v380_v48 = vsub.f32 %v128_v26, %v254_v19  ;;  %2988 = vst.msk [vmem:[%s6218_s3 + $0x58] sm:$0xff] %vm2976_vm15, %v2924_v50  ;;  %v4653_v47 = vsub.f32 1.0, %v1793_v30  ;;  %v1915_v53 = vmax.f32 %v4550_v24, 0.0 }
  0xfd   :  { %v2312_v3 = vmul.f32 0.6931472, %v3119_v22  ;;  %v1792_v51 = vmul.f32 %v1729_v37, %v1666_v33  ;;  %v1049_v34 = vsel %vm1048_vm7, %v4559_v9, %v1047_v39  ;;  %vm2317_vm9 = vcmp.lt.f32.partialorder %v2316_v45, 0.0004427343  ;;  %v1665_v9 = vld [vmem:[%s6217_s2 + $0x60] sm:$0xff]  ;;  %v265_v45 = vld [vmem:[%s6216_s1 + $0x3e8] sm:$0xff] }
  0xfe   :  { %3120 = vlog2.f32 %v2301_v15  ;;  %v1052_v57 = vsel %vm1050_vm8, %v1051_v52, %v1049_v34  ;;  %vm2860_vm10 = vcmp.gt.f32.partialorder %v4550_v24, 10.0  ;;  %v1982_v55 = vand.u32 2147483647, %v4653_v47 }
  0xff   :  { %v2318_v23 = vsel %vm2317_vm9, %v2315_v16, %v2312_v3  ;;  %v634_v44 = vmul.f32 %v508_v42, %v508_v42  ;;  %v2305_v58 = vadd.f32 1.0, %v2304_v18  ;;  %v4671_v49 = vsub.f32 1.0, %v1792_v51  ;;  %v4693_v42 = vpop.xlane.xlu0 %707 }
 0x100   :  { %v2797_v56 = vadd.f32 %v2318_v23, %v1915_v53  ;;  %v1728_v52 = vsub.f32 10.0, %v1052_v57  ;;  %v2045_v60 = vsub.f32 0.0, %v1982_v55  ;;  %v877_v61 = vsel %vm644_vm0, %v635_v43, 0.0  ;;  %v136_v23 = vld [vmem:[%s6215_s0 + $0x3d0] sm:$0xff] }
 0x101   :  { %v381_v0 = vsub.f32 %v129_v41, %v255_v54  ;;  %v506_v1 = vadd.f32 1e-06, %v380_v48  ;;  %v2307_v2 = vand.u32 2147483647, %v3117_v36  ;;  %v1981_v62 = vand.u32 2147483647, %v4671_v49 }
 0x102   :  { %v2923_v6 = vsel %vm2860_vm10, %v4550_v24, %v2797_v56  ;;  %v2122_v4 = vmul.f32 1.442695, %v2045_v60  ;;  %v1791_v7 = vmul.f32 %v1728_v52, %v1665_v9  ;;  %v878_v38 = vadd.f32 %v877_v61, %v634_v44  ;;  %v262_v9 = vld [vmem:[%s6216_s1 + $0x3d0] sm:$0xff] }
 0x103   :  { %2987 = vst.msk [vmem:[%s6218_s3 + $0x50] sm:$0xff] %vm2976_vm15, %v2923_v6  ;;  %v507_v8 = vadd.f32 1e-06, %v381_v0  ;;  %v2306_v59 = vmul.f32 %v3117_v36, %v2305_v58  ;;  %v2044_v21 = vsub.f32 0.0, %v1981_v62  ;;  %v632_v29 = vmul.f32 %v506_v1, %v506_v1  ;;  %v137_v6 = vld [vmem:[%s6215_s0 + $0x3d8] sm:$0xff] }
 0x104   :  { %v3121_v20 = vpop.eup %3120  ;;  %3122 = vrsqrt.f32 %v4677_v5  ;;  %v4688_v11 = vsub.f32 1.0, %v1791_v7  ;;  %879 = vadd.xlane.f32.xlu1 %v878_v38  ;;  %v1914_v13 = vmax.f32 %v4586_v32, 0.0  ;;  %vm2308_vm11 = vcmp.lt.f32.partialorder %v2307_v2, 0.0004427343  ;;  %v263_v2 = vld [vmem:[%s6216_s1 + $0x3d8] sm:$0xff] }
 0x105   :  { %v2303_v24 = vmul.f32 0.6931472, %v3121_v20  ;;  %3124 = vpow2.f32 %v2122_v4  ;;  %v633_v12 = vmul.f32 %v507_v8, %v507_v8  ;;  %v2120_v46 = vmul.f32 1.442695, %v2044_v21 }
 0x106   :  { %3126 = vrsqrt.f32 %v4685_v40  ;;  %v1980_v17 = vand.u32 2147483647, %v4688_v11  ;;  %vm2859_vm12 = vcmp.gt.f32.partialorder %v4586_v32, 10.0  ;;  %v1919_v28 = vmax.f32 %v4653_v47, 0.0 }
 0x107   :  { %v2309_v25 = vsel %vm2308_vm11, %v2306_v59, %v2303_v24  ;;  %3128 = vpow2.f32 %v2120_v46  ;;  %v873_v14 = vsel %vm644_vm0, %v633_v12, 0.0  ;;  %v1918_v35 = vmax.f32 %v4671_v49, 0.0 }
 0x108   :  { %v2796_v10 = vadd.f32 %v2309_v25, %v1914_v13  ;;  %v2043_v26 = vsub.f32 0.0, %v1980_v17  ;;  %v874_v19 = vadd.f32 %v873_v14, %v632_v29  ;;  %v1111_v36 = vand.u32 2147483648, %v4677_v5 }
 0x109   :  { %3130 = vrsqrt.f32 %v4693_v42  ;;  %v1917_v37 = vmax.f32 %v4688_v11, 0.0  ;;  %v390_v22 = vsub.f32 %v138_v27, %v264_v63  ;;  %v391_v48 = vsub.f32 %v139_v31, %v265_v45 }
 0x10a   :  { %v3123_v30 = vpop.eup %3122  ;;  %v2922_v33 = vsel %vm2859_vm12, %v4586_v32, %v2796_v10  ;;  %v2118_v39 = vmul.f32 1.442695, %v2043_v26  ;;  %875 = vadd.xlane.f32.xlu0 %v874_v19  ;;  %vm1108_vm13 = vcmp.eq.f32.partialorder %v4677_v5, inf  ;;  %v1099_v41 = vand.u32 2147483648, %v4685_v40 }
 0x10b   :  { %v3125_v16 = vpop.eup %3124  ;;  %2986 = vst.msk [vmem:[%s6218_s3 + $0x48] sm:$0xff] %vm2976_vm15, %v2922_v33  ;;  %v1102_v43 = vmul.f32 %v3123_v30, %v4677_v5  ;;  %v516_v34 = vadd.f32 1e-06, %v390_v22  ;;  %v517_v54 = vadd.f32 1e-06, %v391_v48  ;;  %vm1110_vm14 = vcmp.eq.f32.partialorder %v4677_v5, 0.0 }
 0x10c   :  { %v3127_v32 = vpop.eup %3126  ;;  %v2346_v50 = vadd.f32 1.0, %v3125_v16  ;;  %v2349_v15 = vmul.f32 -0.5, %v3125_v16  ;;  %v2352_v18 = vand.u32 2147483647, %v3125_v16  ;;  %3132 = vpow2.f32 %v2118_v39 }
 0x10d   :  { %v1103_v3 = vmul.f32 %v3123_v30, %v1102_v43  ;;  %v1090_v51 = vmul.f32 %v3127_v32, %v4685_v40  ;;  %v3129_v53 = vpop.eup %3128  ;;  %v642_v0 = vmul.f32 %v516_v34, %v516_v34  ;;  %v643_v1 = vmul.f32 %v517_v54, %v517_v54 }
 0x10e   :  { %3134 = vlog2.f32 %v2346_v50  ;;  %v2350_v57 = vadd.f32 1.0, %v2349_v15  ;;  %v2337_v55 = vadd.f32 1.0, %v3129_v53  ;;  %v2340_v44 = vmul.f32 -0.5, %v3129_v53  ;;  %v134_v50 = vld [vmem:[%s6215_s0 + $0x3c0] sm:$0xff] }
 0x10f   :  { %v2343_v56 = vand.u32 2147483647, %v3129_v53  ;;  %v1104_v58 = vmul.f32 0.5, %v1103_v3  ;;  %v4730_v52 = vpop.eup %3130  ;;  %vm4732_vm1 = vcmp.lt.f32.partialorder %v2352_v18, 0.0004427343  ;;  %v1091_v61 = vmul.f32 %v3127_v32, %v1090_v51  ;;  %v1670_v3 = vld [vmem:[%s6217_s2 + $0x88] sm:$0xff] }
 0x110   :  { %v2351_v62 = vmul.f32 %v3125_v16, %v2350_v57  ;;  %vm2864_vm2 = vcmp.gt.f32.partialorder %v4653_v47, 10.0  ;;  %3136 = vlog2.f32 %v2337_v55  ;;  %v2341_v4 = vadd.f32 1.0, %v2340_v44 }
 0x111   :  { %v1105_v7 = vsub.f32 1.5, %v1104_v58  ;;  %v1092_v38 = vmul.f32 0.5, %v1091_v61  ;;  %vm1096_vm3 = vcmp.eq.f32.partialorder %v4685_v40, inf  ;;  %v1078_v8 = vmul.f32 %v4730_v52, %v4693_v42 }
 0x112   :  { %v893_v20 = vsel %vm644_vm0, %v643_v1, 0.0  ;;  %v388_v59 = vsub.f32 %v136_v23, %v262_v9  ;;  %v3133_v21 = vpop.eup %3132  ;;  %vm4747_vm4 = vcmp.lt.f32.partialorder %v2343_v56, 0.0004427343  ;;  %vm1098_vm5 = vcmp.eq.f32.partialorder %v4685_v40, 0.0  ;;  %v261_v23 = vld [vmem:[%s6216_s1 + $0x3c8] sm:$0xff] }
 0x113   :  { %v1106_v24 = vmul.f32 %v3123_v30, %v1105_v7  ;;  %v894_v12 = vadd.f32 %v893_v20, %v642_v0  ;;  %v389_v13 = vsub.f32 %v137_v6, %v263_v2  ;;  %v2342_v25 = vmul.f32 %v3129_v53, %v2341_v4  ;;  %v4804_v2 = vpop.xlane.xlu2 %727 }
 0x114   :  { %v3135_v46 = vpop.eup %3134  ;;  %vm2863_vm6 = vcmp.gt.f32.partialorder %v4671_v49, 10.0  ;;  %v2328_v17 = vadd.f32 1.0, %v3133_v21  ;;  %v2331_v10 = vmul.f32 -0.5, %v3133_v21  ;;  %v1093_v14 = vsub.f32 1.5, %v1092_v38 }
 0x115   :  { %v2348_v27 = vmul.f32 0.6931472, %v3135_v46  ;;  %v1107_v63 = vmul.f32 %v1106_v24, %v4677_v5  ;;  %v1079_v26 = vmul.f32 %v4730_v52, %v1078_v8  ;;  %895 = vadd.xlane.f32.xlu2 %v894_v12  ;;  %v514_v19 = vadd.f32 1e-06, %v388_v59  ;;  %v4819_v8 = vpop.xlane.xlu1 %723 }
 0x116   :  { %3138 = vlog2.f32 %v2328_v17  ;;  %v2332_v31 = vadd.f32 1.0, %v2331_v10  ;;  %v2334_v45 = vand.u32 2147483647, %v3133_v21  ;;  %v1094_v30 = vmul.f32 %v3127_v32, %v1093_v14  ;;  %v3137_v33 = vpop.eup %3136  ;;  %v260_v32 = vld [vmem:[%s6216_s1 + $0x3c0] sm:$0xff] }
 0x117   :  { %v2354_v16 = vsel %vm4732_vm1, %v2351_v62, %v2348_v27  ;;  %v1109_v39 = vsel %vm1108_vm13, %v4677_v5, %v1107_v63  ;;  %v1080_v43 = vmul.f32 0.5, %v1079_v26  ;;  %vm1084_vm7 = vcmp.eq.f32.partialorder %v4693_v42, inf }
 0x118   :  { %v515_v22 = vadd.f32 1e-06, %v389_v13  ;;  %v2801_v15 = vadd.f32 %v2354_v16, %v1919_v28  ;;  %v2339_v18 = vmul.f32 0.6931472, %v3137_v33  ;;  %v2333_v48 = vmul.f32 %v3133_v21, %v2332_v31  ;;  %v135_v28 = vld [vmem:[%s6215_s0 + $0x3c8] sm:$0xff] }
 0x119   :  { %v1112_v51 = vsel %vm1110_vm14, %v1111_v36, %v1109_v39  ;;  %vm1086_vm8 = vcmp.eq.f32.partialorder %v4693_v42, 0.0  ;;  %v1095_v53 = vmul.f32 %v1094_v30, %v4685_v40  ;;  %v1081_v57 = vsub.f32 1.5, %v1080_v43 }
 0x11a   :  { %v1733_v34 = vsub.f32 10.0, %v1112_v51  ;;  %v640_v54 = vmul.f32 %v514_v19, %v514_v19  ;;  %v2927_v5 = vsel %vm2864_vm2, %v4653_v47, %v2801_v15  ;;  %v2345_v36 = vsel %vm4747_vm4, %v2342_v25, %v2339_v18  ;;  %v1668_v25 = vld [vmem:[%s6217_s2 + $0x78] sm:$0xff]  ;;  %v4843_v19 = vpop.xlane.xlu0 %719 }
 0x11b   :  { %v641_v55 = vmul.f32 %v515_v22, %v515_v22  ;;  %v386_v44 = vsub.f32 %v134_v50, %v260_v32  ;;  %2991 = vst.msk [vmem:[%s6218_s3 + $0x70] sm:$0xff] %vm2976_vm15, %v2927_v5  ;;  %v2800_v56 = vadd.f32 %v2345_v36, %v1918_v35  ;;  %v1097_v9 = vsel %vm1096_vm3, %v4685_v40, %v1095_v53  ;;  %v4849_v30 = vpop.xlane.xlu2 %739 }
 0x11c   :  { %v1796_v58 = vmul.f32 %v1733_v34, %v1670_v3  ;;  %v1082_v47 = vmul.f32 %v4730_v52, %v1081_v57  ;;  %v3139_v60 = vpop.eup %3138  ;;  %v1100_v61 = vsel %vm1098_vm5, %v1099_v41, %v1097_v9  ;;  %v387_v1 = vsub.f32 %v135_v28, %v261_v23  ;;  %v1669_v52 = vld [vmem:[%s6217_s2 + $0x80] sm:$0xff] }
 0x11d   :  { %v889_v0 = vsel %vm644_vm0, %v641_v55, 0.0  ;;  %v512_v6 = vadd.f32 1e-06, %v386_v44  ;;  %v2926_v35 = vsel %vm2863_vm6, %v4671_v49, %v2800_v56  ;;  %v2330_v62 = vmul.f32 0.6931472, %v3139_v60  ;;  %v4853_v43 = vpop.xlane.xlu1 %735 }
 0x11e   :  { %v4809_v4 = vsub.f32 1.0, %v1796_v58  ;;  %v1732_v7 = vsub.f32 10.0, %v1100_v61  ;;  %2990 = vst.msk [vmem:[%s6218_s3 + $0x68] sm:$0xff] %vm2976_vm15, %v2926_v35  ;;  %vm2335_vm9 = vcmp.lt.f32.partialorder %v2334_v45, 0.0004427343  ;;  %v1083_v40 = vmul.f32 %v1082_v47, %v4693_v42 }
 0x11f   :  { %v890_v41 = vadd.f32 %v889_v0, %v640_v54  ;;  %v513_v38 = vadd.f32 1e-06, %v387_v1  ;;  %v2336_v49 = vsel %vm2335_vm9, %v2333_v48, %v2330_v62  ;;  %v1087_v59 = vand.u32 2147483648, %v4693_v42 }
 0x120   :  { %v1985_v20 = vand.u32 2147483647, %v4809_v4  ;;  %v638_v21 = vmul.f32 %v512_v6, %v512_v6  ;;  %v2799_v29 = vadd.f32 %v2336_v49, %v1917_v37  ;;  %v1795_v24 = vmul.f32 %v1732_v7, %v1669_v52 }
 0x121   :  { %v1085_v12 = vsel %vm1084_vm7, %v4693_v42, %v1083_v40  ;;  %891 = vadd.xlane.f32.xlu1 %v890_v41  ;;  %v639_v13 = vmul.f32 %v513_v38, %v513_v38  ;;  %vm2862_vm10 = vcmp.gt.f32.partialorder %v4688_v11, 10.0  ;;  %3140 = vrsqrt.f32 %v4804_v2 }
 0x122   :  { %v2048_v46 = vsub.f32 0.0, %v1985_v20  ;;  %v1088_v17 = vsel %vm1086_vm8, %v1087_v59, %v1085_v12  ;;  %v2925_v37 = vsel %vm2862_vm10, %v4688_v11, %v2799_v29  ;;  %v4836_v10 = vsub.f32 1.0, %v1795_v24  ;;  %v4869_v44 = vpop.xlane.xlu0 %731 }
 0x123   :  { %v1731_v14 = vsub.f32 10.0, %v1088_v17  ;;  %v885_v27 = vsel %vm644_vm0, %v639_v13, 0.0  ;;  %2989 = vst.msk [vmem:[%s6218_s3 + $0x60] sm:$0xff] %vm2976_vm15, %v2925_v37  ;;  %v1922_v50 = vmax.f32 %v4809_v4, 0.0  ;;  %v1147_v3 = vand.u32 2147483648, %v4804_v2  ;;  %v4887_v49 = vpop.xlane.xlu2 %751 }
 0x124   :  { %v2128_v63 = vmul.f32 1.442695, %v2048_v46  ;;  %v886_v26 = vadd.f32 %v885_v27, %v638_v21  ;;  %v1984_v42 = vand.u32 2147483647, %v4836_v10  ;;  %v1921_v18 = vmax.f32 %v4836_v10, 0.0 }
 0x125   :  { %v1794_v31 = vmul.f32 %v1731_v14, %v1668_v25  ;;  %vm1144_vm0 = vcmp.eq.f32.partialorder %v4804_v2, inf  ;;  %vm1146_vm11 = vcmp.eq.f32.partialorder %v4804_v2, 0.0  ;;  %v1135_v36 = vand.u32 2147483648, %v4819_v8 }
 0x126   :  { %3142 = vpow2.f32 %v2128_v63  ;;  %887 = vadd.xlane.f32.xlu0 %v886_v26  ;;  %v2047_v11 = vsub.f32 0.0, %v1984_v42  ;;  %v1123_v55 = vand.u32 2147483648, %v4843_v19  ;;  %v1183_v9 = vand.u32 2147483648, %v4849_v30 }
 0x127   :  { %v4846_v45 = vsub.f32 1.0, %v1794_v31  ;;  %3144 = vrsqrt.f32 %v4819_v8  ;;  %v3141_v33 = vpop.eup %3140  ;;  %vm2867_vm13 = vcmp.gt.f32.partialorder %v4809_v4, 10.0  ;;  %vm1132_vm14 = vcmp.eq.f32.partialorder %v4819_v8, inf }
 0x128   :  { %3146 = vrsqrt.f32 %v4843_v19  ;;  %v2126_v16 = vmul.f32 1.442695, %v2047_v11  ;;  %v1138_v22 = vmul.f32 %v3141_v33, %v4804_v2  ;;  %vm1120_vm1 = vcmp.eq.f32.partialorder %v4843_v19, inf }
 0x129   :  { %v1983_v39 = vand.u32 2147483647, %v4846_v45  ;;  %3148 = vrsqrt.f32 %v4849_v30  ;;  %v1920_v56 = vmax.f32 %v4846_v45, 0.0  ;;  %vm1134_vm2 = vcmp.eq.f32.partialorder %v4819_v8, 0.0 }
 0x12a   :  { %3150 = vpow2.f32 %v2126_v16  ;;  %v1139_v48 = vmul.f32 %v3141_v33, %v1138_v22  ;;  %vm1122_vm3 = vcmp.eq.f32.partialorder %v4843_v19, 0.0  ;;  %vm2866_vm5 = vcmp.gt.f32.partialorder %v4836_v10, 10.0 }
 0x12b   :  { %v2046_v32 = vsub.f32 0.0, %v1983_v39  ;;  %3152 = vrsqrt.f32 %v4853_v43  ;;  %v1673_v39 = vld [vmem:[%s6217_s2 + $0xa0] sm:$0xff]  ;;  %vm1180_vm6 = vcmp.eq.f32.partialorder %v4849_v30, inf  ;;  %vm1182_vm7 = vcmp.eq.f32.partialorder %v4849_v30, 0.0 }
 0x12c   :  { %v3143_v15 = vpop.eup %3142  ;;  %v1140_v23 = vmul.f32 0.5, %v1139_v48  ;;  %vm1168_vm8 = vcmp.eq.f32.partialorder %v4853_v43, inf  ;;  %vm2865_vm10 = vcmp.gt.f32.partialorder %v4846_v45, 10.0 }
 0x12d   :  { %v4861_v51 = vpop.eup %3144  ;;  %v2373_v34 = vadd.f32 1.0, %v3143_v15  ;;  %v2376_v53 = vmul.f32 -0.5, %v3143_v15  ;;  %v2379_v57 = vand.u32 2147483647, %v3143_v15  ;;  %v2124_v54 = vmul.f32 1.442695, %v2046_v32 }
 0x12e   :  { %v3147_v28 = vpop.eup %3146  ;;  %v1126_v5 = vmul.f32 %v4861_v51, %v4819_v8  ;;  %v1141_v61 = vsub.f32 1.5, %v1140_v23 }
 0x12f   :  { %3154 = vlog2.f32 %v2373_v34  ;;  %v1114_v58 = vmul.f32 %v3147_v28, %v4843_v19  ;;  %v4874_v47 = vpop.eup %3148  ;;  %v2377_v60 = vadd.f32 1.0, %v2376_v53  ;;  %vm4877_vm12 = vcmp.lt.f32.partialorder %v2379_v57, 0.0004427343 }
 0x130   :  { %3156 = vpow2.f32 %v2124_v54  ;;  %v1127_v0 = vmul.f32 %v4861_v51, %v1126_v5  ;;  %v3151_v1 = vpop.eup %3150  ;;  %v1174_v62 = vmul.f32 %v4874_v47, %v4849_v30  ;;  %v1142_v38 = vmul.f32 %v3141_v33, %v1141_v61 }
 0x131   :  { %v1115_v35 = vmul.f32 %v3147_v28, %v1114_v58  ;;  %3158 = vrsqrt.f32 %v4869_v44  ;;  %v4884_v52 = vpop.eup %3152  ;;  %v2364_v7 = vadd.f32 1.0, %v3151_v1  ;;  %v2367_v40 = vmul.f32 -0.5, %v3151_v1 }
 0x132   :  { %v2370_v41 = vand.u32 2147483647, %v3151_v1  ;;  %v1128_v20 = vmul.f32 0.5, %v1127_v0  ;;  %v1175_v21 = vmul.f32 %v4874_v47, %v1174_v62  ;;  %v1162_v29 = vmul.f32 %v4884_v52, %v4853_v43 }
 0x133   :  { %v1116_v59 = vmul.f32 0.5, %v1115_v35  ;;  %v2378_v24 = vmul.f32 %v3143_v15, %v2377_v60  ;;  %3160 = vlog2.f32 %v2364_v7  ;;  %v2368_v12 = vadd.f32 1.0, %v2367_v40 }
 0x134   :  { %v1143_v13 = vmul.f32 %v1142_v38, %v4804_v2  ;;  %vm4897_vm4 = vcmp.lt.f32.partialorder %v2370_v41, 0.0004427343  ;;  %v1129_v17 = vsub.f32 1.5, %v1128_v20  ;;  %3162 = vrsqrt.f32 %v4887_v49 }
 0x135   :  { %v3155_v46 = vpop.eup %3154  ;;  %v1117_v37 = vsub.f32 1.5, %v1116_v59  ;;  %v1176_v26 = vmul.f32 0.5, %v1175_v21  ;;  %v1163_v42 = vmul.f32 %v4884_v52, %v1162_v29  ;;  %v2369_v11 = vmul.f32 %v3151_v1, %v2368_v12 }
 0x136   :  { %v3157_v14 = vpop.eup %3156  ;;  %v2375_v27 = vmul.f32 0.6931472, %v3155_v46  ;;  %v1145_v63 = vsel %vm1144_vm0, %v4804_v2, %v1143_v13  ;;  %v1130_v48 = vmul.f32 %v4861_v51, %v1129_v17  ;;  %vm1170_vm0 = vcmp.eq.f32.partialorder %v4853_v43, 0.0 }
 0x137   :  { %v4906_v31 = vpop.eup %3158  ;;  %v2355_v33 = vadd.f32 1.0, %v3157_v14  ;;  %v2358_v16 = vmul.f32 -0.5, %v3157_v14  ;;  %v1148_v22 = vsel %vm1146_vm11, %v1147_v3, %v1145_v63  ;;  %v1118_v34 = vmul.f32 %v3147_v28, %v1117_v37 }
 0x138   :  { %v2381_v32 = vsel %vm4877_vm12, %v2378_v24, %v2375_v27  ;;  %v1736_v15 = vsub.f32 10.0, %v1148_v22  ;;  %v2361_v54 = vand.u32 2147483647, %v3157_v14  ;;  %v1131_v3 = vmul.f32 %v1130_v48, %v4819_v8 }
 0x139   :  { %v2804_v53 = vadd.f32 %v2381_v32, %v1922_v50  ;;  %3164 = vlog2.f32 %v2355_v33  ;;  %v2359_v57 = vadd.f32 1.0, %v2358_v16  ;;  %v3161_v23 = vpop.eup %3160  ;;  %v1119_v5 = vmul.f32 %v1118_v34, %v4843_v19 }
 0x13a   :  { %v1799_v2 = vmul.f32 %v1736_v15, %v1673_v39  ;;  %v1177_v58 = vsub.f32 1.5, %v1176_v26  ;;  %v4925_v60 = vpop.eup %3162  ;;  %v2366_v28 = vmul.f32 0.6931472, %v3161_v23  ;;  %v1164_v50 = vmul.f32 0.5, %v1163_v42 }
 0x13b   :  { %v2930_v51 = vsel %vm2867_vm13, %v4809_v4, %v2804_v53  ;;  %v1150_v61 = vmul.f32 %v4906_v31, %v4869_v44  ;;  %v1133_v1 = vsel %vm1132_vm14, %v4819_v8, %v1131_v3  ;;  %v1121_v4 = vsel %vm1120_vm1, %v4843_v19, %v1119_v5  ;;  %v1672_v8 = vld [vmem:[%s6217_s2 + $0x98] sm:$0xff]  ;;  %v1671_v19 = vld [vmem:[%s6217_s2 + $0x90] sm:$0xff] }
 0x13c   :  { %2994 = vst.msk [vmem:[%s6218_s3 + $0x88] sm:$0xff] %vm2976_vm15, %v2930_v51  ;;  %v4937_v0 = vsub.f32 1.0, %v1799_v2  ;;  %v1178_v6 = vmul.f32 %v4874_v47, %v1177_v58  ;;  %v2372_v35 = vsel %vm4897_vm4, %v2369_v11, %v2366_v28  ;;  %v1136_v62 = vsel %vm1134_vm2, %v1135_v36, %v1133_v1  ;;  %v1676_v11 = vld [vmem:[%s6217_s2 + $0xb8] sm:$0xff]  ;;  %v1675_v2 = vld [vmem:[%s6217_s2 + $0xb0] sm:$0xff] }
 0x13d   :  { %v1124_v7 = vsel %vm1122_vm3, %v1123_v55, %v1121_v4  ;;  %v1165_v40 = vsub.f32 1.5, %v1164_v50  ;;  %v2803_v41 = vadd.f32 %v2372_v35, %v1921_v18  ;;  %v2360_v38 = vmul.f32 %v3157_v14, %v2359_v57 }
 0x13e   :  { %vm4958_vm9 = vcmp.lt.f32.partialorder %v2361_v54, 0.0004427343  ;;  %v1988_v20 = vand.u32 2147483647, %v4937_v0  ;;  %v1735_v55 = vsub.f32 10.0, %v1136_v62  ;;  %v1734_v59 = vsub.f32 10.0, %v1124_v7 }
 0x13f   :  { %v3165_v36 = vpop.eup %3164  ;;  %v1179_v18 = vmul.f32 %v1178_v6, %v4849_v30  ;;  %v1166_v21 = vmul.f32 %v4884_v52, %v1165_v40  ;;  %v2929_v29 = vsel %vm2866_vm5, %v4836_v10, %v2803_v41  ;;  %v1151_v13 = vmul.f32 %v4906_v31, %v1150_v61  ;;  %v1674_v40 = vld [vmem:[%s6217_s2 + $0xa8] sm:$0xff] }
 0x140   :  { %v2357_v24 = vmul.f32 0.6931472, %v3165_v36  ;;  %v2051_v12 = vsub.f32 0.0, %v1988_v20  ;;  %2993 = vst.msk [vmem:[%s6218_s3 + $0x80] sm:$0xff] %vm2976_vm15, %v2929_v29  ;;  %v1798_v46 = vmul.f32 %v1735_v55, %v1672_v8  ;;  %v1797_v25 = vmul.f32 %v1734_v59, %v1671_v19 }
 0x141   :  { %v1181_v17 = vsel %vm1180_vm6, %v4849_v30, %v1179_v18  ;;  %v1167_v52 = vmul.f32 %v1166_v21, %v4853_v43  ;;  %v1152_v27 = vmul.f32 0.5, %v1151_v13  ;;  %v1171_v39 = vand.u32 2147483648, %v4853_v43 }
 0x142   :  { %v2363_v10 = vsel %vm4958_vm9, %v2360_v38, %v2357_v24  ;;  %v2134_v37 = vmul.f32 1.442695, %v2051_v12  ;;  %v1184_v14 = vsel %vm1182_vm7, %v1183_v9, %v1181_v17  ;;  %v4991_v26 = vsub.f32 1.0, %v1798_v46  ;;  %v5031_v38 = vpop.xlane.xlu1 %747 }
 0x143   :  { %v2802_v63 = vadd.f32 %v2363_v10, %v1920_v56  ;;  %v4993_v42 = vsub.f32 1.0, %v1797_v25  ;;  %v1739_v33 = vsub.f32 10.0, %v1184_v14  ;;  %v1169_v30 = vsel %vm1168_vm8, %v4853_v43, %v1167_v52 }
 0x144   :  { %3166 = vpow2.f32 %v2134_v37  ;;  %v1153_v9 = vsub.f32 1.5, %v1152_v27  ;;  %v1987_v56 = vand.u32 2147483647, %v4991_v26  ;;  %v1210_v22 = vmul.f32 %v4925_v60, %v4887_v49 }
 0x145   :  { %v2928_v16 = vsel %vm2865_vm10, %v4846_v45, %v2802_v63  ;;  %v1986_v32 = vand.u32 2147483647, %v4993_v42  ;;  %v1802_v15 = vmul.f32 %v1739_v33, %v1676_v11  ;;  %v1172_v34 = vsel %vm1170_vm0, %v1171_v39, %v1169_v30 }
 0x146   :  { %2992 = vst.msk [vmem:[%s6218_s3 + $0x78] sm:$0xff] %vm2976_vm15, %v2928_v16  ;;  %v2050_v48 = vsub.f32 0.0, %v1987_v56  ;;  %v1154_v45 = vmul.f32 %v4906_v31, %v1153_v9  ;;  %v1738_v54 = vsub.f32 10.0, %v1172_v34  ;;  %v1211_v5 = vmul.f32 %v4925_v60, %v1210_v22 }
 0x147   :  { %v2049_v53 = vsub.f32 0.0, %v1986_v32  ;;  %v5014_v57 = vsub.f32 1.0, %v1802_v15  ;;  %vm1156_vm11 = vcmp.eq.f32.partialorder %v4869_v44, inf  ;;  %vm1158_vm12 = vcmp.eq.f32.partialorder %v4869_v44, 0.0  ;;  %v5047_v15 = vpop.xlane.xlu0 %743 }
 0x148   :  { %v2132_v23 = vmul.f32 1.442695, %v2050_v48  ;;  %v1155_v3 = vmul.f32 %v1154_v45, %v4869_v44  ;;  %v1159_v50 = vand.u32 2147483648, %v4869_v44  ;;  %v1801_v1 = vmul.f32 %v1738_v54, %v1675_v2 }
 0x149   :  { %v2130_v51 = vmul.f32 1.442695, %v2049_v53  ;;  %v1991_v43 = vand.u32 2147483647, %v5014_v57  ;;  %v1212_v35 = vmul.f32 0.5, %v1211_v5  ;;  %v1925_v47 = vmax.f32 %v4937_v0, 0.0 }
 0x14a   :  { %v3167_v58 = vpop.eup %3166  ;;  %3168 = vpow2.f32 %v2132_v23  ;;  %v1157_v4 = vsel %vm1156_vm11, %v4869_v44, %v1155_v3  ;;  %v5026_v7 = vsub.f32 1.0, %v1801_v1  ;;  %v1924_v20 = vmax.f32 %v4991_v26, 0.0 }
 0x14b   :  { %v2400_v31 = vadd.f32 1.0, %v3167_v58  ;;  %v2403_v28 = vmul.f32 -0.5, %v3167_v58  ;;  %3170 = vpow2.f32 %v2130_v51  ;;  %v2054_v61 = vsub.f32 0.0, %v1991_v43 }
 0x14c   :  { %v1160_v6 = vsel %vm1158_vm12, %v1159_v50, %v1157_v4  ;;  %v2406_v19 = vand.u32 2147483647, %v3167_v58  ;;  %vm2870_vm13 = vcmp.gt.f32.partialorder %v4937_v0, 10.0  ;;  %v1990_v44 = vand.u32 2147483647, %v5026_v7 }
 0x14d   :  { %3172 = vlog2.f32 %v2400_v31  ;;  %v2140_v62 = vmul.f32 1.442695, %v2054_v61  ;;  %v1737_v41 = vsub.f32 10.0, %v1160_v6  ;;  %v2404_v8 = vadd.f32 1.0, %v2403_v28  ;;  %v5068_v28 = vpop.xlane.xlu2 %763 }
 0x14e   :  { %v1923_v55 = vmax.f32 %v4993_v42, 0.0  ;;  %v1213_v18 = vsub.f32 1.5, %v1212_v35  ;;  %v2053_v12 = vsub.f32 0.0, %v1990_v44  ;;  %vm1216_vm14 = vcmp.eq.f32.partialorder %v4887_v49, inf  ;;  %v1679_v35 = vld [vmem:[%s6217_s2 + $0xd0] sm:$0xff] }
 0x14f   :  { %3174 = vpow2.f32 %v2140_v62  ;;  %v1800_v59 = vmul.f32 %v1737_v41, %v1674_v40  ;;  %vm1218_vm1 = vcmp.eq.f32.partialorder %v4887_v49, 0.0  ;;  %v2405_v10 = vmul.f32 %v3167_v58, %v2404_v8 }
 0x150   :  { %v3169_v36 = vpop.eup %3168  ;;  %3176 = vrsqrt.f32 %v5031_v38  ;;  %vm2407_vm2 = vcmp.lt.f32.partialorder %v2406_v19, 0.0004427343  ;;  %v2138_v14 = vmul.f32 1.442695, %v2053_v12  ;;  %v1214_v27 = vmul.f32 %v4925_v60, %v1213_v18 }
 0x151   :  { %v3171_v21 = vpop.eup %3170  ;;  %v2391_v29 = vadd.f32 1.0, %v3169_v36  ;;  %v2394_v24 = vmul.f32 -0.5, %v3169_v36  ;;  %v5040_v17 = vsub.f32 1.0, %v1800_v59  ;;  %v2397_v37 = vand.u32 2147483647, %v3169_v36 }
 0x152   :  { %v2382_v46 = vadd.f32 1.0, %v3171_v21  ;;  %v2385_v25 = vmul.f32 -0.5, %v3171_v21  ;;  %v1928_v30 = vmax.f32 %v5014_v57, 0.0  ;;  %vm2869_vm3 = vcmp.gt.f32.partialorder %v4991_v26, 10.0 }
 0x153   :  { %v3173_v13 = vpop.eup %3172  ;;  %3178 = vlog2.f32 %v2391_v29  ;;  %v2395_v33 = vadd.f32 1.0, %v2394_v24  ;;  %v1989_v9 = vand.u32 2147483647, %v5040_v17  ;;  %v2388_v48 = vand.u32 2147483647, %v3171_v21 }
 0x154   :  { %v2402_v52 = vmul.f32 0.6931472, %v3173_v13  ;;  %3180 = vlog2.f32 %v2382_v46  ;;  %v2386_v39 = vadd.f32 1.0, %v2385_v25  ;;  %vm2868_vm4 = vcmp.gt.f32.partialorder %v4993_v42, 10.0 }
 0x155   :  { %v3175_v63 = vpop.eup %3174  ;;  %3182 = vpow2.f32 %v2138_v14  ;;  %v2052_v60 = vsub.f32 0.0, %v1989_v9  ;;  %v1219_v34 = vand.u32 2147483648, %v4887_v49  ;;  %vm5054_vm5 = vcmp.lt.f32.partialorder %v2397_v37, 0.0004427343 }
 0x156   :  { %v2408_v11 = vsel %vm2407_vm2, %v2405_v10, %v2402_v52  ;;  %v3177_v16 = vpop.eup %3176  ;;  %v2427_v22 = vadd.f32 1.0, %v3175_v63  ;;  %v2430_v32 = vmul.f32 -0.5, %v3175_v63  ;;  %v1215_v54 = vmul.f32 %v1214_v27, %v4887_v49 }
 0x157   :  { %v2807_v56 = vadd.f32 %v2408_v11, %v1925_v47  ;;  %v2396_v2 = vmul.f32 %v3169_v36, %v2395_v33  ;;  %v2136_v3 = vmul.f32 1.442695, %v2052_v60  ;;  %v1198_v5 = vmul.f32 %v3177_v16, %v5031_v38 }
 0x158   :  { %3184 = vlog2.f32 %v2427_v22  ;;  %v2387_v51 = vmul.f32 %v3171_v21, %v2386_v39  ;;  %v2431_v43 = vadd.f32 1.0, %v2430_v32  ;;  %v1217_v31 = vsel %vm1216_vm14, %v4887_v49, %v1215_v54  ;;  %v5114_v22 = vpop.xlane.xlu1 %759  ;;  %v1678_v54 = vld [vmem:[%s6217_s2 + $0xc8] sm:$0xff] }
 0x159   :  { %v2933_v45 = vsel %vm2870_vm13, %v4937_v0, %v2807_v56  ;;  %v3179_v23 = vpop.eup %3178  ;;  %3186 = vrsqrt.f32 %v5047_v15  ;;  %v1220_v61 = vsel %vm1218_vm1, %v1219_v34, %v1217_v31  ;;  %v1199_v1 = vmul.f32 %v3177_v16, %v1198_v5 }
 0x15a   :  { %2997 = vst.msk [vmem:[%s6218_s3 + $0xa0] sm:$0xff] %vm2976_vm15, %v2933_v45  ;;  %v3181_v0 = vpop.eup %3180  ;;  %v2393_v58 = vmul.f32 0.6931472, %v3179_v23  ;;  %3188 = vpow2.f32 %v2136_v3  ;;  %vm2389_vm6 = vcmp.lt.f32.partialorder %v2388_v48, 0.0004427343  ;;  %v1742_v62 = vsub.f32 10.0, %v1220_v61 }
 0x15b   :  { %v2384_v50 = vmul.f32 0.6931472, %v3181_v0  ;;  %v2433_v6 = vand.u32 2147483647, %v3175_v63  ;;  %v3183_v40 = vpop.eup %3182  ;;  %v1200_v8 = vmul.f32 0.5, %v1199_v1  ;;  %3190 = vrsqrt.f32 %v5068_v28 }
 0x15c   :  { %v2399_v4 = vsel %vm5054_vm5, %v2396_v2, %v2393_v58  ;;  %v2432_v44 = vmul.f32 %v3175_v63, %v2431_v43  ;;  %v2418_v36 = vadd.f32 1.0, %v3183_v40  ;;  %v2421_v59 = vmul.f32 -0.5, %v3183_v40  ;;  %v5125_v58 = vpop.xlane.xlu0 %755 }
 0x15d   :  { %v2806_v41 = vadd.f32 %v2399_v4, %v1924_v20  ;;  %v2390_v47 = vsel %vm2389_vm6, %v2387_v51, %v2384_v50  ;;  %v1805_v24 = vmul.f32 %v1742_v62, %v1679_v35  ;;  %v1201_v12 = vsub.f32 1.5, %v1200_v8 }
 0x15e   :  { %v3185_v49 = vpop.eup %3184  ;;  %v2805_v19 = vadd.f32 %v2390_v47, %v1923_v55  ;;  %vm2434_vm7 = vcmp.lt.f32.partialorder %v2433_v6, 0.0004427343  ;;  %3192 = vlog2.f32 %v2418_v36  ;;  %v2424_v55 = vand.u32 2147483647, %v3183_v40  ;;  %v5135_v47 = vpop.xlane.xlu2 %775 }
 0x15f   :  { %v3187_v18 = vpop.eup %3186  ;;  %v2932_v21 = vsel %vm2869_vm3, %v4991_v26, %v2806_v41  ;;  %v2429_v29 = vmul.f32 0.6931472, %v3185_v49  ;;  %v5096_v46 = vsub.f32 1.0, %v1805_v24  ;;  %v1202_v25 = vmul.f32 %v3177_v16, %v1201_v12 }
 0x160   :  { %2996 = vst.msk [vmem:[%s6218_s3 + $0x98] sm:$0xff] %vm2976_vm15, %v2932_v21  ;;  %v2931_v20 = vsel %vm2868_vm4, %v4993_v42, %v2805_v19  ;;  %v3189_v13 = vpop.eup %3188  ;;  %v1186_v52 = vmul.f32 %v3187_v18, %v5047_v15  ;;  %v2422_v37 = vadd.f32 1.0, %v2421_v59  ;;  %vm2873_vm8 = vcmp.gt.f32.partialorder %v5014_v57, 10.0 }
 0x161   :  { %2995 = vst.msk [vmem:[%s6218_s3 + $0x90] sm:$0xff] %vm2976_vm15, %v2931_v20  ;;  %v2435_v26 = vsel %vm2434_vm7, %v2432_v44, %v2429_v29  ;;  %v2409_v42 = vadd.f32 1.0, %v3189_v13  ;;  %v2412_v14 = vmul.f32 -0.5, %v3189_v13  ;;  %v3191_v27 = vpop.eup %3190  ;;  %v1927_v63 = vmax.f32 %v5026_v7, 0.0 }
 0x162   :  { %v2810_v10 = vadd.f32 %v2435_v26, %v1928_v30  ;;  %v1994_v11 = vand.u32 2147483647, %v5096_v46  ;;  %vm1204_vm9 = vcmp.eq.f32.partialorder %v5031_v38, inf  ;;  %v1203_v9 = vmul.f32 %v1202_v25, %v5031_v38 }
 0x163   :  { %3194 = vlog2.f32 %v2409_v42  ;;  %vm1206_vm10 = vcmp.eq.f32.partialorder %v5031_v38, 0.0  ;;  %v1207_v16 = vand.u32 2147483648, %v5031_v38  ;;  %v1187_v56 = vmul.f32 %v3187_v18, %v1186_v52 }
 0x164   :  { %v2936_v33 = vsel %vm2873_vm8, %v5014_v57, %v2810_v10  ;;  %v2057_v30 = vsub.f32 0.0, %v1994_v11  ;;  %v1246_v39 = vmul.f32 %v3191_v27, %v5068_v28  ;;  %v3193_v32 = vpop.eup %3192  ;;  %v2423_v57 = vmul.f32 %v3183_v40, %v2422_v37 }
 0x165   :  { %3000 = vst.msk [vmem:[%s6218_s3 + $0xb8] sm:$0xff] %vm2976_vm15, %v2936_v33  ;;  %vm5116_vm0 = vcmp.lt.f32.partialorder %v2424_v55, 0.0004427343  ;;  %v2413_v60 = vadd.f32 1.0, %v2412_v14  ;;  %v1205_v34 = vsel %vm1204_vm9, %v5031_v38, %v1203_v9  ;;  %v2420_v45 = vmul.f32 0.6931472, %v3193_v32 }
 0x166   :  { %v2146_v53 = vmul.f32 1.442695, %v2057_v30  ;;  %v1208_v23 = vsel %vm1206_vm10, %v1207_v16, %v1205_v34  ;;  %v1188_v2 = vmul.f32 0.5, %v1187_v56  ;;  %v2415_v3 = vand.u32 2147483647, %v3189_v13  ;;  %v1682_v33 = vld [vmem:[%s6217_s2 + $0xe8] sm:$0xff]  ;;  %v5167_v30 = vpop.xlane.xlu1 %771 }
 0x167   :  { %v1741_v5 = vsub.f32 10.0, %v1208_v23  ;;  %v1247_v0 = vmul.f32 %v3191_v27, %v1246_v39  ;;  %3196 = vrsqrt.f32 %v5114_v22  ;;  %v2426_v51 = vsel %vm5116_vm0, %v2423_v57, %v2420_v45 }
 0x168   :  { %vm2872_vm11 = vcmp.gt.f32.partialorder %v5026_v7, 10.0  ;;  %3198 = vpow2.f32 %v2146_v53  ;;  %v1189_v38 = vsub.f32 1.5, %v1188_v2  ;;  %v2809_v31 = vadd.f32 %v2426_v51, %v1927_v63 }
 0x169   :  { %v3195_v43 = vpop.eup %3194  ;;  %v1926_v50 = vmax.f32 %v5040_v17, 0.0  ;;  %v1804_v61 = vmul.f32 %v1741_v5, %v1678_v54  ;;  %v1248_v1 = vmul.f32 0.5, %v1247_v0  ;;  %v2414_v6 = vmul.f32 %v3189_v13, %v2413_v60 }
 0x16a   :  { %v2411_v4 = vmul.f32 0.6931472, %v3195_v43  ;;  %v1190_v35 = vmul.f32 %v3187_v18, %v1189_v38  ;;  %3200 = vrsqrt.f32 %v5125_v58  ;;  %v2935_v62 = vsel %vm2872_vm11, %v5026_v7, %v2809_v31 }
 0x16b   :  { %vm2416_vm12 = vcmp.lt.f32.partialorder %v2415_v3, 0.0004427343  ;;  %v5133_v40 = vsub.f32 1.0, %v1804_v61  ;;  %v1249_v41 = vsub.f32 1.5, %v1248_v1  ;;  %2999 = vst.msk [vmem:[%s6218_s3 + $0xb0] sm:$0xff] %vm2976_vm15, %v2935_v62  ;;  %vm2871_vm13 = vcmp.gt.f32.partialorder %v5040_v17, 10.0 }
 0x16c   :  { %v2417_v8 = vsel %vm2416_vm12, %v2414_v6, %v2411_v4  ;;  %v1191_v49 = vmul.f32 %v1190_v35, %v5047_v15  ;;  %vm1192_vm14 = vcmp.eq.f32.partialorder %v5047_v15, inf  ;;  %vm1194_vm1 = vcmp.eq.f32.partialorder %v5047_v15, 0.0 }
 0x16d   :  { %v3197_v19 = vpop.eup %3196  ;;  %v2808_v7 = vadd.f32 %v2417_v8, %v1926_v50  ;;  %v1993_v44 = vand.u32 2147483647, %v5133_v40  ;;  %v1195_v36 = vand.u32 2147483648, %v5047_v15  ;;  %v1250_v21 = vmul.f32 %v3191_v27, %v1249_v41 }
 0x16e   :  { %v3199_v59 = vpop.eup %3198  ;;  %v1193_v18 = vsel %vm1192_vm14, %v5047_v15, %v1191_v49  ;;  %v1234_v29 = vmul.f32 %v3197_v19, %v5114_v22  ;;  %3202 = vrsqrt.f32 %v5135_v47  ;;  %vm1252_vm2 = vcmp.eq.f32.partialorder %v5068_v28, inf  ;;  %v1677_v15 = vld [vmem:[%s6217_s2 + $0xc0] sm:$0xff] }
 0x16f   :  { %v2934_v24 = vsel %vm2871_vm13, %v5040_v17, %v2808_v7  ;;  %v2454_v12 = vadd.f32 1.0, %v3199_v59  ;;  %v2457_v20 = vmul.f32 -0.5, %v3199_v59  ;;  %v2056_v13 = vsub.f32 0.0, %v1993_v44 }
 0x170   :  { %v3201_v55 = vpop.eup %3200  ;;  %2998 = vst.msk [vmem:[%s6218_s3 + $0xa8] sm:$0xff] %vm2976_vm15, %v2934_v24  ;;  %v1196_v26 = vsel %vm1194_vm1, %v1195_v36, %v1193_v18  ;;  %v1251_v25 = vmul.f32 %v1250_v21, %v5068_v28  ;;  %v1235_v52 = vmul.f32 %v3197_v19, %v1234_v29  ;;  %vm1254_vm3 = vcmp.eq.f32.partialorder %v5068_v28, 0.0 }
 0x171   :  { %3204 = vlog2.f32 %v2454_v12  ;;  %v1740_v17 = vsub.f32 10.0, %v1196_v26  ;;  %v1255_v10 = vand.u32 2147483648, %v5068_v28  ;;  %v2144_v37 = vmul.f32 1.442695, %v2056_v13  ;;  %v1680_v26 = vld [vmem:[%s6217_s2 + $0xd8] sm:$0xff] }
 0x172   :  { %v1253_v42 = vsel %vm1252_vm2, %v5068_v28, %v1251_v25  ;;  %v1236_v14 = vmul.f32 0.5, %v1235_v52  ;;  %v1222_v27 = vmul.f32 %v3201_v55, %v5125_v58  ;;  %v2458_v63 = vadd.f32 1.0, %v2457_v20  ;;  %v5212_v52 = vpop.xlane.xlu2 %787 }
 0x173   :  { %v1803_v11 = vmul.f32 %v1740_v17, %v1677_v15  ;;  %v1256_v9 = vsel %vm1254_vm3, %v1255_v10, %v1253_v42  ;;  %3206 = vpow2.f32 %v2144_v37  ;;  %v2460_v57 = vand.u32 2147483647, %v3199_v59 }
 0x174   :  { %v5169_v16 = vpop.eup %3202  ;;  %v1745_v56 = vsub.f32 10.0, %v1256_v9  ;;  %v1237_v39 = vsub.f32 1.5, %v1236_v14  ;;  %v1223_v32 = vmul.f32 %v3201_v55, %v1222_v27  ;;  %3208 = vrsqrt.f32 %v5167_v30 }
 0x175   :  { %v5171_v28 = vsub.f32 1.0, %v1803_v11  ;;  %v1282_v48 = vmul.f32 %v5169_v16, %v5135_v47  ;;  %v2459_v54 = vmul.f32 %v3199_v59, %v2458_v63  ;;  %v1931_v38 = vmax.f32 %v5096_v46, 0.0  ;;  %v1681_v59 = vld [vmem:[%s6217_s2 + $0xe0] sm:$0xff] }
 0x176   :  { %v1808_v60 = vmul.f32 %v1745_v56, %v1682_v33  ;;  %v1238_v34 = vmul.f32 %v3197_v19, %v1237_v39  ;;  %v1224_v45 = vmul.f32 0.5, %v1223_v32  ;;  %vm2461_vm4 = vcmp.lt.f32.partialorder %v2460_v57, 0.0004427343 }
 0x177   :  { %v3205_v53 = vpop.eup %3204  ;;  %v1992_v23 = vand.u32 2147483647, %v5171_v28  ;;  %v1283_v2 = vmul.f32 %v5169_v16, %v1282_v48  ;;  %vm2876_vm5 = vcmp.gt.f32.partialorder %v5096_v46, 10.0  ;;  %vm1240_vm6 = vcmp.eq.f32.partialorder %v5114_v22, inf }
 0x178   :  { %v2456_v3 = vmul.f32 0.6931472, %v3205_v53  ;;  %v5178_v5 = vsub.f32 1.0, %v1808_v60  ;;  %v1239_v0 = vmul.f32 %v1238_v34, %v5114_v22  ;;  %v1225_v51 = vsub.f32 1.5, %v1224_v45 }
 0x179   :  { %v2055_v43 = vsub.f32 0.0, %v1992_v23  ;;  %v3207_v31 = vpop.eup %3206  ;;  %v1243_v1 = vand.u32 2147483648, %v5114_v22  ;;  %v1284_v62 = vmul.f32 0.5, %v1283_v2  ;;  %vm1242_vm7 = vcmp.eq.f32.partialorder %v5114_v22, 0.0 }
 0x17a   :  { %v2462_v50 = vsel %vm2461_vm4, %v2459_v54, %v2456_v3  ;;  %v1997_v61 = vand.u32 2147483647, %v5178_v5  ;;  %v2445_v6 = vadd.f32 1.0, %v3207_v31  ;;  %v2448_v35 = vmul.f32 -0.5, %v3207_v31  ;;  %v5186_v41 = vpop.eup %3208 }
 0x17b   :  { %v2813_v4 = vadd.f32 %v2462_v50, %v1931_v38  ;;  %v2142_v8 = vmul.f32 1.442695, %v2055_v43  ;;  %v1241_v19 = vsel %vm1240_vm6, %v5114_v22, %v1239_v0  ;;  %v1226_v7 = vmul.f32 %v3201_v55, %v1225_v51  ;;  %v5207_v55 = vpop.xlane.xlu0 %767 }
 0x17c   :  { %v2060_v49 = vsub.f32 0.0, %v1997_v61  ;;  %3210 = vlog2.f32 %v2445_v6  ;;  %vm1228_vm8 = vcmp.eq.f32.partialorder %v5125_v58, inf  ;;  %v1244_v18 = vsel %vm1242_vm7, %v1243_v1, %v1241_v19 }
 0x17d   :  { %v2939_v44 = vsel %vm2876_vm5, %v5096_v46, %v2813_v4  ;;  %3212 = vpow2.f32 %v2142_v8  ;;  %v1227_v21 = vmul.f32 %v1226_v7, %v5125_v58  ;;  %v1744_v46 = vsub.f32 10.0, %v1244_v18  ;;  %v5263_v18 = vpop.xlane.xlu1 %783 }
 0x17e   :  { %3003 = vst.msk [vmem:[%s6218_s3 + $0xd0] sm:$0xff] %vm2976_vm15, %v2939_v44  ;;  %v2152_v36 = vmul.f32 1.442695, %v2060_v49  ;;  %v1231_v29 = vand.u32 2147483648, %v5125_v58  ;;  %v1285_v22 = vsub.f32 1.5, %v1284_v62  ;;  %v1270_v24 = vmul.f32 %v5186_v41, %v5167_v30  ;;  %v1685_v62 = vld [vmem:[%s6217_s2 + $0x100] sm:$0xff] }
 0x17f   :  { %v2449_v12 = vadd.f32 1.0, %v2448_v35  ;;  %v1229_v20 = vsel %vm1228_vm8, %v5125_v58, %v1227_v21  ;;  %vm1230_vm9 = vcmp.eq.f32.partialorder %v5125_v58, 0.0  ;;  %v2451_v13 = vand.u32 2147483647, %v3207_v31 }
 0x180   :  { %3214 = vpow2.f32 %v2152_v36  ;;  %v1807_v15 = vmul.f32 %v1744_v46, %v1681_v59  ;;  %v1232_v25 = vsel %vm1230_vm9, %v1231_v29, %v1229_v20  ;;  %v1930_v17 = vmax.f32 %v5133_v40, 0.0 }
 0x181   :  { %vm2875_vm10 = vcmp.gt.f32.partialorder %v5133_v40, 10.0  ;;  %v1743_v10 = vsub.f32 10.0, %v1232_v25  ;;  %vm1288_vm0 = vcmp.eq.f32.partialorder %v5135_v47, inf  ;;  %v1286_v42 = vmul.f32 %v5169_v16, %v1285_v22 }
 0x182   :  { %v3211_v37 = vpop.eup %3210  ;;  %v5217_v58 = vsub.f32 1.0, %v1807_v15  ;;  %vm1290_vm11 = vcmp.eq.f32.partialorder %v5135_v47, 0.0  ;;  %v1271_v14 = vmul.f32 %v5186_v41, %v1270_v24  ;;  %3216 = vrsqrt.f32 %v5207_v55 }
 0x183   :  { %v3213_v27 = vpop.eup %3212  ;;  %v2447_v63 = vmul.f32 0.6931472, %v3211_v37  ;;  %v2450_v11 = vmul.f32 %v3207_v31, %v2449_v12  ;;  %v1806_v33 = vmul.f32 %v1743_v10, %v1680_v26  ;;  %3218 = vrsqrt.f32 %v5212_v52 }
 0x184   :  { %vm2452_vm12 = vcmp.lt.f32.partialorder %v2451_v13, 0.0004427343  ;;  %v1929_v9 = vmax.f32 %v5171_v28, 0.0  ;;  %v2436_v56 = vadd.f32 1.0, %v3213_v27  ;;  %v1291_v39 = vand.u32 2147483648, %v5135_v47 }
 0x185   :  { %v2453_v16 = vsel %vm2452_vm12, %v2450_v11, %v2447_v63  ;;  %v2439_v57 = vmul.f32 -0.5, %v3213_v27  ;;  %v1996_v48 = vand.u32 2147483647, %v5217_v58  ;;  %v5227_v60 = vsub.f32 1.0, %v1806_v33 }
 0x186   :  { %v3215_v32 = vpop.eup %3214  ;;  %v2812_v34 = vadd.f32 %v2453_v16, %v1930_v17  ;;  %3220 = vlog2.f32 %v2436_v56  ;;  %v1287_v45 = vmul.f32 %v1286_v42, %v5135_v47  ;;  %v1272_v53 = vmul.f32 0.5, %v1271_v14 }
 0x187   :  { %v2442_v54 = vand.u32 2147483647, %v3213_v27  ;;  %v2481_v23 = vadd.f32 1.0, %v3215_v32  ;;  %v2484_v2 = vmul.f32 -0.5, %v3215_v32  ;;  %v2059_v3 = vsub.f32 0.0, %v1996_v48 }
 0x188   :  { %v5230_v0 = vpop.eup %3216  ;;  %v2938_v51 = vsel %vm2875_vm10, %v5133_v40, %v2812_v34  ;;  %v1995_v38 = vand.u32 2147483647, %v5227_v60  ;;  %vm1276_vm13 = vcmp.eq.f32.partialorder %v5167_v30, inf  ;;  %vm1278_vm14 = vcmp.eq.f32.partialorder %v5167_v30, 0.0 }
 0x189   :  { %v5238_v43 = vpop.eup %3218  ;;  %3002 = vst.msk [vmem:[%s6218_s3 + $0xc8] sm:$0xff] %vm2976_vm15, %v2938_v51  ;;  %v2440_v31 = vadd.f32 1.0, %v2439_v57  ;;  %vm2874_vm1 = vcmp.gt.f32.partialorder %v5171_v28, 10.0  ;;  %3222 = vlog2.f32 %v2481_v23  ;;  %v2150_v50 = vmul.f32 1.442695, %v2059_v3 }
 0x18a   :  { %v1279_v40 = vand.u32 2147483648, %v5167_v30  ;;  %v2485_v61 = vadd.f32 1.0, %v2484_v2  ;;  %v2058_v1 = vsub.f32 0.0, %v1995_v38  ;;  %v1289_v4 = vsel %vm1288_vm0, %v5135_v47, %v1287_v45  ;;  %v5307_v38 = vpop.xlane.xlu0 %779 }
 0x18b   :  { %v1273_v6 = vsub.f32 1.5, %v1272_v53  ;;  %vm5249_vm2 = vcmp.lt.f32.partialorder %v2442_v54, 0.0004427343  ;;  %3224 = vpow2.f32 %v2150_v50  ;;  %v1292_v8 = vsel %vm1290_vm11, %v1291_v39, %v1289_v4 }
 0x18c   :  { %v1258_v49 = vmul.f32 %v5230_v0, %v5207_v55  ;;  %v3221_v19 = vpop.eup %3220  ;;  %v2148_v7 = vmul.f32 1.442695, %v2058_v1  ;;  %v1748_v44 = vsub.f32 10.0, %v1292_v8  ;;  %v1318_v59 = vmul.f32 %v5238_v43, %v5212_v52 }
 0x18d   :  { %v1274_v36 = vmul.f32 %v5186_v41, %v1273_v6  ;;  %v2438_v21 = vmul.f32 0.6931472, %v3221_v19  ;;  %v2441_v46 = vmul.f32 %v3213_v27, %v2440_v31  ;;  %v2487_v29 = vand.u32 2147483647, %v3215_v32 }
 0x18e   :  { %v1259_v22 = vmul.f32 %v5230_v0, %v1258_v49  ;;  %v2486_v47 = vmul.f32 %v3215_v32, %v2485_v61  ;;  %3226 = vpow2.f32 %v2148_v7  ;;  %v1811_v24 = vmul.f32 %v1748_v44, %v1685_v62 }
 0x18f   :  { %v1275_v12 = vmul.f32 %v1274_v36, %v5167_v30  ;;  %v3223_v20 = vpop.eup %3222  ;;  %v2444_v13 = vsel %vm5249_vm2, %v2441_v46, %v2438_v21  ;;  %v1319_v15 = vmul.f32 %v5238_v43, %v1318_v59  ;;  %3228 = vrsqrt.f32 %v5263_v18  ;;  %v1683_v46 = vld [vmem:[%s6217_s2 + $0xf0] sm:$0xff] }
 0x190   :  { %v1260_v41 = vmul.f32 0.5, %v1259_v22  ;;  %v2811_v26 = vadd.f32 %v2444_v13, %v1929_v9  ;;  %v2483_v25 = vmul.f32 0.6931472, %v3223_v20  ;;  %v5271_v17 = vsub.f32 1.0, %v1811_v24 }
 0x191   :  { %v1277_v10 = vsel %vm1276_vm13, %v5167_v30, %v1275_v12  ;;  %v3225_v37 = vpop.eup %3224  ;;  %v1934_v42 = vmax.f32 %v5178_v5, 0.0  ;;  %vm2488_vm3 = vcmp.lt.f32.partialorder %v2487_v29, 0.0004427343  ;;  %vm2879_vm4 = vcmp.gt.f32.partialorder %v5178_v5, 10.0  ;;  %v1684_v30 = vld [vmem:[%s6217_s2 + $0xf8] sm:$0xff] }
 0x192   :  { %v1280_v14 = vsel %vm1278_vm14, %v1279_v40, %v1277_v10  ;;  %v2937_v27 = vsel %vm2874_vm1, %v5171_v28, %v2811_v26  ;;  %v2489_v63 = vsel %vm2488_vm3, %v2486_v47, %v2483_v25  ;;  %v2472_v11 = vadd.f32 1.0, %v3225_v37 }
 0x193   :  { %v2475_v33 = vmul.f32 -0.5, %v3225_v37  ;;  %vm1264_vm5 = vcmp.eq.f32.partialorder %v5207_v55, inf  ;;  %3001 = vst.msk [vmem:[%s6218_s3 + $0xc0] sm:$0xff] %vm2976_vm15, %v2937_v27  ;;  %v2816_v9 = vadd.f32 %v2489_v63, %v1934_v42  ;;  %v2000_v56 = vand.u32 2147483647, %v5271_v17 }
 0x194   :  { %v1261_v39 = vsub.f32 1.5, %v1260_v41  ;;  %vm1266_vm6 = vcmp.eq.f32.partialorder %v5207_v55, 0.0  ;;  %v1320_v28 = vmul.f32 0.5, %v1319_v15  ;;  %v3227_v32 = vpop.eup %3226  ;;  %3230 = vlog2.f32 %v2472_v11 }
 0x195   :  { %v1747_v16 = vsub.f32 10.0, %v1280_v14  ;;  %v1267_v57 = vand.u32 2147483648, %v5207_v55  ;;  %vm1324_vm7 = vcmp.eq.f32.partialorder %v5212_v52, inf  ;;  %v5295_v48 = vpop.eup %3228  ;;  %v2942_v34 = vsel %vm2879_vm4, %v5178_v5, %v2816_v9 }
 0x196   :  { %v1933_v45 = vmax.f32 %v5217_v58, 0.0  ;;  %v2463_v53 = vadd.f32 1.0, %v3227_v32  ;;  %v2466_v54 = vmul.f32 -0.5, %v3227_v32  ;;  %vm1326_vm8 = vcmp.eq.f32.partialorder %v5212_v52, 0.0  ;;  %3006 = vst.msk [vmem:[%s6218_s3 + $0xe8] sm:$0xff] %vm2976_vm15, %v2942_v34 }
 0x197   :  { %v2476_v23 = vadd.f32 1.0, %v2475_v33  ;;  %v1932_v2 = vmax.f32 %v5227_v60, 0.0  ;;  %v2063_v3 = vsub.f32 0.0, %v2000_v56  ;;  %v1810_v51 = vmul.f32 %v1747_v16, %v1684_v30 }
 0x198   :  { %v2478_v31 = vand.u32 2147483647, %v3225_v37  ;;  %vm2878_vm9 = vcmp.gt.f32.partialorder %v5217_v58, 10.0  ;;  %3232 = vlog2.f32 %v2463_v53  ;;  %v1262_v5 = vmul.f32 %v5230_v0, %v1261_v39 }
 0x199   :  { %v1321_v50 = vsub.f32 1.5, %v1320_v28  ;;  %v2467_v40 = vadd.f32 1.0, %v2466_v54  ;;  %v2158_v61 = vmul.f32 1.442695, %v2063_v3  ;;  %v5311_v1 = vsub.f32 1.0, %v1810_v51  ;;  %v5350_v28 = vpop.xlane.xlu2 %799 }
 0x19a   :  { %v1306_v4 = vmul.f32 %v5295_v48, %v5263_v18  ;;  %v1263_v6 = vmul.f32 %v1262_v5, %v5207_v55  ;;  %v1327_v62 = vand.u32 2147483648, %v5212_v52  ;;  %3234 = vrsqrt.f32 %v5307_v38  ;;  %v3231_v8 = vpop.eup %3230 }
 0x19b   :  { %v1322_v35 = vmul.f32 %v5238_v43, %v1321_v50  ;;  %v2477_v49 = vmul.f32 %v3225_v37, %v2476_v23  ;;  %v2469_v19 = vand.u32 2147483647, %v3227_v32  ;;  %3236 = vpow2.f32 %v2158_v61 }
 0x19c   :  { %v1999_v0 = vand.u32 2147483647, %v5311_v1  ;;  %v2474_v7 = vmul.f32 0.6931472, %v3231_v8  ;;  %v1265_v44 = vsel %vm1264_vm5, %v5207_v55, %v1263_v6  ;;  %v1307_v59 = vmul.f32 %v5295_v48, %v1306_v4  ;;  %v1688_v55 = vld [vmem:[%s6217_s2 + $0x118] sm:$0xff] }
 0x19d   :  { %v1323_v36 = vmul.f32 %v1322_v35, %v5212_v52  ;;  %vm2479_vm10 = vcmp.lt.f32.partialorder %v2478_v31, 0.0004427343  ;;  %v2468_v43 = vmul.f32 %v3227_v32, %v2467_v40  ;;  %v1268_v29 = vsel %vm1266_vm6, %v1267_v57, %v1265_v44  ;;  %v1687_v40 = vld [vmem:[%s6217_s2 + $0x110] sm:$0xff] }
 0x19e   :  { %v2062_v21 = vsub.f32 0.0, %v1999_v0  ;;  %v3233_v22 = vpop.eup %3232  ;;  %v2480_v47 = vsel %vm2479_vm10, %v2477_v49, %v2474_v7  ;;  %v1746_v24 = vsub.f32 10.0, %v1268_v29  ;;  %v1308_v20 = vmul.f32 0.5, %v1307_v59  ;;  %v5371_v7 = vpop.xlane.xlu1 %795 }
 0x19f   :  { %v1325_v12 = vsel %vm1324_vm7, %v5212_v52, %v1323_v36  ;;  %v2815_v13 = vadd.f32 %v2480_v47, %v1933_v45  ;;  %v2465_v41 = vmul.f32 0.6931472, %v3233_v22  ;;  %vm2470_vm0 = vcmp.lt.f32.partialorder %v2469_v19, 0.0004427343 }
 0x1a0   :  { %v2156_v15 = vmul.f32 1.442695, %v2062_v21  ;;  %v1328_v26 = vsel %vm1326_vm8, %v1327_v62, %v1325_v12  ;;  %v3235_v25 = vpop.eup %3234  ;;  %v1809_v10 = vmul.f32 %v1746_v24, %v1683_v46  ;;  %v1309_v42 = vsub.f32 1.5, %v1308_v20 }
 0x1a1   :  { %v1751_v37 = vsub.f32 10.0, %v1328_v26  ;;  %v3237_v14 = vpop.eup %3236  ;;  %v2941_v27 = vsel %vm2878_vm9, %v5217_v58, %v2815_v13  ;;  %v2471_v63 = vsel %vm2470_vm0, %v2468_v43, %v2465_v41  ;;  %v1294_v11 = vmul.f32 %v3235_v25, %v5307_v38  ;;  %v5386_v26 = vpop.xlane.xlu0 %791 }
 0x1a2   :  { %3238 = vpow2.f32 %v2156_v15  ;;  %3005 = vst.msk [vmem:[%s6218_s3 + $0xe0] sm:$0xff] %vm2976_vm15, %v2941_v27  ;;  %v2814_v52 = vadd.f32 %v2471_v63, %v1932_v2  ;;  %vm2877_vm11 = vcmp.gt.f32.partialorder %v5227_v60, 10.0  ;;  %v2508_v33 = vadd.f32 1.0, %v3237_v14 }
 0x1a3   :  { %v2511_v9 = vmul.f32 -0.5, %v3237_v14  ;;  %v5347_v56 = vsub.f32 1.0, %v1809_v10  ;;  %v1814_v30 = vmul.f32 %v1751_v37, %v1688_v55  ;;  %v1310_v39 = vmul.f32 %v5295_v48, %v1309_v42 }
 0x1a4   :  { %v1295_v58 = vmul.f32 %v3235_v25, %v1294_v11  ;;  %v2940_v32 = vsel %vm2877_vm11, %v5227_v60, %v2814_v52  ;;  %3240 = vlog2.f32 %v2508_v33  ;;  %vm1312_vm12 = vcmp.eq.f32.partialorder %v5263_v18, inf }
 0x1a5   :  { %3004 = vst.msk [vmem:[%s6218_s3 + $0xd8] sm:$0xff] %vm2976_vm15, %v2940_v32  ;;  %v1998_v16 = vand.u32 2147483647, %v5347_v56  ;;  %v5358_v57 = vsub.f32 1.0, %v1814_v30  ;;  %v2512_v34 = vadd.f32 1.0, %v2511_v9  ;;  %v1311_v48 = vmul.f32 %v1310_v39, %v5263_v18 }
 0x1a6   :  { %v1296_v45 = vmul.f32 0.5, %v1295_v58  ;;  %3242 = vrsqrt.f32 %v5350_v28  ;;  %vm1314_vm13 = vcmp.eq.f32.partialorder %v5263_v18, 0.0  ;;  %v1315_v23 = vand.u32 2147483648, %v5263_v18 }
 0x1a7   :  { %v2061_v60 = vsub.f32 0.0, %v1998_v16  ;;  %v2003_v54 = vand.u32 2147483647, %v5358_v57  ;;  %v2514_v2 = vand.u32 2147483647, %v3237_v14  ;;  %v1313_v31 = vsel %vm1312_vm12, %v5263_v18, %v1311_v48 }
 0x1a8   :  { %v3239_v53 = vpop.eup %3238  ;;  %v1316_v61 = vsel %vm1314_vm13, %v1315_v23, %v1313_v31  ;;  %v1297_v4 = vsub.f32 1.5, %v1296_v45  ;;  %v1937_v35 = vmax.f32 %v5271_v17, 0.0  ;;  %v2513_v62 = vmul.f32 %v3237_v14, %v2512_v34 }
 0x1a9   :  { %v2499_v3 = vadd.f32 1.0, %v3239_v53  ;;  %v2502_v51 = vmul.f32 -0.5, %v3239_v53  ;;  %v2154_v5 = vmul.f32 1.442695, %v2061_v60  ;;  %v2066_v50 = vsub.f32 0.0, %v2003_v54 }
 0x1aa   :  { %v3241_v6 = vpop.eup %3240  ;;  %v1750_v8 = vsub.f32 10.0, %v1316_v61  ;;  %v1298_v0 = vmul.f32 %v3235_v25, %v1297_v4  ;;  %vm2515_vm14 = vcmp.lt.f32.partialorder %v2514_v2, 0.0004427343  ;;  %vm1300_vm1 = vcmp.eq.f32.partialorder %v5307_v38, inf }
 0x1ab   :  { %3244 = vlog2.f32 %v2499_v3  ;;  %v2510_v49 = vmul.f32 0.6931472, %v3241_v6  ;;  %v2164_v19 = vmul.f32 1.442695, %v2066_v50  ;;  %v2503_v44 = vadd.f32 1.0, %v2502_v51 }
 0x1ac   :  { %3246 = vpow2.f32 %v2154_v5  ;;  %v3243_v18 = vpop.eup %3242  ;;  %v1813_v36 = vmul.f32 %v1750_v8, %v1687_v40  ;;  %v1299_v43 = vmul.f32 %v1298_v0, %v5307_v38  ;;  %v2505_v29 = vand.u32 2147483647, %v3239_v53  ;;  %v5413_v40 = vpop.xlane.xlu2 %811  ;;  %v1691_v8 = vld [vmem:[%s6217_s2 + $0x130] sm:$0xff] }
 0x1ad   :  { %v2516_v59 = vsel %vm2515_vm14, %v2513_v62, %v2510_v49  ;;  %3248 = vpow2.f32 %v2164_v19  ;;  %v1354_v21 = vmul.f32 %v3243_v18, %v5350_v28  ;;  %vm2882_vm2 = vcmp.gt.f32.partialorder %v5271_v17, 10.0 }
 0x1ae   :  { %v2819_v46 = vadd.f32 %v2516_v59, %v1937_v35  ;;  %v5376_v22 = vsub.f32 1.0, %v1813_v36  ;;  %3250 = vrsqrt.f32 %v5371_v7  ;;  %v1301_v47 = vsel %vm1300_vm1, %v5307_v38, %v1299_v43 }
 0x1af   :  { %v1303_v24 = vand.u32 2147483648, %v5307_v38  ;;  %v1355_v12 = vmul.f32 %v3243_v18, %v1354_v21  ;;  %v1936_v41 = vmax.f32 %v5311_v1, 0.0  ;;  %vm1302_vm3 = vcmp.eq.f32.partialorder %v5307_v38, 0.0  ;;  %v1686_v38 = vld [vmem:[%s6217_s2 + $0x108] sm:$0xff] }
 0x1b0   :  { %v2945_v13 = vsel %vm2882_vm2, %v5271_v17, %v2819_v46  ;;  %v2002_v15 = vand.u32 2147483647, %v5376_v22  ;;  %v2504_v55 = vmul.f32 %v3239_v53, %v2503_v44  ;;  %vm2506_vm4 = vcmp.lt.f32.partialorder %v2505_v29, 0.0004427343 }
 0x1b1   :  { %v3245_v20 = vpop.eup %3244  ;;  %3009 = vst.msk [vmem:[%s6218_s3 + $0x100] sm:$0xff] %vm2976_vm15, %v2945_v13  ;;  %v1304_v37 = vsel %vm1302_vm3, %v1303_v24, %v1301_v47  ;;  %v1356_v42 = vmul.f32 0.5, %v1355_v12  ;;  %3252 = vrsqrt.f32 %v5386_v26  ;;  %vm2881_vm5 = vcmp.gt.f32.partialorder %v5311_v1, 10.0 }
 0x1b2   :  { %v3247_v25 = vpop.eup %3246  ;;  %v2501_v10 = vmul.f32 0.6931472, %v3245_v20  ;;  %v2065_v27 = vsub.f32 0.0, %v2002_v15  ;;  %v1749_v52 = vsub.f32 10.0, %v1304_v37  ;;  %v1935_v39 = vmax.f32 %v5347_v56, 0.0 }
 0x1b3   :  { %v2490_v17 = vadd.f32 1.0, %v3247_v25  ;;  %v2493_v14 = vmul.f32 -0.5, %v3247_v25  ;;  %v3249_v63 = vpop.eup %3248  ;;  %v1357_v33 = vsub.f32 1.5, %v1356_v42  ;;  %vm2880_vm6 = vcmp.gt.f32.partialorder %v5347_v56, 10.0  ;;  %v5445_v42 = vpop.xlane.xlu1 %807 }
 0x1b4   :  { %v2507_v11 = vsel %vm2506_vm4, %v2504_v55, %v2501_v10  ;;  %v3251_v9 = vpop.eup %3250  ;;  %v2535_v58 = vadd.f32 1.0, %v3249_v63  ;;  %v2538_v32 = vmul.f32 -0.5, %v3249_v63  ;;  %v2162_v16 = vmul.f32 1.442695, %v2065_v27 }
 0x1b5   :  { %v2818_v30 = vadd.f32 %v2507_v11, %v1936_v41  ;;  %3254 = vlog2.f32 %v2490_v17  ;;  %v2494_v48 = vadd.f32 1.0, %v2493_v14  ;;  %v1812_v45 = vmul.f32 %v1749_v52, %v1686_v38 }
 0x1b6   :  { %v1358_v53 = vmul.f32 %v3243_v18, %v1357_v33  ;;  %v1940_v60 = vmax.f32 %v5358_v57, 0.0  ;;  %3256 = vlog2.f32 %v2535_v58  ;;  %vm1360_vm7 = vcmp.eq.f32.partialorder %v5350_v28, inf }
 0x1b7   :  { %v2944_v34 = vsel %vm2881_vm5, %v5311_v1, %v2818_v30  ;;  %v1342_v54 = vmul.f32 %v3251_v9, %v5371_v7  ;;  %v2496_v23 = vand.u32 2147483647, %v3247_v25  ;;  %3258 = vpow2.f32 %v2162_v16  ;;  %v5410_v3 = vpop.eup %3252 }
 0x1b8   :  { %3008 = vst.msk [vmem:[%s6218_s3 + $0xf8] sm:$0xff] %vm2976_vm15, %v2944_v34  ;;  %v5407_v1 = vsub.f32 1.0, %v1812_v45  ;;  %v1359_v2 = vmul.f32 %v1358_v53, %v5350_v28  ;;  %v2539_v51 = vadd.f32 1.0, %v2538_v32  ;;  %v2541_v31 = vand.u32 2147483647, %v3249_v63 }
 0x1b9   :  { %v1363_v5 = vand.u32 2147483648, %v5350_v28  ;;  %v1343_v50 = vmul.f32 %v3251_v9, %v1342_v54  ;;  %v2495_v4 = vmul.f32 %v3247_v25, %v2494_v48  ;;  %vm2885_vm8 = vcmp.gt.f32.partialorder %v5358_v57, 10.0 }
 0x1ba   :  { %v2001_v6 = vand.u32 2147483647, %v5407_v1  ;;  %v1361_v35 = vsel %vm1360_vm7, %v5350_v28, %v1359_v2  ;;  %vm1362_vm9 = vcmp.eq.f32.partialorder %v5350_v28, 0.0  ;;  %v1330_v0 = vmul.f32 %v5410_v3, %v5386_v26 }
 0x1bb   :  { %v3255_v61 = vpop.eup %3254  ;;  %v1364_v49 = vsel %vm1362_vm9, %v1363_v5, %v1361_v35  ;;  %v1344_v19 = vmul.f32 0.5, %v1343_v50  ;;  %vm2497_vm10 = vcmp.lt.f32.partialorder %v2496_v23, 0.0004427343  ;;  %3260 = vrsqrt.f32 %v5413_v40  ;;  %v5470_v5 = vpop.xlane.xlu0 %803 }
 0x1bc   :  { %v2492_v62 = vmul.f32 0.6931472, %v3255_v61  ;;  %v2064_v18 = vsub.f32 0.0, %v2001_v6  ;;  %v1754_v44 = vsub.f32 10.0, %v1364_v49  ;;  %v3257_v36 = vpop.eup %3256  ;;  %v2540_v43 = vmul.f32 %v3249_v63, %v2539_v51 }
 0x1bd   :  { %vm5427_vm0 = vcmp.lt.f32.partialorder %v2541_v31, 0.0004427343  ;;  %v1345_v21 = vsub.f32 1.5, %v1344_v19  ;;  %v3259_v46 = vpop.eup %3258  ;;  %v2537_v47 = vmul.f32 0.6931472, %v3257_v36  ;;  %v1331_v15 = vmul.f32 %v5410_v3, %v1330_v0  ;;  %v1689_v36 = vld [vmem:[%s6217_s2 + $0x120] sm:$0xff] }
 0x1be   :  { %v2498_v59 = vsel %vm2497_vm10, %v2495_v4, %v2492_v62  ;;  %v2160_v24 = vmul.f32 1.442695, %v2064_v18  ;;  %v1817_v12 = vmul.f32 %v1754_v44, %v1691_v8  ;;  %v2526_v20 = vadd.f32 1.0, %v3259_v46 }
 0x1bf   :  { %v2817_v29 = vadd.f32 %v2498_v59, %v1935_v39  ;;  %v2529_v13 = vmul.f32 -0.5, %v3259_v46  ;;  %v1346_v41 = vmul.f32 %v3251_v9, %v1345_v21  ;;  %v2543_v10 = vsel %vm5427_vm0, %v2540_v43, %v2537_v47 }
 0x1c0   :  { %3262 = vpow2.f32 %v2160_v24  ;;  %v5437_v55 = vsub.f32 1.0, %v1817_v12  ;;  %v2822_v37 = vadd.f32 %v2543_v10, %v1940_v60  ;;  %vm1348_vm11 = vcmp.eq.f32.partialorder %v5371_v7, inf }
 0x1c1   :  { %v2943_v25 = vsel %vm2880_vm6, %v5347_v56, %v2817_v29  ;;  %3264 = vlog2.f32 %v2526_v20  ;;  %vm1350_vm12 = vcmp.eq.f32.partialorder %v5371_v7, 0.0  ;;  %v3261_v56 = vpop.eup %3260  ;;  %v1939_v17 = vmax.f32 %v5376_v22, 0.0 }
 0x1c2   :  { %3007 = vst.msk [vmem:[%s6218_s3 + $0xf0] sm:$0xff] %vm2976_vm15, %v2943_v25  ;;  %v2006_v14 = vand.u32 2147483647, %v5437_v55  ;;  %v1347_v27 = vmul.f32 %v1346_v41, %v5371_v7  ;;  %v1351_v63 = vand.u32 2147483648, %v5371_v7  ;;  %v2948_v11 = vsel %vm2885_vm8, %v5358_v57, %v2822_v37  ;;  %v1690_v57 = vld [vmem:[%s6217_s2 + $0x128] sm:$0xff] }
 0x1c3   :  { %v2530_v38 = vadd.f32 1.0, %v2529_v13  ;;  %v1332_v52 = vmul.f32 0.5, %v1331_v15  ;;  %v1390_v33 = vmul.f32 %v3261_v56, %v5413_v40  ;;  %3012 = vst.msk [vmem:[%s6218_s3 + $0x118] sm:$0xff] %vm2976_vm15, %v2948_v11  ;;  %vm2884_vm13 = vcmp.gt.f32.partialorder %v5376_v22, 10.0 }
 0x1c4   :  { %v2069_v9 = vsub.f32 0.0, %v2006_v14  ;;  %v1349_v30 = vsel %vm1348_vm11, %v5371_v7, %v1347_v27  ;;  %3266 = vrsqrt.f32 %v5445_v42  ;;  %v2532_v39 = vand.u32 2147483647, %v3259_v46 }
 0x1c5   :  { %v1352_v58 = vsel %vm1350_vm12, %v1351_v63, %v1349_v30  ;;  %v1333_v32 = vsub.f32 1.5, %v1332_v52  ;;  %v1391_v16 = vmul.f32 %v3261_v56, %v1390_v33  ;;  %vm1336_vm14 = vcmp.eq.f32.partialorder %v5386_v26, inf  ;;  %v5505_v63 = vpop.xlane.xlu2 %823  ;;  %v1694_v30 = vld [vmem:[%s6217_s2 + $0x148] sm:$0xff] }
 0x1c6   :  { %v3263_v34 = vpop.eup %3262  ;;  %v2170_v48 = vmul.f32 1.442695, %v2069_v9  ;;  %v1753_v45 = vsub.f32 10.0, %v1352_v58  ;;  %vm1338_vm1 = vcmp.eq.f32.partialorder %v5386_v26, 0.0  ;;  %v2531_v60 = vmul.f32 %v3259_v46, %v2530_v38 }
 0x1c7   :  { %v3265_v53 = vpop.eup %3264  ;;  %v2517_v54 = vadd.f32 1.0, %v3263_v34  ;;  %v2520_v23 = vmul.f32 -0.5, %v3263_v34  ;;  %v1334_v2 = vmul.f32 %v5410_v3, %v1333_v32  ;;  %v1392_v7 = vmul.f32 0.5, %v1391_v16  ;;  %v5515_v32 = vpop.xlane.xlu1 %819 }
 0x1c8   :  { %v2528_v51 = vmul.f32 0.6931472, %v3265_v53  ;;  %3268 = vpow2.f32 %v2170_v48  ;;  %v1816_v31 = vmul.f32 %v1753_v45, %v1690_v57  ;;  %vm2533_vm2 = vcmp.lt.f32.partialorder %v2532_v39, 0.0004427343 }
 0x1c9   :  { %3270 = vlog2.f32 %v2517_v54  ;;  %v1335_v50 = vmul.f32 %v1334_v2, %v5386_v26  ;;  %v1339_v61 = vand.u32 2147483648, %v5386_v26  ;;  %v2521_v35 = vadd.f32 1.0, %v2520_v23 }
 0x1ca   :  { %v3267_v4 = vpop.eup %3266  ;;  %v2534_v6 = vsel %vm2533_vm2, %v2531_v60, %v2528_v51  ;;  %v5474_v62 = vsub.f32 1.0, %v1816_v31  ;;  %v1393_v8 = vsub.f32 1.5, %v1392_v7  ;;  %3272 = vrsqrt.f32 %v5470_v5 }
 0x1cb   :  { %v2821_v49 = vadd.f32 %v2534_v6, %v1939_v17  ;;  %v1337_v3 = vsel %vm1336_vm14, %v5386_v26, %v1335_v50  ;;  %v1378_v19 = vmul.f32 %v3267_v4, %v5445_v42  ;;  %v1938_v0 = vmax.f32 %v5407_v1, 0.0 }
 0x1cc   :  { %v2523_v18 = vand.u32 2147483647, %v3263_v34  ;;  %v2005_v44 = vand.u32 2147483647, %v5474_v62  ;;  %v1340_v59 = vsel %vm1338_vm1, %v1339_v61, %v1337_v3  ;;  %v1394_v21 = vmul.f32 %v3261_v56, %v1393_v8 }
 0x1cd   :  { %v2947_v43 = vsel %vm2884_vm13, %v5376_v22, %v2821_v49  ;;  %v1752_v28 = vsub.f32 10.0, %v1340_v59  ;;  %v1379_v46 = vmul.f32 %v3267_v4, %v1378_v19  ;;  %vm2883_vm3 = vcmp.gt.f32.partialorder %v5407_v1, 10.0  ;;  %v1693_v19 = vld [vmem:[%s6217_s2 + $0x140] sm:$0xff] }
 0x1ce   :  { %v3269_v29 = vpop.eup %3268  ;;  %3011 = vst.msk [vmem:[%s6218_s3 + $0x110] sm:$0xff] %vm2976_vm15, %v2947_v43  ;;  %v2068_v47 = vsub.f32 0.0, %v2005_v44  ;;  %vm1396_vm4 = vcmp.eq.f32.partialorder %v5413_v40, inf  ;;  %vm1398_vm5 = vcmp.eq.f32.partialorder %v5413_v40, 0.0  ;;  %v2522_v24 = vmul.f32 %v3263_v34, %v2521_v35 }
 0x1cf   :  { %v3271_v26 = vpop.eup %3270  ;;  %v2562_v12 = vadd.f32 1.0, %v3269_v29  ;;  %v2565_v22 = vmul.f32 -0.5, %v3269_v29  ;;  %v1815_v20 = vmul.f32 %v1752_v28, %v1689_v36  ;;  %v1395_v15 = vmul.f32 %v1394_v21, %v5413_v40  ;;  %v5542_v36 = vpop.xlane.xlu0 %815 }
 0x1d0   :  { %v2519_v13 = vmul.f32 0.6931472, %v3271_v26  ;;  %v2168_v41 = vmul.f32 1.442695, %v2068_v47  ;;  %v1380_v25 = vmul.f32 0.5, %v1379_v46  ;;  %v3273_v10 = vpop.eup %3272  ;;  %v1399_v56 = vand.u32 2147483648, %v5413_v40 }
 0x1d1   :  { %vm2524_vm6 = vcmp.lt.f32.partialorder %v2523_v18, 0.0004427343  ;;  %3274 = vlog2.f32 %v2562_v12  ;;  %v5499_v37 = vsub.f32 1.0, %v1815_v20  ;;  %v1397_v14 = vsel %vm1396_vm4, %v5413_v40, %v1395_v15 }
 0x1d2   :  { %v2525_v17 = vsel %vm2524_vm6, %v2522_v24, %v2519_v13  ;;  %3276 = vpow2.f32 %v2168_v41  ;;  %v1381_v27 = vsub.f32 1.5, %v1380_v25  ;;  %v1943_v38 = vmax.f32 %v5437_v55, 0.0 }
 0x1d3   :  { %v2820_v11 = vadd.f32 %v2525_v17, %v1938_v0  ;;  %v2568_v52 = vand.u32 2147483647, %v3269_v29  ;;  %v2004_v33 = vand.u32 2147483647, %v5499_v37  ;;  %v2566_v9 = vadd.f32 1.0, %v2565_v22 }
 0x1d4   :  { %v1400_v39 = vsel %vm1398_vm5, %v1399_v56, %v1397_v14  ;;  %v1382_v57 = vmul.f32 %v3267_v4, %v1381_v27  ;;  %v1366_v58 = vmul.f32 %v3273_v10, %v5470_v5  ;;  %3278 = vrsqrt.f32 %v5505_v63 }
 0x1d5   :  { %v2946_v16 = vsel %vm2883_vm3, %v5407_v1, %v2820_v11  ;;  %v2067_v34 = vsub.f32 0.0, %v2004_v33  ;;  %v1757_v48 = vsub.f32 10.0, %v1400_v39  ;;  %vm1384_vm7 = vcmp.eq.f32.partialorder %v5445_v42, inf }
 0x1d6   :  { %3010 = vst.msk [vmem:[%s6218_s3 + $0x108] sm:$0xff] %vm2976_vm15, %v2946_v16  ;;  %v1383_v40 = vmul.f32 %v1382_v57, %v5445_v42  ;;  %vm1386_vm8 = vcmp.eq.f32.partialorder %v5445_v42, 0.0  ;;  %v1367_v45 = vmul.f32 %v3273_v10, %v1366_v58  ;;  %v1387_v1 = vand.u32 2147483648, %v5445_v42 }
 0x1d7   :  { %v3275_v53 = vpop.eup %3274  ;;  %v2166_v60 = vmul.f32 1.442695, %v2067_v34  ;;  %v1820_v54 = vmul.f32 %v1757_v48, %v1694_v30  ;;  %3280 = vrsqrt.f32 %v5515_v32  ;;  %v2567_v51 = vmul.f32 %v3269_v29, %v2566_v9  ;;  %v1692_v9 = vld [vmem:[%s6217_s2 + $0x138] sm:$0xff] }
 0x1d8   :  { %v3277_v23 = vpop.eup %3276  ;;  %v2564_v2 = vmul.f32 0.6931472, %v3275_v53  ;;  %v1385_v31 = vsel %vm1384_vm7, %v5445_v42, %v1383_v40  ;;  %v1368_v7 = vmul.f32 0.5, %v1367_v45  ;;  %vm2569_vm9 = vcmp.lt.f32.partialorder %v2568_v52, 0.0004427343  ;;  %v5575_v40 = vpop.xlane.xlu2 %835 }
 0x1d9   :  { %v2553_v50 = vadd.f32 1.0, %v3277_v23  ;;  %v2556_v61 = vmul.f32 -0.5, %v3277_v23  ;;  %3282 = vpow2.f32 %v2166_v60  ;;  %v5531_v6 = vsub.f32 1.0, %v1820_v54 }
 0x1da   :  { %v2570_v4 = vsel %vm2569_vm9, %v2567_v51, %v2564_v2  ;;  %v1388_v35 = vsel %vm1386_vm8, %v1387_v1, %v1385_v31  ;;  %v1369_v8 = vsub.f32 1.5, %v1368_v7  ;;  %v3279_v49 = vpop.eup %3278  ;;  %vm2888_vm10 = vcmp.gt.f32.partialorder %v5437_v55, 10.0 }
 0x1db   :  { %v2825_v3 = vadd.f32 %v2570_v4, %v1943_v38  ;;  %3284 = vlog2.f32 %v2553_v50  ;;  %v1942_v0 = vmax.f32 %v5474_v62, 0.0  ;;  %v2009_v18 = vand.u32 2147483647, %v5531_v6 }
 0x1dc   :  { %v1756_v44 = vsub.f32 10.0, %v1388_v35  ;;  %vm1372_vm0 = vcmp.eq.f32.partialorder %v5470_v5, inf  ;;  %v1370_v43 = vmul.f32 %v3273_v10, %v1369_v8  ;;  %vm1374_vm11 = vcmp.eq.f32.partialorder %v5470_v5, 0.0 }
 0x1dd   :  { %v5544_v42 = vpop.eup %3280  ;;  %v2951_v59 = vsel %vm2888_vm10, %v5437_v55, %v2825_v3  ;;  %v1426_v28 = vmul.f32 %v3279_v49, %v5505_v63  ;;  %v2557_v21 = vadd.f32 1.0, %v2556_v61  ;;  %vm2887_vm12 = vcmp.gt.f32.partialorder %v5474_v62, 10.0 }
 0x1de   :  { %3015 = vst.msk [vmem:[%s6218_s3 + $0x130] sm:$0xff] %vm2976_vm15, %v2951_v59  ;;  %v2072_v46 = vsub.f32 0.0, %v2009_v18  ;;  %v1819_v29 = vmul.f32 %v1756_v44, %v1693_v19  ;;  %v1414_v47 = vmul.f32 %v5544_v42, %v5515_v32  ;;  %v2559_v55 = vand.u32 2147483647, %v3277_v23 }
 0x1df   :  { %v3283_v26 = vpop.eup %3282  ;;  %v1371_v24 = vmul.f32 %v1370_v43, %v5470_v5  ;;  %v1427_v12 = vmul.f32 %v3279_v49, %v1426_v28  ;;  %3286 = vrsqrt.f32 %v5542_v36  ;;  %v1375_v41 = vand.u32 2147483648, %v5470_v5  ;;  %v1697_v43 = vld [vmem:[%s6217_s2 + $0x160] sm:$0xff] }
 0x1e0   :  { %v2544_v22 = vadd.f32 1.0, %v3283_v26  ;;  %v2547_v20 = vmul.f32 -0.5, %v3283_v26  ;;  %v2176_v13 = vmul.f32 1.442695, %v2072_v46  ;;  %v5559_v25 = vsub.f32 1.0, %v1819_v29 }
 0x1e1   :  { %v3285_v15 = vpop.eup %3284  ;;  %v1373_v10 = vsel %vm1372_vm0, %v5470_v5, %v1371_v24  ;;  %v1428_v56 = vmul.f32 0.5, %v1427_v12  ;;  %v1415_v17 = vmul.f32 %v5544_v42, %v1414_v47  ;;  %v2558_v27 = vmul.f32 %v3277_v23, %v2557_v21 }
 0x1e2   :  { %v2555_v14 = vmul.f32 0.6931472, %v3285_v15  ;;  %v1941_v11 = vmax.f32 %v5499_v37, 0.0  ;;  %3288 = vlog2.f32 %v2544_v22  ;;  %vm2560_vm13 = vcmp.lt.f32.partialorder %v2559_v55, 0.0004427343 }
 0x1e3   :  { %3290 = vpow2.f32 %v2176_v13  ;;  %v2008_v38 = vand.u32 2147483647, %v5559_v25  ;;  %vm1432_vm14 = vcmp.eq.f32.partialorder %v5505_v63, inf  ;;  %v2548_v33 = vadd.f32 1.0, %v2547_v20 }
 0x1e4   :  { %v2561_v52 = vsel %vm2560_vm13, %v2558_v27, %v2555_v14  ;;  %v1376_v30 = vsel %vm1374_vm11, %v1375_v41, %v1373_v10  ;;  %v1429_v39 = vsub.f32 1.5, %v1428_v56  ;;  %vm1434_vm1 = vcmp.eq.f32.partialorder %v5505_v63, 0.0 }
 0x1e5   :  { %v3287_v57 = vpop.eup %3286  ;;  %v2824_v58 = vadd.f32 %v2561_v52, %v1942_v0  ;;  %vm2886_vm2 = vcmp.gt.f32.partialorder %v5499_v37, 10.0  ;;  %v2071_v16 = vsub.f32 0.0, %v2008_v38  ;;  %v1755_v34 = vsub.f32 10.0, %v1376_v30  ;;  %v1696_v38 = vld [vmem:[%s6217_s2 + $0x158] sm:$0xff] }
 0x1e6   :  { %v1416_v48 = vmul.f32 0.5, %v1415_v17  ;;  %v2550_v45 = vand.u32 2147483647, %v3283_v26  ;;  %v1430_v53 = vmul.f32 %v3279_v49, %v1429_v39  ;;  %v1435_v60 = vand.u32 2147483648, %v5505_v63 }
 0x1e7   :  { %v1402_v54 = vmul.f32 %v3287_v57, %v5542_v36  ;;  %v2950_v5 = vsel %vm2887_vm12, %v5474_v62, %v2824_v58  ;;  %v2174_v1 = vmul.f32 1.442695, %v2071_v16  ;;  %v1818_v23 = vmul.f32 %v1755_v34, %v1692_v9 }
 0x1e8   :  { %v1417_v2 = vsub.f32 1.5, %v1416_v48  ;;  %v3289_v51 = vpop.eup %3288  ;;  %3014 = vst.msk [vmem:[%s6218_s3 + $0x128] sm:$0xff] %vm2976_vm15, %v2950_v5  ;;  %v2549_v31 = vmul.f32 %v3283_v26, %v2548_v33  ;;  %v1431_v7 = vmul.f32 %v1430_v53, %v5505_v63  ;;  %3292 = vrsqrt.f32 %v5575_v40 }
 0x1e9   :  { %v1403_v50 = vmul.f32 %v3287_v57, %v1402_v54  ;;  %v3291_v61 = vpop.eup %3290  ;;  %v2546_v4 = vmul.f32 0.6931472, %v3289_v51  ;;  %3294 = vpow2.f32 %v2174_v1  ;;  %v5588_v35 = vsub.f32 1.0, %v1818_v23  ;;  %v1695_v54 = vld [vmem:[%s6217_s2 + $0x150] sm:$0xff] }
 0x1ea   :  { %v1418_v62 = vmul.f32 %v5544_v42, %v1417_v2  ;;  %vm2551_vm3 = vcmp.lt.f32.partialorder %v2550_v45, 0.0004427343  ;;  %v2589_v8 = vadd.f32 1.0, %v3291_v61  ;;  %v2592_v49 = vmul.f32 -0.5, %v3291_v61 }
 0x1eb   :  { %v1433_v3 = vsel %vm1432_vm14, %v5505_v63, %v1431_v7  ;;  %v2552_v19 = vsel %vm2551_vm3, %v2549_v31, %v2546_v4  ;;  %v1946_v0 = vmax.f32 %v5531_v6, 0.0  ;;  %v2007_v18 = vand.u32 2147483647, %v5588_v35 }
 0x1ec   :  { %vm1420_vm4 = vcmp.eq.f32.partialorder %v5515_v32, inf  ;;  %v2823_v44 = vadd.f32 %v2552_v19, %v1941_v11  ;;  %3296 = vlog2.f32 %v2589_v8  ;;  %vm1422_vm5 = vcmp.eq.f32.partialorder %v5515_v32, 0.0 }
 0x1ed   :  { %v1423_v42 = vand.u32 2147483648, %v5515_v32  ;;  %v2070_v59 = vsub.f32 0.0, %v2007_v18  ;;  %v1436_v28 = vsel %vm1434_vm1, %v1435_v60, %v1433_v3  ;;  %v1419_v21 = vmul.f32 %v1418_v62, %v5515_v32  ;;  %v5645_v3 = vpop.xlane.xlu1 %831 }
 0x1ee   :  { %v1404_v46 = vmul.f32 0.5, %v1403_v50  ;;  %v3293_v29 = vpop.eup %3292  ;;  %v2949_v47 = vsel %vm2886_vm2, %v5499_v37, %v2823_v44  ;;  %v2593_v26 = vadd.f32 1.0, %v2592_v49  ;;  %v1760_v55 = vsub.f32 10.0, %v1436_v28 }
 0x1ef   :  { %vm1408_vm6 = vcmp.eq.f32.partialorder %v5542_v36, inf  ;;  %v3295_v24 = vpop.eup %3294  ;;  %3013 = vst.msk [vmem:[%s6218_s3 + $0x120] sm:$0xff] %vm2976_vm15, %v2949_v47  ;;  %v2172_v63 = vmul.f32 1.442695, %v2070_v59  ;;  %v1421_v12 = vsel %vm1420_vm4, %v5515_v32, %v1419_v21  ;;  %v1462_v20 = vmul.f32 %v3293_v29, %v5575_v40 }
 0x1f0   :  { %v1405_v22 = vsub.f32 1.5, %v1404_v46  ;;  %v2595_v13 = vand.u32 2147483647, %v3291_v61  ;;  %v2580_v37 = vadd.f32 1.0, %v3295_v24  ;;  %v2583_v41 = vmul.f32 -0.5, %v3295_v24 }
 0x1f1   :  { %v1823_v15 = vmul.f32 %v1760_v55, %v1697_v43  ;;  %3298 = vpow2.f32 %v2172_v63  ;;  %v1424_v10 = vsel %vm1422_vm5, %v1423_v42, %v1421_v12  ;;  %v1463_v17 = vmul.f32 %v3293_v29, %v1462_v20 }
 0x1f2   :  { %v1406_v56 = vmul.f32 %v3287_v57, %v1405_v22  ;;  %v3297_v14 = vpop.eup %3296  ;;  %v2594_v27 = vmul.f32 %v3291_v61, %v2593_v26  ;;  %3300 = vlog2.f32 %v2580_v37  ;;  %vm1410_vm7 = vcmp.eq.f32.partialorder %v5542_v36, 0.0  ;;  %v5659_v26 = vpop.xlane.xlu0 %827 }
 0x1f3   :  { %v5619_v11 = vsub.f32 1.0, %v1823_v15  ;;  %v2591_v52 = vmul.f32 0.6931472, %v3297_v14  ;;  %v1759_v33 = vsub.f32 10.0, %v1424_v10  ;;  %v1464_v30 = vmul.f32 0.5, %v1463_v17 }
 0x1f4   :  { %v1407_v9 = vmul.f32 %v1406_v56, %v5542_v36  ;;  %vm2596_vm8 = vcmp.lt.f32.partialorder %v2595_v13, 0.0004427343  ;;  %v2584_v32 = vadd.f32 1.0, %v2583_v41  ;;  %v1411_v57 = vand.u32 2147483648, %v5542_v36  ;;  %v5670_v56 = vpop.xlane.xlu2 %847 }
 0x1f5   :  { %v2012_v39 = vand.u32 2147483647, %v5619_v11  ;;  %v2597_v58 = vsel %vm2596_vm8, %v2594_v27, %v2591_v52  ;;  %v1822_v16 = vmul.f32 %v1759_v33, %v1696_v38  ;;  %v1465_v48 = vsub.f32 1.5, %v1464_v30  ;;  %v5674_v27 = vpop.xlane.xlu1 %843 }
 0x1f6   :  { %v1409_v34 = vsel %vm1408_vm6, %v5542_v36, %v1407_v9  ;;  %v2828_v45 = vadd.f32 %v2597_v58, %v1946_v0  ;;  %v2586_v53 = vand.u32 2147483647, %v3295_v24  ;;  %vm2891_vm9 = vcmp.gt.f32.partialorder %v5531_v6, 10.0 }
 0x1f7   :  { %v2075_v60 = vsub.f32 0.0, %v2012_v39  ;;  %v1412_v5 = vsel %vm1410_vm7, %v1411_v57, %v1409_v34  ;;  %v3299_v1 = vpop.eup %3298  ;;  %v1945_v23 = vmax.f32 %v5559_v25, 0.0  ;;  %v5638_v2 = vsub.f32 1.0, %v1822_v16 }
 0x1f8   :  { %v1758_v51 = vsub.f32 10.0, %v1412_v5  ;;  %v3301_v31 = vpop.eup %3300  ;;  %v2954_v7 = vsel %vm2891_vm9, %v5531_v6, %v2828_v45  ;;  %v2585_v50 = vmul.f32 %v3295_v24, %v2584_v32  ;;  %v2571_v61 = vadd.f32 1.0, %v3299_v1  ;;  %v1700_v24 = vld [vmem:[%s6217_s2 + $0x178] sm:$0xff]  ;;  %v1698_v5 = vld [vmem:[%s6217_s2 + $0x168] sm:$0xff] }
 0x1f9   :  { %v1466_v4 = vmul.f32 %v3293_v29, %v1465_v48  ;;  %3018 = vst.msk [vmem:[%s6218_s3 + $0x148] sm:$0xff] %vm2976_vm15, %v2954_v7  ;;  %v2582_v36 = vmul.f32 0.6931472, %v3301_v31  ;;  %v2574_v62 = vmul.f32 -0.5, %v3299_v1  ;;  %v2182_v8 = vmul.f32 1.442695, %v2075_v60 }
 0x1fa   :  { %v1821_v49 = vmul.f32 %v1758_v51, %v1695_v54  ;;  %vm2587_vm10 = vcmp.lt.f32.partialorder %v2586_v53, 0.0004427343  ;;  %vm2890_vm0 = vcmp.gt.f32.partialorder %v5559_v25, 10.0  ;;  %3302 = vlog2.f32 %v2571_v61 }
 0x1fb   :  { %v2011_v6 = vand.u32 2147483647, %v5638_v2  ;;  %v2588_v19 = vsel %vm2587_vm10, %v2585_v50, %v2582_v36  ;;  %3304 = vpow2.f32 %v2182_v8  ;;  %vm1468_vm11 = vcmp.eq.f32.partialorder %v5575_v40, inf }
 0x1fc   :  { %v5649_v0 = vsub.f32 1.0, %v1821_v49  ;;  %v2827_v18 = vadd.f32 %v2588_v19, %v1945_v23  ;;  %v1467_v42 = vmul.f32 %v1466_v4, %v5575_v40  ;;  %vm1470_vm12 = vcmp.eq.f32.partialorder %v5575_v40, 0.0 }
 0x1fd   :  { %v2074_v44 = vsub.f32 0.0, %v2011_v6  ;;  %v2575_v59 = vadd.f32 1.0, %v2574_v62  ;;  %v1471_v28 = vand.u32 2147483648, %v5575_v40  ;;  %3306 = vrsqrt.f32 %v5645_v3 }
 0x1fe   :  { %v2010_v43 = vand.u32 2147483647, %v5649_v0  ;;  %v2953_v21 = vsel %vm2890_vm0, %v5559_v25, %v2827_v18  ;;  %v2577_v46 = vand.u32 2147483647, %v3299_v1  ;;  %v1469_v47 = vsel %vm1468_vm11, %v5575_v40, %v1467_v42 }
 0x1ff   :  { %v2180_v29 = vmul.f32 1.442695, %v2074_v44  ;;  %3017 = vst.msk [vmem:[%s6218_s3 + $0x140] sm:$0xff] %vm2976_vm15, %v2953_v21  ;;  %v1472_v63 = vsel %vm1470_vm12, %v1471_v28, %v1469_v47  ;;  %v1944_v25 = vmax.f32 %v5588_v35, 0.0  ;;  %v2576_v13 = vmul.f32 %v3299_v1, %v2575_v59  ;;  %v5713_v21 = vpop.xlane.xlu0 %839 }
 0x200   :  { %v2073_v55 = vsub.f32 0.0, %v2010_v43  ;;  %v3303_v12 = vpop.eup %3302  ;;  %v1763_v22 = vsub.f32 10.0, %v1472_v63  ;;  %vm2578_vm13 = vcmp.lt.f32.partialorder %v2577_v46, 0.0004427343  ;;  %vm2889_vm14 = vcmp.gt.f32.partialorder %v5588_v35, 10.0 }
 0x201   :  { %3308 = vpow2.f32 %v2180_v29  ;;  %v3305_v20 = vpop.eup %3304  ;;  %v2573_v40 = vmul.f32 0.6931472, %v3303_v12  ;;  %v1949_v39 = vmax.f32 %v5619_v11, 0.0  ;;  %vm2894_vm1 = vcmp.gt.f32.partialorder %v5619_v11, 10.0 }
 0x202   :  { %v2178_v37 = vmul.f32 1.442695, %v2073_v55  ;;  %3310 = vrsqrt.f32 %v5659_v26  ;;  %v2616_v41 = vadd.f32 1.0, %v3305_v20  ;;  %v2619_v15 = vmul.f32 -0.5, %v3305_v20 }
 0x203   :  { %v1826_v10 = vmul.f32 %v1763_v22, %v1700_v24  ;;  %v5672_v17 = vpop.eup %3306  ;;  %v2579_v14 = vsel %vm2578_vm13, %v2576_v13, %v2573_v40  ;;  %v2622_v52 = vand.u32 2147483647, %v3305_v20  ;;  %v1948_v16 = vmax.f32 %v5638_v2, 0.0 }
 0x204   :  { %3312 = vpow2.f32 %v2178_v37  ;;  %v2826_v38 = vadd.f32 %v2579_v14, %v1944_v25  ;;  %v1450_v9 = vmul.f32 %v5672_v17, %v5645_v3  ;;  %v2620_v57 = vadd.f32 1.0, %v2619_v15  ;;  %v5731_v15 = vpop.xlane.xlu2 %859 }
 0x205   :  { %3314 = vlog2.f32 %v2616_v41  ;;  %v5677_v33 = vsub.f32 1.0, %v1826_v10  ;;  %v1947_v45 = vmax.f32 %v5649_v0, 0.0  ;;  %vm5695_vm2 = vcmp.lt.f32.partialorder %v2622_v52, 0.0004427343 }
 0x206   :  { %3316 = vrsqrt.f32 %v5670_v56  ;;  %v2952_v32 = vsel %vm2889_vm14, %v5588_v35, %v2826_v38  ;;  %v1451_v53 = vmul.f32 %v5672_v17, %v1450_v9  ;;  %v1459_v1 = vand.u32 2147483648, %v5645_v3 }
 0x207   :  { %v3309_v30 = vpop.eup %3308  ;;  %3318 = vrsqrt.f32 %v5674_v27  ;;  %3016 = vst.msk [vmem:[%s6218_s3 + $0x138] sm:$0xff] %vm2976_vm15, %v2952_v32  ;;  %v2015_v35 = vand.u32 2147483647, %v5677_v33  ;;  %v1447_v23 = vand.u32 2147483648, %v5659_v26  ;;  %v2621_v31 = vmul.f32 %v3305_v20, %v2620_v57 }
 0x208   :  { %v3311_v58 = vpop.eup %3310  ;;  %v2607_v34 = vadd.f32 1.0, %v3309_v30  ;;  %v2610_v48 = vmul.f32 -0.5, %v3309_v30  ;;  %vm1456_vm3 = vcmp.eq.f32.partialorder %v5645_v3, inf  ;;  %v1452_v8 = vmul.f32 0.5, %v1451_v53 }
 0x209   :  { %v1438_v60 = vmul.f32 %v3311_v58, %v5659_v26  ;;  %v2078_v61 = vsub.f32 0.0, %v2015_v35  ;;  %vm1458_vm4 = vcmp.eq.f32.partialorder %v5645_v3, 0.0  ;;  %v2613_v19 = vand.u32 2147483647, %v3309_v30 }
 0x20a   :  { %v3313_v54 = vpop.eup %3312  ;;  %3320 = vlog2.f32 %v2607_v34  ;;  %v2611_v62 = vadd.f32 1.0, %v2610_v48  ;;  %vm2893_vm5 = vcmp.gt.f32.partialorder %v5638_v2, 10.0  ;;  %v1453_v59 = vsub.f32 1.5, %v1452_v8  ;;  %v1699_v48 = vld [vmem:[%s6217_s2 + $0x170] sm:$0xff] }
 0x20b   :  { %v3315_v51 = vpop.eup %3314  ;;  %v2598_v7 = vadd.f32 1.0, %v3313_v54  ;;  %v2601_v50 = vmul.f32 -0.5, %v3313_v54  ;;  %v1439_v49 = vmul.f32 %v3311_v58, %v1438_v60  ;;  %v2604_v18 = vand.u32 2147483647, %v3313_v54 }
 0x20c   :  { %v5702_v4 = vpop.eup %3316  ;;  %v2618_v36 = vmul.f32 0.6931472, %v3315_v51  ;;  %v2188_v44 = vmul.f32 1.442695, %v2078_v61  ;;  %vm1444_vm6 = vcmp.eq.f32.partialorder %v5659_v26, inf  ;;  %vm1446_vm7 = vcmp.eq.f32.partialorder %v5659_v26, 0.0 }
 0x20d   :  { %v5705_v6 = vpop.eup %3318  ;;  %3322 = vlog2.f32 %v2598_v7  ;;  %v1440_v43 = vmul.f32 0.5, %v1439_v49  ;;  %v1498_v28 = vmul.f32 %v5702_v4, %v5670_v56  ;;  %v2602_v29 = vadd.f32 1.0, %v2601_v50 }
 0x20e   :  { %v2624_v42 = vsel %vm5695_vm2, %v2621_v31, %v2618_v36  ;;  %3324 = vpow2.f32 %v2188_v44  ;;  %v1486_v47 = vmul.f32 %v5705_v6, %v5674_v27  ;;  %v2612_v24 = vmul.f32 %v3309_v30, %v2611_v62 }
 0x20f   :  { %v2831_v46 = vadd.f32 %v2624_v42, %v1949_v39  ;;  %vm2892_vm8 = vcmp.gt.f32.partialorder %v5649_v0, 10.0  ;;  %v1454_v63 = vmul.f32 %v5672_v17, %v1453_v59  ;;  %v1441_v12 = vsub.f32 1.5, %v1440_v43 }
 0x210   :  { %v3321_v55 = vpop.eup %3320  ;;  %v1499_v25 = vmul.f32 %v5702_v4, %v1498_v28  ;;  %v1487_v40 = vmul.f32 %v5705_v6, %v1486_v47  ;;  %3326 = vrsqrt.f32 %v5713_v21  ;;  %vm2614_vm9 = vcmp.lt.f32.partialorder %v2613_v19, 0.0004427343 }
 0x211   :  { %v2957_v22 = vsel %vm2894_vm1, %v5619_v11, %v2831_v46  ;;  %v2609_v20 = vmul.f32 0.6931472, %v3321_v55  ;;  %v1455_v13 = vmul.f32 %v1454_v63, %v5645_v3  ;;  %v1442_v37 = vmul.f32 %v3311_v58, %v1441_v12 }
 0x212   :  { %3021 = vst.msk [vmem:[%s6218_s3 + $0x160] sm:$0xff] %vm2976_vm15, %v2957_v22  ;;  %v1500_v41 = vmul.f32 0.5, %v1499_v25  ;;  %v2603_v11 = vmul.f32 %v3313_v54, %v2602_v29  ;;  %vm1504_vm10 = vcmp.eq.f32.partialorder %v5670_v56, inf  ;;  %v1488_v14 = vmul.f32 0.5, %v1487_v40  ;;  %v1703_v22 = vld [vmem:[%s6217_s2 + $0x190] sm:$0xff] }
 0x213   :  { %v3323_v10 = vpop.eup %3322  ;;  %v2615_v17 = vsel %vm2614_vm9, %v2612_v24, %v2609_v20  ;;  %v1457_v9 = vsel %vm1456_vm3, %v5645_v3, %v1455_v13  ;;  %v1443_v30 = vmul.f32 %v1442_v37, %v5659_v26  ;;  %vm2605_vm0 = vcmp.lt.f32.partialorder %v2604_v18, 0.0004427343 }
 0x214   :  { %v2830_v38 = vadd.f32 %v2615_v17, %v1948_v16  ;;  %v2600_v52 = vmul.f32 0.6931472, %v3323_v10  ;;  %v3325_v32 = vpop.eup %3324  ;;  %v1460_v39 = vsel %vm1458_vm4, %v1459_v1, %v1457_v9  ;;  %v1501_v57 = vsub.f32 1.5, %v1500_v41 }
 0x215   :  { %vm1506_vm11 = vcmp.eq.f32.partialorder %v5670_v56, 0.0  ;;  %3328 = vrsqrt.f32 %v5731_v15  ;;  %v2643_v34 = vadd.f32 1.0, %v3325_v32  ;;  %v1489_v35 = vsub.f32 1.5, %v1488_v14 }
 0x216   :  { %v2956_v58 = vsel %vm2893_vm5, %v5638_v2, %v2830_v38  ;;  %v2606_v16 = vsel %vm2605_vm0, %v2603_v11, %v2600_v52  ;;  %v3327_v53 = vpop.eup %3326  ;;  %v2646_v60 = vmul.f32 -0.5, %v3325_v32  ;;  %v1762_v54 = vsub.f32 10.0, %v1460_v39 }
 0x217   :  { %3020 = vst.msk [vmem:[%s6218_s3 + $0x158] sm:$0xff] %vm2976_vm15, %v2956_v58  ;;  %v2829_v3 = vadd.f32 %v2606_v16, %v1947_v45  ;;  %v1445_v2 = vsel %vm1444_vm6, %v5659_v26, %v1443_v30  ;;  %3330 = vlog2.f32 %v2643_v34  ;;  %v1502_v51 = vmul.f32 %v5702_v4, %v1501_v57  ;;  %v5815_v34 = vpop.xlane.xlu1 %855 }
 0x218   :  { %v1448_v1 = vsel %vm1446_vm7, %v1447_v23, %v1445_v2  ;;  %v1507_v45 = vand.u32 2147483648, %v5670_v56  ;;  %v1825_v7 = vmul.f32 %v1762_v54, %v1699_v48  ;;  %vm1492_vm12 = vcmp.eq.f32.partialorder %v5674_v27, inf  ;;  %v1701_v54 = vld [vmem:[%s6217_s2 + $0x180] sm:$0xff] }
 0x219   :  { %v2955_v31 = vsel %vm2892_vm8, %v5649_v0, %v2829_v3  ;;  %v1761_v50 = vsub.f32 10.0, %v1448_v1  ;;  %v1952_v26 = vmax.f32 %v5677_v33, 0.0  ;;  %v1503_v23 = vmul.f32 %v1502_v51, %v5670_v56  ;;  %v5821_v3 = vpop.xlane.xlu0 %851 }
 0x21a   :  { %3019 = vst.msk [vmem:[%s6218_s3 + $0x150] sm:$0xff] %vm2976_vm15, %v2955_v31  ;;  %v1490_v61 = vmul.f32 %v5705_v6, %v1489_v35  ;;  %v1474_v4 = vmul.f32 %v3327_v53, %v5713_v21  ;;  %v2647_v62 = vadd.f32 1.0, %v2646_v60  ;;  %v2649_v0 = vand.u32 2147483647, %v3325_v32 }
 0x21b   :  { %v3329_v36 = vpop.eup %3328  ;;  %v5778_v8 = vsub.f32 1.0, %v1825_v7  ;;  %v1824_v49 = vmul.f32 %v1761_v50, %v1698_v5  ;;  %v1505_v19 = vsel %vm1504_vm10, %v5670_v56, %v1503_v23  ;;  %vm1494_vm13 = vcmp.eq.f32.partialorder %v5674_v27, 0.0  ;;  %v1702_v56 = vld [vmem:[%s6217_s2 + $0x188] sm:$0xff] }
 0x21c   :  { %v1491_v18 = vmul.f32 %v1490_v61, %v5674_v27  ;;  %v1475_v44 = vmul.f32 %v3327_v53, %v1474_v4  ;;  %v1534_v42 = vmul.f32 %v3329_v36, %v5731_v15  ;;  %v1495_v43 = vand.u32 2147483648, %v5674_v27 }
 0x21d   :  { %v2014_v59 = vand.u32 2147483647, %v5778_v8  ;;  %v5786_v6 = vsub.f32 1.0, %v1824_v49  ;;  %v3331_v28 = vpop.eup %3330  ;;  %v1508_v46 = vsel %vm1506_vm11, %v1507_v45, %v1505_v19  ;;  %v2648_v63 = vmul.f32 %v3325_v32, %v2647_v62 }
 0x21e   :  { %v1493_v29 = vsel %vm1492_vm12, %v5674_v27, %v1491_v18  ;;  %v1476_v47 = vmul.f32 0.5, %v1475_v44  ;;  %v1535_v55 = vmul.f32 %v3329_v36, %v1534_v42  ;;  %v2645_v24 = vmul.f32 0.6931472, %v3331_v28  ;;  %v5838_v42 = vpop.xlane.xlu2 %871 }
 0x21f   :  { %v2077_v12 = vsub.f32 0.0, %v2014_v59  ;;  %v2013_v25 = vand.u32 2147483647, %v5786_v6  ;;  %vm2650_vm14 = vcmp.lt.f32.partialorder %v2649_v0, 0.0004427343  ;;  %v1766_v20 = vsub.f32 10.0, %v1508_v46 }
 0x220   :  { %v1496_v40 = vsel %vm1494_vm13, %v1495_v43, %v1493_v29  ;;  %v1477_v13 = vsub.f32 1.5, %v1476_v47  ;;  %v2651_v27 = vsel %vm2650_vm14, %v2648_v63, %v2645_v24  ;;  %v1536_v38 = vmul.f32 0.5, %v1535_v55  ;;  %v1706_v46 = vld [vmem:[%s6217_s2 + $0x1a8] sm:$0xff] }
 0x221   :  { %v2186_v37 = vmul.f32 1.442695, %v2077_v12  ;;  %v2076_v41 = vsub.f32 0.0, %v2013_v25  ;;  %v1765_v10 = vsub.f32 10.0, %v1496_v40  ;;  %v2834_v17 = vadd.f32 %v2651_v27, %v1952_v26 }
 0x222   :  { %v1829_v11 = vmul.f32 %v1766_v20, %v1703_v22  ;;  %v1478_v14 = vmul.f32 %v3327_v53, %v1477_v13  ;;  %vm2897_vm1 = vcmp.gt.f32.partialorder %v5677_v33, 10.0  ;;  %v1537_v57 = vsub.f32 1.5, %v1536_v38 }
 0x223   :  { %3332 = vpow2.f32 %v2186_v37  ;;  %v2184_v52 = vmul.f32 1.442695, %v2076_v41  ;;  %v1828_v9 = vmul.f32 %v1765_v10, %v1702_v56  ;;  %v2960_v30 = vsel %vm2897_vm1, %v5677_v33, %v2834_v17 }
 0x224   :  { %v5804_v32 = vsub.f32 1.0, %v1829_v11  ;;  %v1479_v39 = vmul.f32 %v1478_v14, %v5713_v21  ;;  %3024 = vst.msk [vmem:[%s6218_s3 + $0x178] sm:$0xff] %vm2976_vm15, %v2960_v30  ;;  %vm1480_vm2 = vcmp.eq.f32.partialorder %v5713_v21, inf  ;;  %v1483_v16 = vand.u32 2147483648, %v5713_v21 }
 0x225   :  { %3334 = vpow2.f32 %v2184_v52  ;;  %v5811_v58 = vsub.f32 1.0, %v1828_v9  ;;  %vm1482_vm3 = vcmp.eq.f32.partialorder %v5713_v21, 0.0  ;;  %v1538_v5 = vmul.f32 %v3329_v36, %v1537_v57 }
 0x226   :  { %v2018_v33 = vand.u32 2147483647, %v5804_v32  ;;  %v1481_v48 = vsel %vm1480_vm2, %v5713_v21, %v1479_v39  ;;  %3336 = vrsqrt.f32 %v5815_v34  ;;  %vm1540_vm4 = vcmp.eq.f32.partialorder %v5731_v15, inf }
 0x227   :  { %v2017_v35 = vand.u32 2147483647, %v5811_v58  ;;  %v1484_v53 = vsel %vm1482_vm3, %v1483_v16, %v1481_v48  ;;  %3338 = vrsqrt.f32 %v5821_v3  ;;  %v1539_v23 = vmul.f32 %v1538_v5, %v5731_v15  ;;  %v5881_v5 = vpop.xlane.xlu1 %867 }
 0x228   :  { %v2081_v60 = vsub.f32 0.0, %v2018_v33  ;;  %v1764_v2 = vsub.f32 10.0, %v1484_v53  ;;  %v1543_v19 = vand.u32 2147483648, %v5731_v15  ;;  %v1951_v18 = vmax.f32 %v5778_v8, 0.0 }
 0x229   :  { %v3333_v1 = vpop.eup %3332  ;;  %v2080_v51 = vsub.f32 0.0, %v2017_v35  ;;  %v1541_v49 = vsel %vm1540_vm4, %v5731_v15, %v1539_v23  ;;  %vm1542_vm5 = vcmp.eq.f32.partialorder %v5731_v15, 0.0  ;;  %vm2896_vm6 = vcmp.gt.f32.partialorder %v5778_v8, 10.0  ;;  %v5901_v23 = vpop.xlane.xlu0 %863 }
 0x22a   :  { %v2634_v45 = vadd.f32 1.0, %v3333_v1  ;;  %v2194_v31 = vmul.f32 1.442695, %v2081_v60  ;;  %v2637_v7 = vmul.f32 -0.5, %v3333_v1  ;;  %v1827_v26 = vmul.f32 %v1764_v2, %v1701_v54 }
 0x22b   :  { %v3335_v21 = vpop.eup %3334  ;;  %v2192_v50 = vmul.f32 1.442695, %v2080_v51  ;;  %v2640_v0 = vand.u32 2147483647, %v3333_v1  ;;  %v1544_v29 = vsel %vm1542_vm5, %v1543_v19, %v1541_v49  ;;  %v1950_v55 = vmax.f32 %v5786_v6, 0.0 }
 0x22c   :  { %3340 = vlog2.f32 %v2634_v45  ;;  %v2625_v61 = vadd.f32 1.0, %v3335_v21  ;;  %v2628_v4 = vmul.f32 -0.5, %v3335_v21  ;;  %v5829_v62 = vsub.f32 1.0, %v1827_v26  ;;  %v5832_v36 = vpop.eup %3336 }
 0x22d   :  { %3342 = vpow2.f32 %v2194_v31  ;;  %v2638_v44 = vadd.f32 1.0, %v2637_v7  ;;  %v5840_v59 = vpop.eup %3338  ;;  %v2631_v43 = vand.u32 2147483647, %v3335_v21  ;;  %v1522_v47 = vmul.f32 %v5832_v36, %v5815_v34 }
 0x22e   :  { %3344 = vlog2.f32 %v2625_v61  ;;  %v2016_v28 = vand.u32 2147483647, %v5829_v62  ;;  %v2629_v15 = vadd.f32 1.0, %v2628_v4  ;;  %v1769_v24 = vsub.f32 10.0, %v1544_v29 }
 0x22f   :  { %3346 = vpow2.f32 %v2192_v50  ;;  %vm5850_vm7 = vcmp.lt.f32.partialorder %v2640_v0, 0.0004427343  ;;  %v1523_v22 = vmul.f32 %v5832_v36, %v1522_v47  ;;  %v2639_v40 = vmul.f32 %v3333_v1, %v2638_v44 }
 0x230   :  { %v2079_v25 = vsub.f32 0.0, %v2016_v28  ;;  %3348 = vrsqrt.f32 %v5838_v42  ;;  %v1832_v13 = vmul.f32 %v1769_v24, %v1706_v46  ;;  %v1510_v27 = vmul.f32 %v5840_v59, %v5821_v3 }
 0x231   :  { %vm5858_vm8 = vcmp.lt.f32.partialorder %v2631_v43, 0.0004427343  ;;  %vm2895_vm9 = vcmp.gt.f32.partialorder %v5786_v6, 10.0  ;;  %v2630_v52 = vmul.f32 %v3335_v21, %v2629_v15  ;;  %v1524_v57 = vmul.f32 0.5, %v1523_v22 }
 0x232   :  { %v3341_v63 = vpop.eup %3340  ;;  %v2190_v17 = vmul.f32 1.442695, %v2079_v25  ;;  %v5867_v39 = vsub.f32 1.0, %v1832_v13  ;;  %vm1528_vm10 = vcmp.eq.f32.partialorder %v5815_v34, inf  ;;  %v1511_v35 = vmul.f32 %v5840_v59, %v1510_v27 }
 0x233   :  { %v3343_v20 = vpop.eup %3342  ;;  %v2636_v56 = vmul.f32 0.6931472, %v3341_v63  ;;  %vm1530_vm0 = vcmp.eq.f32.partialorder %v5815_v34, 0.0  ;;  %v1955_v1 = vmax.f32 %v5804_v32, 0.0  ;;  %vm2900_vm11 = vcmp.gt.f32.partialorder %v5804_v32, 10.0 }
 0x234   :  { %v3345_v37 = vpop.eup %3344  ;;  %v2670_v10 = vadd.f32 1.0, %v3343_v20  ;;  %v2673_v9 = vmul.f32 -0.5, %v3343_v20  ;;  %v2676_v2 = vand.u32 2147483647, %v3343_v20  ;;  %v2021_v31 = vand.u32 2147483647, %v5867_v39 }
 0x235   :  { %v5863_v11 = vpop.eup %3346  ;;  %v2642_v14 = vsel %vm5850_vm7, %v2639_v40, %v2636_v56  ;;  %v2627_v38 = vmul.f32 0.6931472, %v3345_v37  ;;  %v1525_v21 = vsub.f32 1.5, %v1524_v57  ;;  %v1954_v7 = vmax.f32 %v5811_v58, 0.0  ;;  %v1705_v56 = vld [vmem:[%s6217_s2 + $0x1a0] sm:$0xff] }
 0x236   :  { %v2833_v30 = vadd.f32 %v2642_v14, %v1951_v18  ;;  %3350 = vlog2.f32 %v2670_v10  ;;  %v2661_v33 = vadd.f32 1.0, %v5863_v11  ;;  %v2664_v48 = vmul.f32 -0.5, %v5863_v11  ;;  %v5875_v53 = vpop.eup %3348 }
 0x237   :  { %v2633_v16 = vsel %vm5858_vm8, %v2630_v52, %v2627_v38  ;;  %3352 = vpow2.f32 %v2190_v17  ;;  %v2674_v51 = vadd.f32 1.0, %v2673_v9  ;;  %v1512_v50 = vmul.f32 0.5, %v1511_v35  ;;  %v5941_v38 = vpop.xlane.xlu2 %883 }
 0x238   :  { %v2959_v60 = vsel %vm2896_vm6, %v5778_v8, %v2833_v30  ;;  %v2832_v54 = vadd.f32 %v2633_v16, %v1950_v55  ;;  %3354 = vlog2.f32 %v2661_v33  ;;  %v2665_v45 = vadd.f32 1.0, %v2664_v48 }
 0x239   :  { %3023 = vst.msk [vmem:[%s6218_s3 + $0x170] sm:$0xff] %vm2976_vm15, %v2959_v60  ;;  %v1570_v26 = vmul.f32 %v5875_v53, %v5838_v42  ;;  %3356 = vrsqrt.f32 %v5881_v5  ;;  %vm5903_vm12 = vcmp.lt.f32.partialorder %v2676_v2, 0.0004427343  ;;  %vm2899_vm13 = vcmp.gt.f32.partialorder %v5811_v58, 10.0 }
 0x23a   :  { %v2958_v8 = vsel %vm2895_vm9, %v5786_v6, %v2832_v54  ;;  %v2084_v4 = vsub.f32 0.0, %v2021_v31  ;;  %v1526_v0 = vmul.f32 %v5832_v36, %v1525_v21  ;;  %v1531_v49 = vand.u32 2147483648, %v5815_v34 }
 0x23b   :  { %3022 = vst.msk [vmem:[%s6218_s3 + $0x168] sm:$0xff] %vm2976_vm15, %v2958_v8  ;;  %v2675_v18 = vmul.f32 %v3343_v20, %v2674_v51  ;;  %v2666_v44 = vmul.f32 %v5863_v11, %v2665_v45  ;;  %v2667_v43 = vand.u32 2147483647, %v5863_v11  ;;  %vm1516_vm14 = vcmp.eq.f32.partialorder %v5821_v3, inf }
 0x23c   :  { %v3351_v6 = vpop.eup %3350  ;;  %v2200_v46 = vmul.f32 1.442695, %v2084_v4  ;;  %v1527_v29 = vmul.f32 %v1526_v0, %v5815_v34  ;;  %v1513_v47 = vsub.f32 1.5, %v1512_v50  ;;  %vm1518_vm1 = vcmp.eq.f32.partialorder %v5821_v3, 0.0  ;;  %v1704_v50 = vld [vmem:[%s6217_s2 + $0x198] sm:$0xff] }
 0x23d   :  { %v2672_v19 = vmul.f32 0.6931472, %v3351_v6  ;;  %v3353_v28 = vpop.eup %3352  ;;  %3358 = vrsqrt.f32 %v5901_v23  ;;  %v1571_v63 = vmul.f32 %v5875_v53, %v1570_v26  ;;  %vm2668_vm2 = vcmp.lt.f32.partialorder %v2667_v43, 0.0004427343 }
 0x23e   :  { %v3355_v36 = vpop.eup %3354  ;;  %v2652_v15 = vadd.f32 1.0, %v3353_v28  ;;  %v2655_v24 = vmul.f32 -0.5, %v3353_v28  ;;  %3360 = vpow2.f32 %v2200_v46  ;;  %v1529_v22 = vsel %vm1528_vm10, %v5815_v34, %v1527_v29 }
 0x23f   :  { %v2678_v55 = vsel %vm5903_vm12, %v2675_v18, %v2672_v19  ;;  %v2663_v25 = vmul.f32 0.6931472, %v3355_v36  ;;  %v5922_v20 = vpop.eup %3356  ;;  %v1532_v40 = vsel %vm1530_vm0, %v1531_v49, %v1529_v22  ;;  %v1519_v13 = vand.u32 2147483648, %v5821_v3  ;;  %v1709_v22 = vld [vmem:[%s6217_s2 + $0x1c0] sm:$0xff] }
 0x240   :  { %v2837_v12 = vadd.f32 %v2678_v55, %v1955_v1  ;;  %3362 = vlog2.f32 %v2652_v15  ;;  %v1768_v41 = vsub.f32 10.0, %v1532_v40  ;;  %v1514_v10 = vmul.f32 %v5840_v59, %v1513_v47 }
 0x241   :  { %v2669_v37 = vsel %vm2668_vm2, %v2666_v44, %v2663_v25  ;;  %v1953_v11 = vmax.f32 %v5829_v62, 0.0  ;;  %v1572_v34 = vmul.f32 0.5, %v1571_v63  ;;  %v1558_v14 = vmul.f32 %v5922_v20, %v5881_v5 }
 0x242   :  { %v2963_v27 = vsel %vm2900_vm11, %v5804_v32, %v2837_v12  ;;  %v2836_v17 = vadd.f32 %v2669_v37, %v1954_v7  ;;  %v2656_v32 = vadd.f32 1.0, %v2655_v24  ;;  %vm2898_vm3 = vcmp.gt.f32.partialorder %v5829_v62, 10.0 }
 0x243   :  { %3027 = vst.msk [vmem:[%s6218_s3 + $0x190] sm:$0xff] %vm2976_vm15, %v2963_v27  ;;  %v5943_v52 = vpop.eup %3358  ;;  %v1831_v59 = vmul.f32 %v1768_v41, %v1705_v56  ;;  %v1515_v9 = vmul.f32 %v1514_v10, %v5821_v3  ;;  %v2658_v57 = vand.u32 2147483647, %v3353_v28  ;;  %v1573_v16 = vsub.f32 1.5, %v1572_v34 }
 0x244   :  { %v2962_v30 = vsel %vm2899_vm13, %v5811_v58, %v2836_v17  ;;  %vm1576_vm4 = vcmp.eq.f32.partialorder %v5838_v42, inf  ;;  %v1579_v33 = vand.u32 2147483648, %v5838_v42  ;;  %v3361_v48 = vpop.eup %3360  ;;  %vm1578_vm5 = vcmp.eq.f32.partialorder %v5838_v42, 0.0 }
 0x245   :  { %3026 = vst.msk [vmem:[%s6218_s3 + $0x188] sm:$0xff] %vm2976_vm15, %v2962_v30  ;;  %v5956_v35 = vsub.f32 1.0, %v1831_v59  ;;  %v1517_v60 = vsel %vm1516_vm14, %v5821_v3, %v1515_v9  ;;  %v1559_v58 = vmul.f32 %v5922_v20, %v1558_v14  ;;  %3364 = vrsqrt.f32 %v5941_v38 }
 0x246   :  { %v3363_v54 = vpop.eup %3362  ;;  %v2697_v2 = vadd.f32 1.0, %v3361_v48  ;;  %v2700_v1 = vmul.f32 -0.5, %v3361_v48  ;;  %v1520_v51 = vsel %vm1518_vm1, %v1519_v13, %v1517_v60  ;;  %v1546_v45 = vmul.f32 %v5943_v52, %v5901_v23 }
 0x247   :  { %v2654_v8 = vmul.f32 0.6931472, %v3363_v54  ;;  %v2657_v31 = vmul.f32 %v3353_v28, %v2656_v32  ;;  %v1958_v21 = vmax.f32 %v5867_v39, 0.0  ;;  %v2020_v7 = vand.u32 2147483647, %v5956_v35 }
 0x248   :  { %vm2659_vm6 = vcmp.lt.f32.partialorder %v2658_v57, 0.0004427343  ;;  %3366 = vlog2.f32 %v2697_v2  ;;  %v1767_v26 = vsub.f32 10.0, %v1520_v51  ;;  %vm1564_vm7 = vcmp.eq.f32.partialorder %v5881_v5, inf  ;;  %v1708_v57 = vld [vmem:[%s6217_s2 + $0x1b8] sm:$0xff] }
 0x249   :  { %v2660_v3 = vsel %vm2659_vm6, %v2657_v31, %v2654_v8  ;;  %v2083_v6 = vsub.f32 0.0, %v2020_v7  ;;  %v1574_v61 = vmul.f32 %v5875_v53, %v1573_v16  ;;  %v1560_v4 = vmul.f32 0.5, %v1559_v58  ;;  %v6032_v31 = vpop.xlane.xlu0 %875 }
 0x24a   :  { %v2835_v0 = vadd.f32 %v2660_v3, %v1953_v11  ;;  %v2701_v49 = vadd.f32 1.0, %v2700_v1  ;;  %v1830_v19 = vmul.f32 %v1767_v26, %v1704_v50  ;;  %v1547_v18 = vmul.f32 %v5943_v52, %v1546_v45  ;;  %v1707_v26 = vld [vmem:[%s6217_s2 + $0x1b0] sm:$0xff] }
 0x24b   :  { %v5976_v44 = vpop.eup %3364  ;;  %v2703_v43 = vand.u32 2147483647, %v3361_v48  ;;  %v2198_v28 = vmul.f32 1.442695, %v2083_v6  ;;  %v1575_v46 = vmul.f32 %v1574_v61, %v5838_v42  ;;  %v1561_v29 = vsub.f32 1.5, %v1560_v4 }
 0x24c   :  { %v2961_v47 = vsel %vm2898_vm3, %v5829_v62, %v2835_v0  ;;  %v5982_v36 = vsub.f32 1.0, %v1830_v19  ;;  %v1548_v53 = vmul.f32 0.5, %v1547_v18  ;;  %v1606_v55 = vmul.f32 %v5976_v44, %v5941_v38  ;;  %v5995_v62 = vpop.xlane.xlu1 %879 }
 0x24d   :  { %3025 = vst.msk [vmem:[%s6218_s3 + $0x180] sm:$0xff] %vm2976_vm15, %v2961_v47  ;;  %3368 = vpow2.f32 %v2198_v28  ;;  %v1577_v15 = vsel %vm1576_vm4, %v5838_v42, %v1575_v46  ;;  %v1562_v24 = vmul.f32 %v5922_v20, %v1561_v29  ;;  %vm1566_vm8 = vcmp.eq.f32.partialorder %v5881_v5, 0.0 }
 0x24e   :  { %v3367_v63 = vpop.eup %3366  ;;  %v2702_v12 = vmul.f32 %v3361_v48, %v2701_v49  ;;  %v2019_v25 = vand.u32 2147483647, %v5982_v36  ;;  %v1580_v56 = vsel %vm1578_vm5, %v1579_v33, %v1577_v15  ;;  %v1567_v40 = vand.u32 2147483648, %v5881_v5 }
 0x24f   :  { %v2699_v13 = vmul.f32 0.6931472, %v3367_v63  ;;  %v1772_v27 = vsub.f32 10.0, %v1580_v56  ;;  %v1563_v20 = vmul.f32 %v1562_v24, %v5881_v5  ;;  %v1549_v37 = vsub.f32 1.5, %v1548_v53 }
 0x250   :  { %vm2704_vm9 = vcmp.lt.f32.partialorder %v2703_v43, 0.0004427343  ;;  %v2082_v41 = vsub.f32 0.0, %v2019_v25  ;;  %v1607_v10 = vmul.f32 %v5976_v44, %v1606_v55  ;;  %3370 = vrsqrt.f32 %v5995_v62 }
 0x251   :  { %v2705_v17 = vsel %vm2704_vm9, %v2702_v12, %v2699_v13  ;;  %v1835_v11 = vmul.f32 %v1772_v27, %v1709_v22  ;;  %v1565_v42 = vsel %vm1564_vm7, %v5881_v5, %v1563_v20  ;;  %v1550_v34 = vmul.f32 %v5943_v52, %v1549_v37  ;;  %v1712_v37 = vld [vmem:[%s6217_s2 + $0x1d8] sm:$0xff] }
 0x252   :  { %v2840_v14 = vadd.f32 %v2705_v17, %v1958_v21  ;;  %vm2903_vm10 = vcmp.gt.f32.partialorder %v5867_v39, 10.0  ;;  %v2196_v32 = vmul.f32 1.442695, %v2082_v41  ;;  %v1568_v59 = vsel %vm1566_vm8, %v1567_v40, %v1565_v42 }
 0x253   :  { %v3369_v9 = vpop.eup %3368  ;;  %v6014_v30 = vsub.f32 1.0, %v1835_v11  ;;  %v1771_v16 = vsub.f32 10.0, %v1568_v59  ;;  %v1551_v33 = vmul.f32 %v1550_v34, %v5901_v23  ;;  %v1608_v48 = vmul.f32 0.5, %v1607_v10 }
 0x254   :  { %v2966_v52 = vsel %vm2903_vm10, %v5867_v39, %v2840_v14  ;;  %v2688_v60 = vadd.f32 1.0, %v3369_v9  ;;  %v2691_v58 = vmul.f32 -0.5, %v3369_v9  ;;  %3372 = vpow2.f32 %v2196_v32 }
 0x255   :  { %3030 = vst.msk [vmem:[%s6218_s3 + $0x1a8] sm:$0xff] %vm2976_vm15, %v2966_v52  ;;  %v2024_v5 = vand.u32 2147483647, %v6014_v30  ;;  %vm1552_vm0 = vcmp.eq.f32.partialorder %v5901_v23, inf  ;;  %vm1554_vm11 = vcmp.eq.f32.partialorder %v5901_v23, 0.0  ;;  %v1834_v2 = vmul.f32 %v1771_v16, %v1708_v57 }
 0x256   :  { %v3371_v54 = vpop.eup %3370  ;;  %3374 = vlog2.f32 %v2688_v60  ;;  %v1555_v1 = vand.u32 2147483648, %v5901_v23  ;;  %vm1612_vm12 = vcmp.eq.f32.partialorder %v5941_v38, inf  ;;  %v1553_v51 = vsel %vm1552_vm0, %v5901_v23, %v1551_v33 }
 0x257   :  { %v2087_v39 = vsub.f32 0.0, %v2024_v5  ;;  %v1609_v45 = vsub.f32 1.5, %v1608_v48  ;;  %v1594_v8 = vmul.f32 %v3371_v54, %v5995_v62  ;;  %v1957_v21 = vmax.f32 %v5956_v35, 0.0 }
 0x258   :  { %v2692_v7 = vadd.f32 1.0, %v2691_v58  ;;  %v6035_v50 = vsub.f32 1.0, %v1834_v2  ;;  %v1556_v3 = vsel %vm1554_vm11, %v1555_v1, %v1553_v51  ;;  %vm2902_vm13 = vcmp.gt.f32.partialorder %v5956_v35, 10.0 }
 0x259   :  { %v2206_v6 = vmul.f32 1.442695, %v2087_v39  ;;  %v1770_v61 = vsub.f32 10.0, %v1556_v3  ;;  %v1610_v23 = vmul.f32 %v5976_v44, %v1609_v45  ;;  %v1595_v4 = vmul.f32 %v3371_v54, %v1594_v8  ;;  %v1711_v3 = vld [vmem:[%s6217_s2 + $0x1d0] sm:$0xff] }
 0x25a   :  { %v2694_v0 = vand.u32 2147483647, %v3369_v9  ;;  %v2023_v49 = vand.u32 2147483647, %v6035_v50  ;;  %vm1614_vm14 = vcmp.eq.f32.partialorder %v5941_v38, 0.0  ;;  %3376 = vrsqrt.f32 %v6032_v31  ;;  %v3373_v19 = vpop.eup %3372 }
 0x25b   :  { %3378 = vpow2.f32 %v2206_v6  ;;  %v1833_v18 = vmul.f32 %v1770_v61, %v1707_v26  ;;  %v1611_v43 = vmul.f32 %v1610_v23, %v5941_v38  ;;  %v1596_v28 = vmul.f32 0.5, %v1595_v4  ;;  %v6085_v6 = vpop.xlane.xlu2 %895 }
 0x25c   :  { %v3375_v46 = vpop.eup %3374  ;;  %v2693_v29 = vmul.f32 %v3369_v9, %v2692_v7  ;;  %v2679_v47 = vadd.f32 1.0, %v3373_v19  ;;  %v2682_v53 = vmul.f32 -0.5, %v3373_v19  ;;  %v2086_v55 = vsub.f32 0.0, %v2023_v49 }
 0x25d   :  { %v2690_v44 = vmul.f32 0.6931472, %v3375_v46  ;;  %v6046_v15 = vsub.f32 1.0, %v1833_v18  ;;  %v1613_v24 = vsel %vm1612_vm12, %v5941_v38, %v1611_v43  ;;  %v1597_v63 = vsub.f32 1.5, %v1596_v28 }
 0x25e   :  { %vm2695_vm1 = vcmp.lt.f32.partialorder %v2694_v0, 0.0004427343  ;;  %3380 = vlog2.f32 %v2679_v47  ;;  %v2204_v12 = vmul.f32 1.442695, %v2086_v55  ;;  %v1615_v25 = vand.u32 2147483648, %v5941_v38 }
 0x25f   :  { %v2696_v22 = vsel %vm2695_vm1, %v2693_v29, %v2690_v44  ;;  %v1956_v56 = vmax.f32 %v5982_v36, 0.0  ;;  %v2022_v40 = vand.u32 2147483647, %v6046_v15  ;;  %vm1600_vm2 = vcmp.eq.f32.partialorder %v5995_v62, inf }
 0x260   :  { %v6055_v13 = vpop.eup %3376  ;;  %v2839_v27 = vadd.f32 %v2696_v22, %v1957_v21  ;;  %v2683_v20 = vadd.f32 1.0, %v2682_v53  ;;  %3382 = vpow2.f32 %v2204_v12  ;;  %v1616_v41 = vsel %vm1614_vm14, %v1615_v25, %v1613_v24  ;;  %v6100_v25 = vpop.xlane.xlu1 %891 }
 0x261   :  { %v3379_v10 = vpop.eup %3378  ;;  %v2085_v17 = vsub.f32 0.0, %v2022_v40  ;;  %v1775_v11 = vsub.f32 10.0, %v1616_v41  ;;  %v1598_v42 = vmul.f32 %v3371_v54, %v1597_v63  ;;  %v1582_v34 = vmul.f32 %v6055_v13, %v6032_v31 }
 0x262   :  { %v2965_v14 = vsel %vm2902_vm13, %v5956_v35, %v2839_v27  ;;  %v2685_v32 = vand.u32 2147483647, %v3373_v19  ;;  %v2724_v59 = vadd.f32 1.0, %v3379_v10  ;;  %v2727_v9 = vmul.f32 -0.5, %v3379_v10 }
 0x263   :  { %3029 = vst.msk [vmem:[%s6218_s3 + $0x1a0] sm:$0xff] %vm2976_vm15, %v2965_v14  ;;  %v2202_v38 = vmul.f32 1.442695, %v2085_v17  ;;  %v1838_v57 = vmul.f32 %v1775_v11, %v1712_v37  ;;  %v1599_v16 = vmul.f32 %v1598_v42, %v5995_v62  ;;  %v1583_v33 = vmul.f32 %v6055_v13, %v1582_v34  ;;  %v6118_v42 = vpop.xlane.xlu0 %887 }
 0x264   :  { %v3381_v48 = vpop.eup %3380  ;;  %v2684_v52 = vmul.f32 %v3373_v19, %v2683_v20  ;;  %3384 = vlog2.f32 %v2724_v59  ;;  %vm1602_vm3 = vcmp.eq.f32.partialorder %v5995_v62, 0.0  ;;  %v1603_v35 = vand.u32 2147483648, %v5995_v62 }
 0x265   :  { %v2681_v60 = vmul.f32 0.6931472, %v3381_v48  ;;  %3386 = vpow2.f32 %v2202_v38  ;;  %v6075_v58 = vsub.f32 1.0, %v1838_v57  ;;  %v1601_v5 = vsel %vm1600_vm2, %v5995_v62, %v1599_v16  ;;  %v1710_v38 = vld [vmem:[%s6217_s2 + $0x1c8] sm:$0xff] }
 0x266   :  { %v3383_v54 = vpop.eup %3382  ;;  %vm2686_vm4 = vcmp.lt.f32.partialorder %v2685_v32, 0.0004427343  ;;  %v2728_v2 = vadd.f32 1.0, %v2727_v9  ;;  %v1604_v1 = vsel %vm1602_vm3, %v1603_v35, %v1601_v5  ;;  %v1584_v39 = vmul.f32 0.5, %v1583_v33 }
 0x267   :  { %v2687_v51 = vsel %vm2686_vm4, %v2684_v52, %v2681_v60  ;;  %vm2901_vm5 = vcmp.gt.f32.partialorder %v5982_v36, 10.0  ;;  %v2715_v45 = vadd.f32 1.0, %v3383_v54  ;;  %v2730_v21 = vand.u32 2147483647, %v3379_v10 }
 0x268   :  { %v2838_v8 = vadd.f32 %v2687_v51, %v1956_v56  ;;  %v2718_v7 = vmul.f32 -0.5, %v3383_v54  ;;  %v2027_v26 = vand.u32 2147483647, %v6075_v58  ;;  %v1961_v62 = vmax.f32 %v6014_v30, 0.0  ;;  %v1715_v56 = vld [vmem:[%s6217_s2 + $0x1f0] sm:$0xff] }
 0x269   :  { %vm2906_vm6 = vcmp.gt.f32.partialorder %v6014_v30, 10.0  ;;  %3388 = vlog2.f32 %v2715_v45  ;;  %v1774_v61 = vsub.f32 10.0, %v1604_v1  ;;  %v2729_v0 = vmul.f32 %v3379_v10, %v2728_v2 }
 0x26a   :  { %v3385_v23 = vpop.eup %3384  ;;  %v2964_v4 = vsel %vm2901_vm5, %v5982_v36, %v2838_v8  ;;  %v2090_v49 = vsub.f32 0.0, %v2027_v26  ;;  %v1585_v19 = vsub.f32 1.5, %v1584_v39  ;;  %v2721_v28 = vand.u32 2147483647, %v3383_v54 }
 0x26b   :  { %v3387_v18 = vpop.eup %3386  ;;  %3028 = vst.msk [vmem:[%s6218_s3 + $0x198] sm:$0xff] %vm2976_vm15, %v2964_v4  ;;  %v2726_v43 = vmul.f32 0.6931472, %v3385_v23  ;;  %v1837_v46 = vmul.f32 %v1774_v61, %v1711_v3  ;;  %3390 = vrsqrt.f32 %v6085_v6  ;;  %vm2731_vm7 = vcmp.lt.f32.partialorder %v2730_v21, 0.0004427343 }
 0x26c   :  { %v2719_v29 = vadd.f32 1.0, %v2718_v7  ;;  %v2706_v47 = vadd.f32 1.0, %v3387_v18  ;;  %v2212_v53 = vmul.f32 1.442695, %v2090_v49  ;;  %v2709_v36 = vmul.f32 -0.5, %v3387_v18 }
 0x26d   :  { %v2732_v55 = vsel %vm2731_vm7, %v2729_v0, %v2726_v43  ;;  %v6095_v44 = vsub.f32 1.0, %v1837_v46  ;;  %v1586_v24 = vmul.f32 %v6055_v13, %v1585_v19  ;;  %v1960_v12 = vmax.f32 %v6035_v50, 0.0 }
 0x26e   :  { %v2843_v63 = vadd.f32 %v2732_v55, %v1961_v62  ;;  %3392 = vlog2.f32 %v2706_v47  ;;  %vm1588_vm8 = vcmp.eq.f32.partialorder %v6032_v31, inf  ;;  %vm6102_vm9 = vcmp.lt.f32.partialorder %v2721_v28, 0.0004427343 }
 0x26f   :  { %v3389_v22 = vpop.eup %3388  ;;  %3394 = vpow2.f32 %v2212_v53  ;;  %v2026_v40 = vand.u32 2147483647, %v6095_v44  ;;  %vm1590_vm10 = vcmp.eq.f32.partialorder %v6032_v31, 0.0  ;;  %v2720_v20 = vmul.f32 %v3383_v54, %v2719_v29 }
 0x270   :  { %v2969_v13 = vsel %vm2906_vm6, %v6014_v30, %v2843_v63  ;;  %v2717_v27 = vmul.f32 0.6931472, %v3389_v22  ;;  %v1587_v37 = vmul.f32 %v1586_v24, %v6032_v31  ;;  %v2710_v10 = vadd.f32 1.0, %v2709_v36 }
 0x271   :  { %v3391_v41 = vpop.eup %3390  ;;  %3033 = vst.msk [vmem:[%s6218_s3 + $0x1c0] sm:$0xff] %vm2976_vm15, %v2969_v13  ;;  %v2089_v17 = vsub.f32 0.0, %v2026_v40  ;;  %v1591_v11 = vand.u32 2147483648, %v6032_v31  ;;  %3396 = vrsqrt.f32 %v6100_v25  ;;  %v2712_v34 = vand.u32 2147483647, %v3387_v18 }
 0x272   :  { %v2723_v30 = vsel %vm6102_vm9, %v2720_v20, %v2717_v27  ;;  %v1589_v14 = vsel %vm1588_vm8, %v6032_v31, %v1587_v37  ;;  %v1642_v32 = vmul.f32 %v3391_v41, %v6085_v6  ;;  %vm2905_vm0 = vcmp.gt.f32.partialorder %v6035_v50, 10.0 }
 0x273   :  { %v2842_v59 = vadd.f32 %v2723_v30, %v1960_v12  ;;  %v2210_v9 = vmul.f32 1.442695, %v2089_v17  ;;  %v1592_v57 = vsel %vm1590_vm10, %v1591_v11, %v1589_v14  ;;  %v1959_v33 = vmax.f32 %v6046_v15, 0.0 }
 0x274   :  { %v3393_v16 = vpop.eup %3392  ;;  %v1773_v48 = vsub.f32 10.0, %v1592_v57  ;;  %v1643_v52 = vmul.f32 %v3391_v41, %v1642_v32  ;;  %3398 = vrsqrt.f32 %v6118_v42  ;;  %v2711_v54 = vmul.f32 %v3387_v18, %v2710_v10 }
 0x275   :  { %v3395_v35 = vpop.eup %3394  ;;  %v2968_v60 = vsel %vm2905_vm0, %v6035_v50, %v2842_v59  ;;  %v2708_v5 = vmul.f32 0.6931472, %v3393_v16  ;;  %3400 = vpow2.f32 %v2210_v9  ;;  %vm2713_vm11 = vcmp.lt.f32.partialorder %v2712_v34, 0.0004427343 }
 0x276   :  { %3032 = vst.msk [vmem:[%s6218_s3 + $0x1b8] sm:$0xff] %vm2976_vm15, %v2968_v60  ;;  %v2751_v31 = vadd.f32 1.0, %v3395_v35  ;;  %v2754_v2 = vmul.f32 -0.5, %v3395_v35  ;;  %v1836_v1 = vmul.f32 %v1773_v48, %v1710_v38  ;;  %v1644_v45 = vmul.f32 0.5, %v1643_v52 }
 0x277   :  { %v3397_v39 = vpop.eup %3396  ;;  %v2714_v51 = vsel %vm2713_vm11, %v2711_v54, %v2708_v5  ;;  %vm2904_vm12 = vcmp.gt.f32.partialorder %v6046_v15, 10.0  ;;  %v1964_v23 = vmax.f32 %v6075_v58, 0.0  ;;  %vm1648_vm13 = vcmp.eq.f32.partialorder %v6085_v6, inf }
 0x278   :  { %v2841_v8 = vadd.f32 %v2714_v51, %v1959_v33  ;;  %3402 = vlog2.f32 %v2751_v31  ;;  %v6140_v50 = vsub.f32 1.0, %v1836_v1  ;;  %v1645_v21 = vsub.f32 1.5, %v1644_v45 }
 0x279   :  { %v1630_v7 = vmul.f32 %v3397_v39, %v6100_v25  ;;  %v2755_v62 = vadd.f32 1.0, %v2754_v2  ;;  %v2757_v49 = vand.u32 2147483647, %v3395_v35  ;;  %vm1650_vm14 = vcmp.eq.f32.partialorder %v6085_v6, 0.0 }
 0x27a   :  { %v3399_v26 = vpop.eup %3398  ;;  %v2967_v3 = vsel %vm2904_vm12, %v6046_v15, %v2841_v8  ;;  %v2025_v4 = vand.u32 2147483647, %v6140_v50  ;;  %v1646_v0 = vmul.f32 %v3391_v41, %v1645_v21  ;;  %v1651_v53 = vand.u32 2147483648, %v6085_v6 }
 0x27b   :  { %v3401_v61 = vpop.eup %3400  ;;  %3031 = vst.msk [vmem:[%s6218_s3 + $0x1b0] sm:$0xff] %vm2976_vm15, %v2967_v3  ;;  %v1631_v43 = vmul.f32 %v3397_v39, %v1630_v7  ;;  %v1618_v46 = vmul.f32 %v3399_v26, %v6118_v42  ;;  %v2756_v47 = vmul.f32 %v3395_v35, %v2755_v62  ;;  %vm2758_vm1 = vcmp.lt.f32.partialorder %v2757_v49, 0.0004427343 }
 0x27c   :  { %v2742_v19 = vadd.f32 1.0, %v3401_v61  ;;  %v2745_v18 = vmul.f32 -0.5, %v3401_v61  ;;  %v2088_v28 = vsub.f32 0.0, %v2025_v4  ;;  %v1647_v15 = vmul.f32 %v1646_v0, %v6085_v6 }
 0x27d   :  { %v1632_v55 = vmul.f32 0.5, %v1631_v43  ;;  %v1619_v12 = vmul.f32 %v3399_v26, %v1618_v46  ;;  %v2748_v10 = vand.u32 2147483647, %v3401_v61  ;;  %vm2909_vm2 = vcmp.gt.f32.partialorder %v6075_v58, 10.0 }
 0x27e   :  { %v3403_v29 = vpop.eup %3402  ;;  %3404 = vlog2.f32 %v2742_v19  ;;  %v2208_v24 = vmul.f32 1.442695, %v2088_v28  ;;  %v1649_v63 = vsel %vm1648_vm13, %v6085_v6, %v1647_v15  ;;  %v2746_v22 = vadd.f32 1.0, %v2745_v18 }
 0x27f   :  { %v2753_v36 = vmul.f32 0.6931472, %v3403_v29  ;;  %v1652_v40 = vsel %vm1650_vm14, %v1651_v53, %v1649_v63  ;;  %v1633_v13 = vsub.f32 1.5, %v1632_v55  ;;  %v1620_v37 = vmul.f32 0.5, %v1619_v12 }
 0x280   :  { %3406 = vpow2.f32 %v2208_v24  ;;  %v1778_v20 = vsub.f32 10.0, %v1652_v40  ;;  %vm1636_vm3 = vcmp.eq.f32.partialorder %v6100_v25, inf  ;;  %v2747_v59 = vmul.f32 %v3401_v61, %v2746_v22 }
 0x281   :  { %v2759_v27 = vsel %vm2758_vm1, %v2756_v47, %v2753_v36  ;;  %v1634_v17 = vmul.f32 %v3397_v39, %v1633_v13  ;;  %v1621_v6 = vsub.f32 1.5, %v1620_v37  ;;  %v1963_v57 = vmax.f32 %v6095_v44, 0.0  ;;  %v1714_v39 = vld [vmem:[%s6217_s2 + $0x1e8] sm:$0xff] }
 0x282   :  { %v2846_v41 = vadd.f32 %v2759_v27, %v1964_v23  ;;  %v1841_v11 = vmul.f32 %v1778_v20, %v1715_v56  ;;  %vm2749_vm4 = vcmp.lt.f32.partialorder %v2748_v10, 0.0004427343  ;;  %v1639_v52 = vand.u32 2147483648, %v6100_v25 }
 0x283   :  { %v1635_v14 = vmul.f32 %v1634_v17, %v6100_v25  ;;  %v1622_v38 = vmul.f32 %v3399_v26, %v1621_v6  ;;  %vm2908_vm5 = vcmp.gt.f32.partialorder %v6095_v44, 10.0  ;;  %vm1638_vm6 = vcmp.eq.f32.partialorder %v6100_v25, 0.0 }
 0x284   :  { %v3405_v30 = vpop.eup %3404  ;;  %v2972_v34 = vsel %vm2909_vm2, %v6075_v58, %v2846_v41  ;;  %v6169_v9 = vsub.f32 1.0, %v1841_v11  ;;  %vm1624_vm7 = vcmp.eq.f32.partialorder %v6118_v42, inf  ;;  %v1627_v51 = vand.u32 2147483648, %v6118_v42 }
 0x285   :  { %3036 = vst.msk [vmem:[%s6218_s3 + $0x1d8] sm:$0xff] %vm2976_vm15, %v2972_v34  ;;  %v2744_v32 = vmul.f32 0.6931472, %v3405_v30  ;;  %v1637_v16 = vsel %vm1636_vm3, %v6100_v25, %v1635_v14  ;;  %v1623_v2 = vmul.f32 %v1622_v38, %v6118_v42  ;;  %vm1626_vm8 = vcmp.eq.f32.partialorder %v6118_v42, 0.0 }
 0x286   :  { %v3407_v58 = vpop.eup %3406  ;;  %v2030_v48 = vand.u32 2147483647, %v6169_v9  ;;  %v1640_v31 = vsel %vm1638_vm6, %v1639_v52, %v1637_v16  ;;  %v1962_v18 = vmax.f32 %v6140_v50, 0.0  ;;  %vm2907_vm10 = vcmp.gt.f32.partialorder %v6140_v50, 10.0 }
 0x287   :  { %v2750_v33 = vsel %vm2749_vm4, %v2747_v59, %v2744_v32  ;;  %v2733_v60 = vadd.f32 1.0, %v3407_v58  ;;  %v2736_v5 = vmul.f32 -0.5, %v3407_v58  ;;  %v1777_v45 = vsub.f32 10.0, %v1640_v31 }
 0x288   :  { %v2845_v35 = vadd.f32 %v2750_v33, %v1963_v57  ;;  %v2093_v54 = vsub.f32 0.0, %v2030_v48  ;;  %v1625_v8 = vsel %vm1624_vm7, %v6118_v42, %v1623_v2  ;;  %v2739_v62 = vand.u32 2147483647, %v3407_v58 }
 0x289   :  { %3408 = vlog2.f32 %v2733_v60  ;;  %v1628_v21 = vsel %vm1626_vm8, %v1627_v51, %v1625_v8  ;;  %v2737_v7 = vadd.f32 1.0, %v2736_v5  ;;  %v1840_v26 = vmul.f32 %v1777_v45, %v1714_v39 }
 0x28a   :  { %v2971_v1 = vsel %vm2908_vm5, %v6095_v44, %v2845_v35  ;;  %v2218_v25 = vmul.f32 1.442695, %v2093_v54  ;;  %v1713_v44 = vld [vmem:[%s6217_s2 + $0x1e0] sm:$0xff]  ;;  %v1776_v3 = vsub.f32 10.0, %v1628_v21  ;;  %vm2740_vm9 = vcmp.lt.f32.partialorder %v2739_v62, 0.0004427343 }
 0x28b   :  { %3035 = vst.msk [vmem:[%s6218_s3 + $0x1d0] sm:$0xff] %vm2976_vm15, %v2971_v1  ;;  %v1903_v61 = vsub.f32 1.0, %v1840_v26  ;;  %v2738_v49 = vmul.f32 %v3407_v58, %v2737_v7  ;;  %v1967_v20 = vmax.f32 %v6169_v9, 0.0  ;;  %vm2912_vm11 = vcmp.gt.f32.partialorder %v6169_v9, 10.0 }
 0x28c   :  { %3410 = vpow2.f32 %v2218_v25  ;;  %v1839_v23 = vmul.f32 %v1776_v3, %v1713_v44 }
 0x28d   :  { %v2029_v19 = vand.u32 2147483647, %v1903_v61  ;;  %v1966_v16 = vmax.f32 %v1903_v61, 0.0  ;;  %vm2911_vm13 = vcmp.gt.f32.partialorder %v1903_v61, 10.0 }
 0x28e   :  { %v1902_v42 = vsub.f32 1.0, %v1839_v23 }
 0x28f   :  { %v3409_v4 = vpop.eup %3408  ;;  %v2092_v15 = vsub.f32 0.0, %v2029_v19 }
 0x290   :  { %v2735_v0 = vmul.f32 0.6931472, %v3409_v4  ;;  %v2028_v55 = vand.u32 2147483647, %v1902_v42  ;;  %v1965_v5 = vmax.f32 %v1902_v42, 0.0  ;;  %vm2910_vm1 = vcmp.gt.f32.partialorder %v1902_v42, 10.0 }
 0x291   :  { %v2216_v53 = vmul.f32 1.442695, %v2092_v15 }
 0x292   :  { %v3411_v43 = vpop.eup %3410  ;;  %v2741_v28 = vsel %vm2740_vm9, %v2738_v49, %v2735_v0  ;;  %v2091_v24 = vsub.f32 0.0, %v2028_v55 }
 0x293   :  { %v2844_v46 = vadd.f32 %v2741_v28, %v1962_v18  ;;  %v2778_v29 = vadd.f32 1.0, %v3411_v43  ;;  %v2781_v47 = vmul.f32 -0.5, %v3411_v43  ;;  %v2784_v22 = vand.u32 2147483647, %v3411_v43 }
 0x294   :  { %v2214_v12 = vmul.f32 1.442695, %v2091_v24 }
 0x295   :  { %v2970_v36 = vsel %vm2907_vm10, %v6140_v50, %v2844_v46  ;;  %3412 = vlog2.f32 %v2778_v29  ;;  %v2782_v63 = vadd.f32 1.0, %v2781_v47  ;;  %vm2785_vm0 = vcmp.lt.f32.partialorder %v2784_v22, 0.0004427343 }
 0x296   :  { %3034 = vst.msk [vmem:[%s6218_s3 + $0x1c8] sm:$0xff] %vm2976_vm15, %v2970_v36  ;;  %3414 = vpow2.f32 %v2216_v53 }
 0x297   :  { %3416 = vpow2.f32 %v2214_v12  ;;  %v2783_v27 = vmul.f32 %v3411_v43, %v2782_v63 }
 0x29b   :  { %v3413_v56 = vpop.eup %3412 }
 0x29c   :  { %v3415_v40 = vpop.eup %3414  ;;  %v2780_v13 = vmul.f32 0.6931472, %v3413_v56 }
 0x29d   :  { %v2769_v50 = vadd.f32 1.0, %v3415_v40  ;;  %v2772_v41 = vmul.f32 -0.5, %v3415_v40  ;;  %v3417_v17 = vpop.eup %3416  ;;  %v2775_v14 = vand.u32 2147483647, %v3415_v40 }
 0x29e   :  { %v2786_v37 = vsel %vm2785_vm0, %v2783_v27, %v2780_v13  ;;  %v2760_v6 = vadd.f32 1.0, %v3417_v17  ;;  %v2763_v34 = vmul.f32 -0.5, %v3417_v17  ;;  %v2766_v58 = vand.u32 2147483647, %v3417_v17 }
 0x29f   :  { %v2849_v10 = vadd.f32 %v2786_v37, %v1967_v20  ;;  %3418 = vlog2.f32 %v2769_v50  ;;  %v2773_v30 = vadd.f32 1.0, %v2772_v41  ;;  %vm2776_vm12 = vcmp.lt.f32.partialorder %v2775_v14, 0.0004427343 }
 0x2a0   :  { %3420 = vlog2.f32 %v2760_v6  ;;  %v2764_v57 = vadd.f32 1.0, %v2763_v34  ;;  %vm2767_vm14 = vcmp.lt.f32.partialorder %v2766_v58, 0.0004427343 }
 0x2a1   :  { %v2975_v11 = vsel %vm2912_vm11, %v6169_v9, %v2849_v10  ;;  %v2774_v38 = vmul.f32 %v3415_v40, %v2773_v30 }
 0x2a2   :  { %3039 = vst.msk [vmem:[%s6218_s3 + $0x1f0] sm:$0xff] %vm2976_vm15, %v2975_v11  ;;  %v2765_v35 = vmul.f32 %v3417_v17, %v2764_v57 }
 0x2a5   :  { %v3419_v32 = vpop.eup %3418 }
 0x2a6   :  { %v2771_v59 = vmul.f32 0.6931472, %v3419_v32  ;;  %v3421_v48 = vpop.eup %3420 }
 0x2a7   :  { %v2762_v52 = vmul.f32 0.6931472, %v3421_v48 }
 0x2a8   :  { %v2777_v33 = vsel %vm2776_vm12, %v2774_v38, %v2771_v59 }
 0x2a9   :  { %v2848_v9 = vadd.f32 %v2777_v33, %v1966_v16  ;;  %v2768_v54 = vsel %vm2767_vm14, %v2765_v35, %v2762_v52 }
 0x2aa   :  { %v2847_v31 = vadd.f32 %v2768_v54, %v1965_v5 }
 0x2ab   :  { %v2974_v60 = vsel %vm2911_vm13, %v1903_v61, %v2848_v9 }
 0x2ac   :  { %3038 = vst.msk [vmem:[%s6218_s3 + $0x1e8] sm:$0xff] %vm2976_vm15, %v2974_v60  ;;  %v2973_v2 = vsel %vm2910_vm1, %v1902_v42, %v2847_v31 }
 0x2ad   :  { %3037 = vst.msk [vmem:[%s6218_s3 + $0x1e0] sm:$0xff] %vm2976_vm15, %v2973_v2 }

</bundles_post_ra>
